<compile_context>
chip_gen: v7x
topology: tpu7x:2x2x1
jax: 0.10.0
libtpu: 0.0.40
codegen_flags: <defaults>
</compile_context>

<pallas_src>
import functools

import jax
import jax.numpy as jnp
from jax import lax
from jax.experimental import pallas as pl
from jax.experimental.pallas import tpu as pltpu


# ----------------------------------------------------------------------------
# Helpers
# ----------------------------------------------------------------------------
def _round_up(x, m):
    return (x + m - 1) // m * m


def _gru_step(x_t, h_prev, wih, whh, bih, bhh, hidden):
    """PyTorch-style GRU cell with the (r, z, n) gates fused into two matmuls."""
    gi = jnp.dot(x_t, wih, preferred_element_type=jnp.float32) + bih
    gh = jnp.dot(h_prev, whh, preferred_element_type=jnp.float32) + bhh
    r = jax.nn.sigmoid(gi[:, 0:hidden] + gh[:, 0:hidden])
    z = jax.nn.sigmoid(gi[:, hidden:2 * hidden] + gh[:, hidden:2 * hidden])
    n = jnp.tanh(gi[:, 2 * hidden:3 * hidden] + r * gh[:, 2 * hidden:3 * hidden])
    return (1.0 - z) * n + z * h_prev


# ----------------------------------------------------------------------------
# Fused sequence kernel: embedding -> bidirectional dilated-GRU encoder
# (directions folded into sublanes) -> decoder GRU + linear + output embedding
# ----------------------------------------------------------------------------
def _seq_kernel(*refs, hidden_structs, dilations, seq_len, train_decoder):
    n_layers = len(hidden_structs)
    t_len = seq_len
    sum_h = sum(hidden_structs)

    x_ref, we_ref, be_ref = refs[0:3]
    enc_w = refs[3:3 + 4 * n_layers]
    (dwih_ref, dwhh_ref, dbih_ref, dbhh_ref,
     wlin_ref, blin_ref, wout_ref, bout_ref) = refs[3 + 4 * n_layers:
                                                    11 + 4 * n_layers]
    recon_ref, state_ref = refs[11 + 4 * n_layers:13 + 4 * n_layers]

    bp = x_ref.shape[1]

    # ---- Input embedding (fused); sequence kept as live values (vregs). ----
    we = we_ref[...]
    be = be_ref[...]
    emb = [jnp.dot(x_ref[t], we, preferred_element_type=jnp.float32) + be
           for t in range(t_len)]

    # ---- Bidirectional dilated-GRU encoder, directions folded into sublanes.
    # Rows [0:bp] run the forward sequence, rows [bp:2bp] the reversed one;
    # weights are shared, so one stacked matmul per step serves both.
    src = [jnp.concatenate([emb[t], emb[t_len - 1 - t]], axis=0)
           for t in range(t_len)]
    last_h = []
    for l in range(n_layers):
        wih = enc_w[4 * l][...]
        whh = enc_w[4 * l + 1][...]
        bih = enc_w[4 * l + 2][...]
        bhh = enc_w[4 * l + 3][...]
        hid = hidden_structs[l]
        dil = dilations[l]
        zero_h = jnp.zeros((2 * bp, hid), jnp.float32)

        outs = []
        for t in range(t_len):
            # Dilated recurrence: h_t = GRU(x_t, h_{t-d}), h_{<0} = 0.
            h_prev = outs[t - dil] if t >= dil else zero_h
            outs.append(_gru_step(src[t], h_prev, wih, whh, bih, bhh, hid))
        last_h.append(outs[t_len - 1])
        src = outs  # this layer's output sequence feeds the next layer

    # ---- encoder_state epilogue: direct sliced stores (no concatenate).
    # Columns [0:sumH] = forward per-layer hiddens, [sumH:2sumH] = backward.
    off = 0
    for l in range(n_layers):
        hid = hidden_structs[l]
        state_ref[:, off:off + hid] = last_h[l][:bp]
        state_ref[:, sum_h + off:sum_h + off + hid] = last_h[l][bp:]
        off += hid

    # ---- Decoder: GRU + decoder linear + output embedding, fully unrolled,
    # hidden state and feedback input carried as values (no scratch).
    dwih = dwih_ref[...]
    dwhh = dwhh_ref[...]
    dbih = dbih_ref[...]
    dbhh = dbhh_ref[...]
    wlin = wlin_ref[...]
    blin = blin_ref[...]
    wout = wout_ref[...]
    bout = bout_ref[...]
    hd = 2 * sum_h

    h = state_ref[...]          # initial hidden = encoder_state
    x_t = emb[0]                # step-0 input == embedded x[:, 0, :]
    for t in range(t_len):
        h = _gru_step(x_t, h, dwih, dwhh, dbih, dbhh, hd)
        out_e = jnp.dot(h, wlin, preferred_element_type=jnp.float32) + blin
        recon_ref[t] = (jnp.dot(out_e, wout, preferred_element_type=jnp.float32)
                        + bout).astype(recon_ref.dtype)
        # Teacher forcing matches the reference loop exactly: after step t the
        # next input becomes x[:, t, :] (steps 0 and 1 both consume x[:, 0, :]).
        x_t = emb[t] if train_decoder else out_e
    # TODO(synk): make this store lane-dense ([Bp, T*C] repack) when T*B*C grows.


def seq_forward(x_tm, params, *, hidden_structs, dilations, train_decoder):
    """x_tm: [T, Bp, C] padded, time-major -> (recon_tm [T,Bp,C], state [Bp,2*sumH])."""
    t_len, bp, c = x_tm.shape
    hd = 2 * sum(hidden_structs)

    args = [x_tm, params["in_emb"][0], params["in_emb"][1]]
    for layer in params["encoder"]:
        args.extend(layer)
    args.extend(params["dec_gru"])
    args.extend(params["dec_lin"])
    args.extend(params["out_emb"])

    kernel = functools.partial(
        _seq_kernel,
        hidden_structs=tuple(hidden_structs),
        dilations=tuple(dilations),
        seq_len=t_len,
        train_decoder=train_decoder,
    )
    return pl.pallas_call(
        kernel,
        out_shape=(jax.ShapeDtypeStruct((t_len, bp, c), jnp.float32),
                   jax.ShapeDtypeStruct((bp, hd), jnp.float32)),
        # Safe everywhere (>= default on v5e, == default on v6e/v7x); matters
        # once sequence/weight sizes grow beyond toy scale.
        compiler_params=pltpu.CompilerParams(vmem_limit_bytes=32 * 1024 * 1024),
    )(*args)


# ----------------------------------------------------------------------------
# Fused heads kernel: WTW, FTWTWF and the real/fake classifier in one call
# ----------------------------------------------------------------------------
def _heads_kernel(w_ref, f_ref, w1_ref, b1_ref, w2_ref, b2_ref, w3_ref, b3_ref,
                  wtw_ref, ftwtwf_ref, pred_ref):
    w = w_ref[...]                                                    # [Bp, D]
    # WTW = W @ W^T without materializing a transpose.
    wtw_ref[...] = lax.dot_general(w, w, (((1,), (1,)), ((), ())),
                                   preferred_element_type=jnp.float32)
    # FTWTWF = F^T (W W^T) F = (F^T W)(F^T W)^T — avoids the [Bp,Bp] operand
    # chain and the precomputed F^T input.
    gt = lax.dot_general(f_ref[...], w, (((0,), (0,)), ((), ())),
                         preferred_element_type=jnp.float32)          # [k, D]
    ftwtwf_ref[...] = lax.dot_general(gt, gt, (((1,), (1,)), ((), ())),
                                      preferred_element_type=jnp.float32)
    # Classifier: fc1 -> relu -> fc2 -> relu -> sigmoid(output head).
    h1 = jnp.maximum(
        jnp.dot(w, w1_ref[...], preferred_element_type=jnp.float32) + b1_ref[...],
        0.0)
    h2 = jnp.maximum(
        jnp.dot(h1, w2_ref[...], preferred_element_type=jnp.float32) + b2_ref[...],
        0.0)
    pred_ref[...] = jax.nn.sigmoid(
        jnp.dot(h2, w3_ref[...], preferred_element_type=jnp.float32) + b3_ref[...])


def heads_forward(enc_state, f_pad, fc1, fc2, clf_out):
    bp = enc_state.shape[0]
    k = f_pad.shape[1]
    n_out = clf_out[0].shape[1]  # 128: lane-dense store; real logit in column 0.
    return pl.pallas_call(
        _heads_kernel,
        out_shape=(jax.ShapeDtypeStruct((bp, bp), jnp.float32),
                   jax.ShapeDtypeStruct((k, k), jnp.float32),
                   jax.ShapeDtypeStruct((bp, n_out), jnp.float32)),
    )(enc_state, f_pad, fc1[0], fc1[1], fc2[0], fc2[1], clf_out[0], clf_out[1])


# ----------------------------------------------------------------------------
# Parameter initialization (deterministic, PyTorch-like uniform fan-in init)
# ----------------------------------------------------------------------------
def init_linear(key, din, dout):
    k1, k2 = jax.random.split(key)
    bound = 1.0 / jnp.sqrt(float(din))
    w = jax.random.uniform(k1, (din, dout), jnp.float32, -bound, bound)
    b = jax.random.uniform(k2, (1, dout), jnp.float32, -bound, bound)
    return w, b


def init_gru(key, din, hidden):
    """Gate-fused GRU params: wih [Din,3H], whh [H,3H], biases [1,3H]."""
    k1, k2, k3, k4 = jax.random.split(key, 4)
    bound = 1.0 / jnp.sqrt(float(hidden))
    wih = jax.random.uniform(k1, (din, 3 * hidden), jnp.float32, -bound, bound)
    whh = jax.random.uniform(k2, (hidden, 3 * hidden), jnp.float32, -bound, bound)
    bih = jax.random.uniform(k3, (1, 3 * hidden), jnp.float32, -bound, bound)
    bhh = jax.random.uniform(k4, (1, 3 * hidden), jnp.float32, -bound, bound)
    return (wih, whh, bih, bhh)


def init_params(key, *, batch, inchannels, emb_units, hidden_structs,
                cluster_num, clf_hidden=128):
    n_layers = len(hidden_structs)
    keys = jax.random.split(key, 8 + n_layers)
    hd = 2 * sum(hidden_structs)
    bp = _round_up(batch, 8)  # sublane-padded batch

    params = {}
    params["in_emb"] = init_linear(keys[0], inchannels, emb_units)
    params["out_emb"] = init_linear(keys[1], emb_units, inchannels)

    enc = []
    din = emb_units
    for i, h in enumerate(hidden_structs):
        enc.append(init_gru(keys[2 + i], din, h))
        din = h
    params["encoder"] = enc

    params["dec_gru"] = init_gru(keys[2 + n_layers], emb_units, hd)
    params["dec_lin"] = init_linear(keys[3 + n_layers], hd, emb_units)

    params["fc1"] = init_linear(keys[4 + n_layers], hd, clf_hidden)
    params["fc2"] = init_linear(keys[5 + n_layers], clf_hidden, clf_hidden)
    w3, b3 = init_linear(keys[6 + n_layers], clf_hidden, 1)
    # Pad the 1-wide output head to 128 lanes (lane-dense store; sliced outside).
    w3p = jnp.zeros((clf_hidden, 128), jnp.float32).at[:, 0:1].set(w3)
    b3p = jnp.zeros((1, 128), jnp.float32).at[:, 0:1].set(b3)
    params["clf_out"] = (w3p, b3p)

    # F: orthogonal [batch, cluster_num] (nn.init.orthogonal_, non-trainable).
    # Zero-padded batch rows keep FTWTWF exact under batch padding.
    a = jax.random.normal(keys[7 + n_layers], (batch, cluster_num), jnp.float32)
    q, r = jnp.linalg.qr(a)
    f = q * jnp.sign(jnp.diag(r))[None, :]
    params["F_pad"] = jnp.zeros((bp, cluster_num), jnp.float32).at[:batch].set(f)
    return params


# ----------------------------------------------------------------------------
# Model forward
# ----------------------------------------------------------------------------
def dtcr_forward(inputs, params, *, hidden_structs, dilations, train_decoder=True):
    """inputs: [B, T, C]  (batch_first=True, dataset id 0)."""
    b, t_len, c = inputs.shape
    bp = params["F_pad"].shape[0]

    # Zero-pad batch rows to a sublane multiple (time-major for the kernel).
    x_pad = jnp.pad(inputs, ((0, bp - b), (0, 0), (0, 0)))
    x_tm = jnp.transpose(x_pad, (1, 0, 2))                       # [T, Bp, C]

    # Embedding + bidirectional dilated-GRU encoder + decoder: one fused kernel.
    recon_tm, enc_state_p = seq_forward(
        x_tm, params, hidden_structs=hidden_structs, dilations=dilations,
        train_decoder=train_decoder)
    recon = jnp.transpose(recon_tm, (1, 0, 2))[:b]               # [B, T, C]

    # Clustering terms + real/fake classifier: one fused kernel.
    wtw_p, ftwtwf, pred_full = heads_forward(
        enc_state_p, params["F_pad"], params["fc1"], params["fc2"],
        params["clf_out"])

    w_out = enc_state_p[:b]
    wtw = wtw_p[:b, :b]
    pred_pro = pred_full[:b, :1]
    return recon, w_out, wtw, ftwtwf, pred_pro


# ----------------------------------------------------------------------------
# Demo
# ----------------------------------------------------------------------------
if __name__ == "__main__":
    batch = 4
    seq_len = 8
    inchannels = 4
    input_embeding_units = 8
    hidden_structs = [8, 8]
    dilations = [1, 2]
    cluster_num = 3

    key = jax.random.PRNGKey(0)
    k_params, k_in = jax.random.split(key)
    params = init_params(
        k_params,
        batch=batch,
        inchannels=inchannels,
        emb_units=input_embeding_units,
        hidden_structs=hidden_structs,
        cluster_num=cluster_num,
    )
    inputs = jax.random.normal(k_in, (batch, seq_len, inchannels), jnp.float32)

    fwd = jax.jit(
        functools.partial(
            dtcr_forward,
            hidden_structs=tuple(hidden_structs),
            dilations=tuple(dilations),
            train_decoder=True,
        )
    )
    recon, enc_state, WTW, FTWTWF, pred_pro = fwd(inputs, params)
    jax.block_until_ready((recon, enc_state, WTW, FTWTWF, pred_pro))

    assert recon.shape == (batch, seq_len, inchannels)
    assert enc_state.shape == (batch, 2 * sum(hidden_structs))
    assert WTW.shape == (batch, batch)
    assert FTWTWF.shape == (cluster_num, cluster_num)
    assert pred_pro.shape == (batch, 1)
    print("KERNEL_OK")
</pallas_src>

<mosaic_0001>
module attributes {stable_mosaic.version = 11 : i64} {
  func.func @_heads_kernel(%arg0: memref<8x32xf32, #tpu.memory_space<vmem>>, %arg1: memref<8x3xf32, #tpu.memory_space<vmem>>, %arg2: memref<32x128xf32, #tpu.memory_space<vmem>>, %arg3: memref<1x128xf32, #tpu.memory_space<vmem>>, %arg4: memref<128x128xf32, #tpu.memory_space<vmem>>, %arg5: memref<1x128xf32, #tpu.memory_space<vmem>>, %arg6: memref<128x128xf32, #tpu.memory_space<vmem>>, %arg7: memref<1x128xf32, #tpu.memory_space<vmem>>, %arg8: memref<8x8xf32, #tpu.memory_space<vmem>>, %arg9: memref<3x3xf32, #tpu.memory_space<vmem>>, %arg10: memref<8x128xf32, #tpu.memory_space<vmem>>) attributes {dimension_semantics = [], scalar_prefetch = 0 : i64, scratch_operands = 0 : i64, tpu.core_type = #tpu.core_type<tc>} {
    %c0 = arith.constant 0 : index
    %c0_0 = arith.constant 0 : index
    %0 = vector.load %arg0[%c0, %c0_0] : memref<8x32xf32, #tpu.memory_space<vmem>>, vector<8x32xf32>
    %cst = arith.constant dense<0.000000e+00> : vector<8x8xf32>
    %1 = tpu.matmul %0, %0, %cst {dimension_numbers = #tpu.dot_dimension_numbers<[1], [1], [0], [0], [0, 0, 1, 0], [], []>} : vector<8x32xf32>, vector<8x32xf32>, vector<8x8xf32> -> vector<8x8xf32>
    %c0_1 = arith.constant 0 : index
    %c0_2 = arith.constant 0 : index
    %2 = vector.load %arg8[%c0_1, %c0_2] : memref<8x8xf32, #tpu.memory_space<vmem>>, vector<8x8xf32>
    tpu.vector_store %arg8[%c0_1, %c0_2], %1 {strides = array<i32>} : memref<8x8xf32, #tpu.memory_space<vmem>>, vector<8x8xf32>,
    %c0_3 = arith.constant 0 : index
    %c0_4 = arith.constant 0 : index
    %3 = vector.load %arg1[%c0_3, %c0_4] : memref<8x3xf32, #tpu.memory_space<vmem>>, vector<8x3xf32>
    %cst_5 = arith.constant dense<0.000000e+00> : vector<3x32xf32>
    %4 = tpu.matmul %3, %0, %cst_5 {dimension_numbers = #tpu.dot_dimension_numbers<[0], [0], [1], [1], [0, 1, 1, 1], [], []>} : vector<8x3xf32>, vector<8x32xf32>, vector<3x32xf32> -> vector<3x32xf32>
    %cst_6 = arith.constant dense<0.000000e+00> : vector<3x3xf32>
    %5 = tpu.matmul %4, %4, %cst_6 {dimension_numbers = #tpu.dot_dimension_numbers<[1], [1], [0], [0], [0, 0, 1, 0], [], []>} : vector<3x32xf32>, vector<3x32xf32>, vector<3x3xf32> -> vector<3x3xf32>
    %c0_7 = arith.constant 0 : index
    %c0_8 = arith.constant 0 : index
    %6 = vector.load %arg9[%c0_7, %c0_8] : memref<3x3xf32, #tpu.memory_space<vmem>>, vector<3x3xf32>
    tpu.vector_store %arg9[%c0_7, %c0_8], %5 {strides = array<i32>} : memref<3x3xf32, #tpu.memory_space<vmem>>, vector<3x3xf32>,
    %c0_9 = arith.constant 0 : index
    %c0_10 = arith.constant 0 : index
    %7 = vector.load %arg2[%c0_9, %c0_10] : memref<32x128xf32, #tpu.memory_space<vmem>>, vector<32x128xf32>
    %cst_11 = arith.constant dense<0.000000e+00> : vector<8x128xf32>
    %8 = tpu.matmul %0, %7, %cst_11 {dimension_numbers = #tpu.dot_dimension_numbers<[1], [0], [0], [1], [0, 0, 1, 1], [], []>} : vector<8x32xf32>, vector<32x128xf32>, vector<8x128xf32> -> vector<8x128xf32>
    %c0_12 = arith.constant 0 : index
    %c0_13 = arith.constant 0 : index
    %9 = vector.load %arg3[%c0_12, %c0_13] : memref<1x128xf32, #tpu.memory_space<vmem>>, vector<1x128xf32>
    %10 = vector.broadcast %9 : vector<1x128xf32> to vector<8x128xf32>
    %11 = arith.addf %8, %10 : vector<8x128xf32>
    %cst_14 = arith.constant 0.000000e+00 : f32
    %12 = vector.broadcast %cst_14 : f32 to vector<8x128xf32>
    %13 = arith.maximumf %11, %12 : vector<8x128xf32>
    %c0_15 = arith.constant 0 : index
    %c0_16 = arith.constant 0 : index
    %14 = vector.load %arg4[%c0_15, %c0_16] : memref<128x128xf32, #tpu.memory_space<vmem>>, vector<128x128xf32>
    %cst_17 = arith.constant dense<0.000000e+00> : vector<8x128xf32>
    %15 = tpu.matmul %13, %14, %cst_17 {dimension_numbers = #tpu.dot_dimension_numbers<[1], [0], [0], [1], [0, 0, 1, 1], [], []>} : vector<8x128xf32>, vector<128x128xf32>, vector<8x128xf32> -> vector<8x128xf32>
    %c0_18 = arith.constant 0 : index
    %c0_19 = arith.constant 0 : index
    %16 = vector.load %arg5[%c0_18, %c0_19] : memref<1x128xf32, #tpu.memory_space<vmem>>, vector<1x128xf32>
    %17 = vector.broadcast %16 : vector<1x128xf32> to vector<8x128xf32>
    %18 = arith.addf %15, %17 : vector<8x128xf32>
    %cst_20 = arith.constant 0.000000e+00 : f32
    %19 = vector.broadcast %cst_20 : f32 to vector<8x128xf32>
    %20 = arith.maximumf %18, %19 : vector<8x128xf32>
    %c0_21 = arith.constant 0 : index
    %c0_22 = arith.constant 0 : index
    %21 = vector.load %arg6[%c0_21, %c0_22] : memref<128x128xf32, #tpu.memory_space<vmem>>, vector<128x128xf32>
    %cst_23 = arith.constant dense<0.000000e+00> : vector<8x128xf32>
    %22 = tpu.matmul %20, %21, %cst_23 {dimension_numbers = #tpu.dot_dimension_numbers<[1], [0], [0], [1], [0, 0, 1, 1], [], []>} : vector<8x128xf32>, vector<128x128xf32>, vector<8x128xf32> -> vector<8x128xf32>
    %c0_24 = arith.constant 0 : index
    %c0_25 = arith.constant 0 : index
    %23 = vector.load %arg7[%c0_24, %c0_25] : memref<1x128xf32, #tpu.memory_space<vmem>>, vector<1x128xf32>
    %24 = vector.broadcast %23 : vector<1x128xf32> to vector<8x128xf32>
    %25 = arith.addf %22, %24 : vector<8x128xf32>
    %26 = arith.negf %25 : vector<8x128xf32>
    %27 = math.exp %26 : vector<8x128xf32>
    %cst_26 = arith.constant 1.000000e+00 : f32
    %28 = vector.broadcast %cst_26 : f32 to vector<8x128xf32>
    %29 = arith.addf %28, %27 : vector<8x128xf32>
    %30 = arith.divf %28, %29 : vector<8x128xf32>
    %c0_27 = arith.constant 0 : index
    %c0_28 = arith.constant 0 : index
    %31 = vector.load %arg10[%c0_27, %c0_28] : memref<8x128xf32, #tpu.memory_space<vmem>>, vector<8x128xf32>
    tpu.vector_store %arg10[%c0_27, %c0_28], %30 {strides = array<i32>} : memref<8x128xf32, #tpu.memory_space<vmem>>, vector<8x128xf32>,
    return
  }
}

module attributes {stable_mosaic.version = 11 : i64} {
  func.func @_seq_kernel(%arg0: memref<8x8x4xf32, #tpu.memory_space<vmem>>, %arg1: memref<4x8xf32, #tpu.memory_space<vmem>>, %arg2: memref<1x8xf32, #tpu.memory_space<vmem>>, %arg3: memref<8x24xf32, #tpu.memory_space<vmem>>, %arg4: memref<8x24xf32, #tpu.memory_space<vmem>>, %arg5: memref<1x24xf32, #tpu.memory_space<vmem>>, %arg6: memref<1x24xf32, #tpu.memory_space<vmem>>, %arg7: memref<8x24xf32, #tpu.memory_space<vmem>>, %arg8: memref<8x24xf32, #tpu.memory_space<vmem>>, %arg9: memref<1x24xf32, #tpu.memory_space<vmem>>, %arg10: memref<1x24xf32, #tpu.memory_space<vmem>>, %arg11: memref<8x96xf32, #tpu.memory_space<vmem>>, %arg12: memref<32x96xf32, #tpu.memory_space<vmem>>, %arg13: memref<1x96xf32, #tpu.memory_space<vmem>>, %arg14: memref<1x96xf32, #tpu.memory_space<vmem>>, %arg15: memref<32x8xf32, #tpu.memory_space<vmem>>, %arg16: memref<1x8xf32, #tpu.memory_space<vmem>>, %arg17: memref<8x4xf32, #tpu.memory_space<vmem>>, %arg18: memref<1x4xf32, #tpu.memory_space<vmem>>, %arg19: memref<8x8x4xf32, #tpu.memory_space<vmem>>, %arg20: memref<8x32xf32, #tpu.memory_space<vmem>>) attributes {dimension_semantics = [], scalar_prefetch = 0 : i64, scratch_operands = 0 : i64, tpu.core_type = #tpu.core_type<tc>} {
    %c0 = arith.constant 0 : index
    %c0_0 = arith.constant 0 : index
    %0 = vector.load %arg1[%c0, %c0_0] : memref<4x8xf32, #tpu.memory_space<vmem>>, vector<4x8xf32>
    %c0_1 = arith.constant 0 : index
    %c0_2 = arith.constant 0 : index
    %1 = vector.load %arg2[%c0_1, %c0_2] : memref<1x8xf32, #tpu.memory_space<vmem>>, vector<1x8xf32>
    %c0_3 = arith.constant 0 : index
    %c0_4 = arith.constant 0 : index
    %c0_5 = arith.constant 0 : index
    %2 = vector.load %arg0[%c0_3, %c0_4, %c0_5] : memref<8x8x4xf32, #tpu.memory_space<vmem>>, vector<1x8x4xf32>
    %3 = vector.shape_cast %2 : vector<1x8x4xf32> to vector<8x4xf32>
    %cst = arith.constant dense<0.000000e+00> : vector<8x8xf32>
    %4 = tpu.matmul %3, %0, %cst {dimension_numbers = #tpu.dot_dimension_numbers<[1], [0], [0], [1], [0, 0, 1, 1], [], []>} : vector<8x4xf32>, vector<4x8xf32>, vector<8x8xf32> -> vector<8x8xf32>
    %5 = vector.broadcast %1 : vector<1x8xf32> to vector<8x8xf32>
    %6 = arith.addf %4, %5 : vector<8x8xf32>
    %c1 = arith.constant 1 : index
    %c0_6 = arith.constant 0 : index
    %c0_7 = arith.constant 0 : index
    %7 = vector.load %arg0[%c1, %c0_6, %c0_7] : memref<8x8x4xf32, #tpu.memory_space<vmem>>, vector<1x8x4xf32>
    %8 = vector.shape_cast %7 : vector<1x8x4xf32> to vector<8x4xf32>
    %cst_8 = arith.constant dense<0.000000e+00> : vector<8x8xf32>
    %9 = tpu.matmul %8, %0, %cst_8 {dimension_numbers = #tpu.dot_dimension_numbers<[1], [0], [0], [1], [0, 0, 1, 1], [], []>} : vector<8x4xf32>, vector<4x8xf32>, vector<8x8xf32> -> vector<8x8xf32>
    %10 = vector.broadcast %1 : vector<1x8xf32> to vector<8x8xf32>
    %11 = arith.addf %9, %10 : vector<8x8xf32>
    %c2 = arith.constant 2 : index
    %c0_9 = arith.constant 0 : index
    %c0_10 = arith.constant 0 : index
    %12 = vector.load %arg0[%c2, %c0_9, %c0_10] : memref<8x8x4xf32, #tpu.memory_space<vmem>>, vector<1x8x4xf32>
    %13 = vector.shape_cast %12 : vector<1x8x4xf32> to vector<8x4xf32>
    %cst_11 = arith.constant dense<0.000000e+00> : vector<8x8xf32>
    %14 = tpu.matmul %13, %0, %cst_11 {dimension_numbers = #tpu.dot_dimension_numbers<[1], [0], [0], [1], [0, 0, 1, 1], [], []>} : vector<8x4xf32>, vector<4x8xf32>, vector<8x8xf32> -> vector<8x8xf32>
    %15 = vector.broadcast %1 : vector<1x8xf32> to vector<8x8xf32>
    %16 = arith.addf %14, %15 : vector<8x8xf32>
    %c3 = arith.constant 3 : index
    %c0_12 = arith.constant 0 : index
    %c0_13 = arith.constant 0 : index
    %17 = vector.load %arg0[%c3, %c0_12, %c0_13] : memref<8x8x4xf32, #tpu.memory_space<vmem>>, vector<1x8x4xf32>
    %18 = vector.shape_cast %17 : vector<1x8x4xf32> to vector<8x4xf32>
    %cst_14 = arith.constant dense<0.000000e+00> : vector<8x8xf32>
    %19 = tpu.matmul %18, %0, %cst_14 {dimension_numbers = #tpu.dot_dimension_numbers<[1], [0], [0], [1], [0, 0, 1, 1], [], []>} : vector<8x4xf32>, vector<4x8xf32>, vector<8x8xf32> -> vector<8x8xf32>
    %20 = vector.broadcast %1 : vector<1x8xf32> to vector<8x8xf32>
    %21 = arith.addf %19, %20 : vector<8x8xf32>
    %c4 = arith.constant 4 : index
    %c0_15 = arith.constant 0 : index
    %c0_16 = arith.constant 0 : index
    %22 = vector.load %arg0[%c4, %c0_15, %c0_16] : memref<8x8x4xf32, #tpu.memory_space<vmem>>, vector<1x8x4xf32>
    %23 = vector.shape_cast %22 : vector<1x8x4xf32> to vector<8x4xf32>
    %cst_17 = arith.constant dense<0.000000e+00> : vector<8x8xf32>
    %24 = tpu.matmul %23, %0, %cst_17 {dimension_numbers = #tpu.dot_dimension_numbers<[1], [0], [0], [1], [0, 0, 1, 1], [], []>} : vector<8x4xf32>, vector<4x8xf32>, vector<8x8xf32> -> vector<8x8xf32>
    %25 = vector.broadcast %1 : vector<1x8xf32> to vector<8x8xf32>
    %26 = arith.addf %24, %25 : vector<8x8xf32>
    %c5 = arith.constant 5 : index
    %c0_18 = arith.constant 0 : index
    %c0_19 = arith.constant 0 : index
    %27 = vector.load %arg0[%c5, %c0_18, %c0_19] : memref<8x8x4xf32, #tpu.memory_space<vmem>>, vector<1x8x4xf32>
    %28 = vector.shape_cast %27 : vector<1x8x4xf32> to vector<8x4xf32>
    %cst_20 = arith.constant dense<0.000000e+00> : vector<8x8xf32>
    %29 = tpu.matmul %28, %0, %cst_20 {dimension_numbers = #tpu.dot_dimension_numbers<[1], [0], [0], [1], [0, 0, 1, 1], [], []>} : vector<8x4xf32>, vector<4x8xf32>, vector<8x8xf32> -> vector<8x8xf32>
    %30 = vector.broadcast %1 : vector<1x8xf32> to vector<8x8xf32>
    %31 = arith.addf %29, %30 : vector<8x8xf32>
    %c6 = arith.constant 6 : index
    %c0_21 = arith.constant 0 : index
    %c0_22 = arith.constant 0 : index
    %32 = vector.load %arg0[%c6, %c0_21, %c0_22] : memref<8x8x4xf32, #tpu.memory_space<vmem>>, vector<1x8x4xf32>
    %33 = vector.shape_cast %32 : vector<1x8x4xf32> to vector<8x4xf32>
    %cst_23 = arith.constant dense<0.000000e+00> : vector<8x8xf32>
    %34 = tpu.matmul %33, %0, %cst_23 {dimension_numbers = #tpu.dot_dimension_numbers<[1], [0], [0], [1], [0, 0, 1, 1], [], []>} : vector<8x4xf32>, vector<4x8xf32>, vector<8x8xf32> -> vector<8x8xf32>
    %35 = vector.broadcast %1 : vector<1x8xf32> to vector<8x8xf32>
    %36 = arith.addf %34, %35 : vector<8x8xf32>
    %c7 = arith.constant 7 : index
    %c0_24 = arith.constant 0 : index
    %c0_25 = arith.constant 0 : index
    %37 = vector.load %arg0[%c7, %c0_24, %c0_25] : memref<8x8x4xf32, #tpu.memory_space<vmem>>, vector<1x8x4xf32>
    %38 = vector.shape_cast %37 : vector<1x8x4xf32> to vector<8x4xf32>
    %cst_26 = arith.constant dense<0.000000e+00> : vector<8x8xf32>
    %39 = tpu.matmul %38, %0, %cst_26 {dimension_numbers = #tpu.dot_dimension_numbers<[1], [0], [0], [1], [0, 0, 1, 1], [], []>} : vector<8x4xf32>, vector<4x8xf32>, vector<8x8xf32> -> vector<8x8xf32>
    %40 = vector.broadcast %1 : vector<1x8xf32> to vector<8x8xf32>
    %41 = arith.addf %39, %40 : vector<8x8xf32>
    %42 = tpu.concatenate %6, %41 in 0 : vector<8x8xf32>, vector<8x8xf32> -> vector<16x8xf32>
    %43 = tpu.concatenate %11, %36 in 0 : vector<8x8xf32>, vector<8x8xf32> -> vector<16x8xf32>
    %44 = tpu.concatenate %16, %31 in 0 : vector<8x8xf32>, vector<8x8xf32> -> vector<16x8xf32>
    %45 = tpu.concatenate %21, %26 in 0 : vector<8x8xf32>, vector<8x8xf32> -> vector<16x8xf32>
    %46 = tpu.concatenate %26, %21 in 0 : vector<8x8xf32>, vector<8x8xf32> -> vector<16x8xf32>
    %47 = tpu.concatenate %31, %16 in 0 : vector<8x8xf32>, vector<8x8xf32> -> vector<16x8xf32>
    %48 = tpu.concatenate %36, %11 in 0 : vector<8x8xf32>, vector<8x8xf32> -> vector<16x8xf32>
    %49 = tpu.concatenate %41, %6 in 0 : vector<8x8xf32>, vector<8x8xf32> -> vector<16x8xf32>
    %c0_27 = arith.constant 0 : index
    %c0_28 = arith.constant 0 : index
    %50 = vector.load %arg3[%c0_27, %c0_28] : memref<8x24xf32, #tpu.memory_space<vmem>>, vector<8x24xf32>
    %c0_29 = arith.constant 0 : index
    %c0_30 = arith.constant 0 : index
    %51 = vector.load %arg4[%c0_29, %c0_30] : memref<8x24xf32, #tpu.memory_space<vmem>>, vector<8x24xf32>
    %c0_31 = arith.constant 0 : index
    %c0_32 = arith.constant 0 : index
    %52 = vector.load %arg5[%c0_31, %c0_32] : memref<1x24xf32, #tpu.memory_space<vmem>>, vector<1x24xf32>
    %c0_33 = arith.constant 0 : index
    %c0_34 = arith.constant 0 : index
    %53 = vector.load %arg6[%c0_33, %c0_34] : memref<1x24xf32, #tpu.memory_space<vmem>>, vector<1x24xf32>
    %cst_35 = arith.constant 0.000000e+00 : f32
    %54 = vector.broadcast %cst_35 : f32 to vector<16x8xf32>
    %cst_36 = arith.constant dense<0.000000e+00> : vector<16x24xf32>
    %55 = tpu.matmul %42, %50, %cst_36 {dimension_numbers = #tpu.dot_dimension_numbers<[1], [0], [0], [1], [0, 0, 1, 1], [], []>} : vector<16x8xf32>, vector<8x24xf32>, vector<16x24xf32> -> vector<16x24xf32>
    %56 = vector.broadcast %52 : vector<1x24xf32> to vector<16x24xf32>
    %57 = arith.addf %55, %56 : vector<16x24xf32>
    %cst_37 = arith.constant dense<0.000000e+00> : vector<16x24xf32>
    %58 = tpu.matmul %54, %51, %cst_37 {dimension_numbers = #tpu.dot_dimension_numbers<[1], [0], [0], [1], [0, 0, 1, 1], [], []>} : vector<16x8xf32>, vector<8x24xf32>, vector<16x24xf32> -> vector<16x24xf32>
    %59 = vector.broadcast %53 : vector<1x24xf32> to vector<16x24xf32>
    %60 = arith.addf %58, %59 : vector<16x24xf32>
    %61 = vector.extract_strided_slice %57 {offsets = [0, 0], sizes = [16, 8], strides = [1, 1]} : vector<16x24xf32> to vector<16x8xf32>
    %62 = vector.extract_strided_slice %60 {offsets = [0, 0], sizes = [16, 8], strides = [1, 1]} : vector<16x24xf32> to vector<16x8xf32>
    %63 = arith.addf %61, %62 : vector<16x8xf32>
    %64 = arith.negf %63 : vector<16x8xf32>
    %65 = math.exp %64 : vector<16x8xf32>
    %cst_38 = arith.constant 1.000000e+00 : f32
    %66 = vector.broadcast %cst_38 : f32 to vector<16x8xf32>
    %67 = arith.addf %66, %65 : vector<16x8xf32>
    %68 = arith.divf %66, %67 : vector<16x8xf32>
    %69 = vector.extract_strided_slice %57 {offsets = [0, 8], sizes = [16, 8], strides = [1, 1]} : vector<16x24xf32> to vector<16x8xf32>
    %70 = vector.extract_strided_slice %60 {offsets = [0, 8], sizes = [16, 8], strides = [1, 1]} : vector<16x24xf32> to vector<16x8xf32>
    %71 = arith.addf %69, %70 : vector<16x8xf32>
    %72 = arith.negf %71 : vector<16x8xf32>
    %73 = math.exp %72 : vector<16x8xf32>
    %cst_39 = arith.constant 1.000000e+00 : f32
    %74 = vector.broadcast %cst_39 : f32 to vector<16x8xf32>
    %75 = arith.addf %74, %73 : vector<16x8xf32>
    %76 = arith.divf %74, %75 : vector<16x8xf32>
    %77 = vector.extract_strided_slice %57 {offsets = [0, 16], sizes = [16, 8], strides = [1, 1]} : vector<16x24xf32> to vector<16x8xf32>
    %78 = vector.extract_strided_slice %60 {offsets = [0, 16], sizes = [16, 8], strides = [1, 1]} : vector<16x24xf32> to vector<16x8xf32>
    %79 = arith.mulf %68, %78 : vector<16x8xf32>
    %80 = arith.addf %77, %79 : vector<16x8xf32>
    %81 = math.tanh %80 : vector<16x8xf32>
    %cst_40 = arith.constant 1.000000e+00 : f32
    %82 = vector.broadcast %cst_40 : f32 to vector<16x8xf32>
    %83 = arith.subf %82, %76 : vector<16x8xf32>
    %84 = arith.mulf %83, %81 : vector<16x8xf32>
    %85 = arith.mulf %76, %54 : vector<16x8xf32>
    %86 = arith.addf %84, %85 : vector<16x8xf32>
    %cst_41 = arith.constant dense<0.000000e+00> : vector<16x24xf32>
    %87 = tpu.matmul %43, %50, %cst_41 {dimension_numbers = #tpu.dot_dimension_numbers<[1], [0], [0], [1], [0, 0, 1, 1], [], []>} : vector<16x8xf32>, vector<8x24xf32>, vector<16x24xf32> -> vector<16x24xf32>
    %88 = vector.broadcast %52 : vector<1x24xf32> to vector<16x24xf32>
    %89 = arith.addf %87, %88 : vector<16x24xf32>
    %cst_42 = arith.constant dense<0.000000e+00> : vector<16x24xf32>
    %90 = tpu.matmul %86, %51, %cst_42 {dimension_numbers = #tpu.dot_dimension_numbers<[1], [0], [0], [1], [0, 0, 1, 1], [], []>} : vector<16x8xf32>, vector<8x24xf32>, vector<16x24xf32> -> vector<16x24xf32>
    %91 = vector.broadcast %53 : vector<1x24xf32> to vector<16x24xf32>
    %92 = arith.addf %90, %91 : vector<16x24xf32>
    %93 = vector.extract_strided_slice %89 {offsets = [0, 0], sizes = [16, 8], strides = [1, 1]} : vector<16x24xf32> to vector<16x8xf32>
    %94 = vector.extract_strided_slice %92 {offsets = [0, 0], sizes = [16, 8], strides = [1, 1]} : vector<16x24xf32> to vector<16x8xf32>
    %95 = arith.addf %93, %94 : vector<16x8xf32>
    %96 = arith.negf %95 : vector<16x8xf32>
    %97 = math.exp %96 : vector<16x8xf32>
    %cst_43 = arith.constant 1.000000e+00 : f32
    %98 = vector.broadcast %cst_43 : f32 to vector<16x8xf32>
    %99 = arith.addf %98, %97 : vector<16x8xf32>
    %100 = arith.divf %98, %99 : vector<16x8xf32>
    %101 = vector.extract_strided_slice %89 {offsets = [0, 8], sizes = [16, 8], strides = [1, 1]} : vector<16x24xf32> to vector<16x8xf32>
    %102 = vector.extract_strided_slice %92 {offsets = [0, 8], sizes = [16, 8], strides = [1, 1]} : vector<16x24xf32> to vector<16x8xf32>
    %103 = arith.addf %101, %102 : vector<16x8xf32>
    %104 = arith.negf %103 : vector<16x8xf32>
    %105 = math.exp %104 : vector<16x8xf32>
    %cst_44 = arith.constant 1.000000e+00 : f32
    %106 = vector.broadcast %cst_44 : f32 to vector<16x8xf32>
    %107 = arith.addf %106, %105 : vector<16x8xf32>
    %108 = arith.divf %106, %107 : vector<16x8xf32>
    %109 = vector.extract_strided_slice %89 {offsets = [0, 16], sizes = [16, 8], strides = [1, 1]} : vector<16x24xf32> to vector<16x8xf32>
    %110 = vector.extract_strided_slice %92 {offsets = [0, 16], sizes = [16, 8], strides = [1, 1]} : vector<16x24xf32> to vector<16x8xf32>
    %111 = arith.mulf %100, %110 : vector<16x8xf32>
    %112 = arith.addf %109, %111 : vector<16x8xf32>
    %113 = math.tanh %112 : vector<16x8xf32>
    %cst_45 = arith.constant 1.000000e+00 : f32
    %114 = vector.broadcast %cst_45 : f32 to vector<16x8xf32>
    %115 = arith.subf %114, %108 : vector<16x8xf32>
    %116 = arith.mulf %115, %113 : vector<16x8xf32>
    %117 = arith.mulf %108, %86 : vector<16x8xf32>
    %118 = arith.addf %116, %117 : vector<16x8xf32>
    %cst_46 = arith.constant dense<0.000000e+00> : vector<16x24xf32>
    %119 = tpu.matmul %44, %50, %cst_46 {dimension_numbers = #tpu.dot_dimension_numbers<[1], [0], [0], [1], [0, 0, 1, 1], [], []>} : vector<16x8xf32>, vector<8x24xf32>, vector<16x24xf32> -> vector<16x24xf32>
    %120 = vector.broadcast %52 : vector<1x24xf32> to vector<16x24xf32>
    %121 = arith.addf %119, %120 : vector<16x24xf32>
    %cst_47 = arith.constant dense<0.000000e+00> : vector<16x24xf32>
    %122 = tpu.matmul %118, %51, %cst_47 {dimension_numbers = #tpu.dot_dimension_numbers<[1], [0], [0], [1], [0, 0, 1, 1], [], []>} : vector<16x8xf32>, vector<8x24xf32>, vector<16x24xf32> -> vector<16x24xf32>
    %123 = vector.broadcast %53 : vector<1x24xf32> to vector<16x24xf32>
    %124 = arith.addf %122, %123 : vector<16x24xf32>
    %125 = vector.extract_strided_slice %121 {offsets = [0, 0], sizes = [16, 8], strides = [1, 1]} : vector<16x24xf32> to vector<16x8xf32>
    %126 = vector.extract_strided_slice %124 {offsets = [0, 0], sizes = [16, 8], strides = [1, 1]} : vector<16x24xf32> to vector<16x8xf32>
    %127 = arith.addf %125, %126 : vector<16x8xf32>
    %128 = arith.negf %127 : vector<16x8xf32>
    %129 = math.exp %128 : vector<16x8xf32>
    %cst_48 = arith.constant 1.000000e+00 : f32
    %130 = vector.broadcast %cst_48 : f32 to vector<16x8xf32>
    %131 = arith.addf %130, %129 : vector<16x8xf32>
    %132 = arith.divf %130, %131 : vector<16x8xf32>
    %133 = vector.extract_strided_slice %121 {offsets = [0, 8], sizes = [16, 8], strides = [1, 1]} : vector<16x24xf32> to vector<16x8xf32>
    %134 = vector.extract_strided_slice %124 {offsets = [0, 8], sizes = [16, 8], strides = [1, 1]} : vector<16x24xf32> to vector<16x8xf32>
    %135 = arith.addf %133, %134 : vector<16x8xf32>
    %136 = arith.negf %135 : vector<16x8xf32>
    %137 = math.exp %136 : vector<16x8xf32>
    %cst_49 = arith.constant 1.000000e+00 : f32
    %138 = vector.broadcast %cst_49 : f32 to vector<16x8xf32>
    %139 = arith.addf %138, %137 : vector<16x8xf32>
    %140 = arith.divf %138, %139 : vector<16x8xf32>
    %141 = vector.extract_strided_slice %121 {offsets = [0, 16], sizes = [16, 8], strides = [1, 1]} : vector<16x24xf32> to vector<16x8xf32>
    %142 = vector.extract_strided_slice %124 {offsets = [0, 16], sizes = [16, 8], strides = [1, 1]} : vector<16x24xf32> to vector<16x8xf32>
    %143 = arith.mulf %132, %142 : vector<16x8xf32>
    %144 = arith.addf %141, %143 : vector<16x8xf32>
    %145 = math.tanh %144 : vector<16x8xf32>
    %cst_50 = arith.constant 1.000000e+00 : f32
    %146 = vector.broadcast %cst_50 : f32 to vector<16x8xf32>
    %147 = arith.subf %146, %140 : vector<16x8xf32>
    %148 = arith.mulf %147, %145 : vector<16x8xf32>
    %149 = arith.mulf %140, %118 : vector<16x8xf32>
    %150 = arith.addf %148, %149 : vector<16x8xf32>
    %cst_51 = arith.constant dense<0.000000e+00> : vector<16x24xf32>
    %151 = tpu.matmul %45, %50, %cst_51 {dimension_numbers = #tpu.dot_dimension_numbers<[1], [0], [0], [1], [0, 0, 1, 1], [], []>} : vector<16x8xf32>, vector<8x24xf32>, vector<16x24xf32> -> vector<16x24xf32>
    %152 = vector.broadcast %52 : vector<1x24xf32> to vector<16x24xf32>
    %153 = arith.addf %151, %152 : vector<16x24xf32>
    %cst_52 = arith.constant dense<0.000000e+00> : vector<16x24xf32>
    %154 = tpu.matmul %150, %51, %cst_52 {dimension_numbers = #tpu.dot_dimension_numbers<[1], [0], [0], [1], [0, 0, 1, 1], [], []>} : vector<16x8xf32>, vector<8x24xf32>, vector<16x24xf32> -> vector<16x24xf32>
    %155 = vector.broadcast %53 : vector<1x24xf32> to vector<16x24xf32>
    %156 = arith.addf %154, %155 : vector<16x24xf32>
    %157 = vector.extract_strided_slice %153 {offsets = [0, 0], sizes = [16, 8], strides = [1, 1]} : vector<16x24xf32> to vector<16x8xf32>
    %158 = vector.extract_strided_slice %156 {offsets = [0, 0], sizes = [16, 8], strides = [1, 1]} : vector<16x24xf32> to vector<16x8xf32>
    %159 = arith.addf %157, %158 : vector<16x8xf32>
    %160 = arith.negf %159 : vector<16x8xf32>
    %161 = math.exp %160 : vector<16x8xf32>
    %cst_53 = arith.constant 1.000000e+00 : f32
    %162 = vector.broadcast %cst_53 : f32 to vector<16x8xf32>
    %163 = arith.addf %162, %161 : vector<16x8xf32>
    %164 = arith.divf %162, %163 : vector<16x8xf32>
    %165 = vector.extract_strided_slice %153 {offsets = [0, 8], sizes = [16, 8], strides = [1, 1]} : vector<16x24xf32> to vector<16x8xf32>
    %166 = vector.extract_strided_slice %156 {offsets = [0, 8], sizes = [16, 8], strides = [1, 1]} : vector<16x24xf32> to vector<16x8xf32>
    %167 = arith.addf %165, %166 : vector<16x8xf32>
    %168 = arith.negf %167 : vector<16x8xf32>
    %169 = math.exp %168 : vector<16x8xf32>
    %cst_54 = arith.constant 1.000000e+00 : f32
    %170 = vector.broadcast %cst_54 : f32 to vector<16x8xf32>
    %171 = arith.addf %170, %169 : vector<16x8xf32>
    %172 = arith.divf %170, %171 : vector<16x8xf32>
    %173 = vector.extract_strided_slice %153 {offsets = [0, 16], sizes = [16, 8], strides = [1, 1]} : vector<16x24xf32> to vector<16x8xf32>
    %174 = vector.extract_strided_slice %156 {offsets = [0, 16], sizes = [16, 8], strides = [1, 1]} : vector<16x24xf32> to vector<16x8xf32>
    %175 = arith.mulf %164, %174 : vector<16x8xf32>
    %176 = arith.addf %173, %175 : vector<16x8xf32>
    %177 = math.tanh %176 : vector<16x8xf32>
    %cst_55 = arith.constant 1.000000e+00 : f32
    %178 = vector.broadcast %cst_55 : f32 to vector<16x8xf32>
    %179 = arith.subf %178, %172 : vector<16x8xf32>
    %180 = arith.mulf %179, %177 : vector<16x8xf32>
    %181 = arith.mulf %172, %150 : vector<16x8xf32>
    %182 = arith.addf %180, %181 : vector<16x8xf32>
    %cst_56 = arith.constant dense<0.000000e+00> : vector<16x24xf32>
    %183 = tpu.matmul %46, %50, %cst_56 {dimension_numbers = #tpu.dot_dimension_numbers<[1], [0], [0], [1], [0, 0, 1, 1], [], []>} : vector<16x8xf32>, vector<8x24xf32>, vector<16x24xf32> -> vector<16x24xf32>
    %184 = vector.broadcast %52 : vector<1x24xf32> to vector<16x24xf32>
    %185 = arith.addf %183, %184 : vector<16x24xf32>
    %cst_57 = arith.constant dense<0.000000e+00> : vector<16x24xf32>
    %186 = tpu.matmul %182, %51, %cst_57 {dimension_numbers = #tpu.dot_dimension_numbers<[1], [0], [0], [1], [0, 0, 1, 1], [], []>} : vector<16x8xf32>, vector<8x24xf32>, vector<16x24xf32> -> vector<16x24xf32>
    %187 = vector.broadcast %53 : vector<1x24xf32> to vector<16x24xf32>
    %188 = arith.addf %186, %187 : vector<16x24xf32>
    %189 = vector.extract_strided_slice %185 {offsets = [0, 0], sizes = [16, 8], strides = [1, 1]} : vector<16x24xf32> to vector<16x8xf32>
    %190 = vector.extract_strided_slice %188 {offsets = [0, 0], sizes = [16, 8], strides = [1, 1]} : vector<16x24xf32> to vector<16x8xf32>
    %191 = arith.addf %189, %190 : vector<16x8xf32>
    %192 = arith.negf %191 : vector<16x8xf32>
    %193 = math.exp %192 : vector<16x8xf32>
    %cst_58 = arith.constant 1.000000e+00 : f32
    %194 = vector.broadcast %cst_58 : f32 to vector<16x8xf32>
    %195 = arith.addf %194, %193 : vector<16x8xf32>
    %196 = arith.divf %194, %195 : vector<16x8xf32>
    %197 = vector.extract_strided_slice %185 {offsets = [0, 8], sizes = [16, 8], strides = [1, 1]} : vector<16x24xf32> to vector<16x8xf32>
    %198 = vector.extract_strided_slice %188 {offsets = [0, 8], sizes = [16, 8], strides = [1, 1]} : vector<16x24xf32> to vector<16x8xf32>
    %199 = arith.addf %197, %198 : vector<16x8xf32>
    %200 = arith.negf %199 : vector<16x8xf32>
    %201 = math.exp %200 : vector<16x8xf32>
    %cst_59 = arith.constant 1.000000e+00 : f32
    %202 = vector.broadcast %cst_59 : f32 to vector<16x8xf32>
    %203 = arith.addf %202, %201 : vector<16x8xf32>
    %204 = arith.divf %202, %203 : vector<16x8xf32>
    %205 = vector.extract_strided_slice %185 {offsets = [0, 16], sizes = [16, 8], strides = [1, 1]} : vector<16x24xf32> to vector<16x8xf32>
    %206 = vector.extract_strided_slice %188 {offsets = [0, 16], sizes = [16, 8], strides = [1, 1]} : vector<16x24xf32> to vector<16x8xf32>
    %207 = arith.mulf %196, %206 : vector<16x8xf32>
    %208 = arith.addf %205, %207 : vector<16x8xf32>
    %209 = math.tanh %208 : vector<16x8xf32>
    %cst_60 = arith.constant 1.000000e+00 : f32
    %210 = vector.broadcast %cst_60 : f32 to vector<16x8xf32>
    %211 = arith.subf %210, %204 : vector<16x8xf32>
    %212 = arith.mulf %211, %209 : vector<16x8xf32>
    %213 = arith.mulf %204, %182 : vector<16x8xf32>
    %214 = arith.addf %212, %213 : vector<16x8xf32>
    %cst_61 = arith.constant dense<0.000000e+00> : vector<16x24xf32>
    %215 = tpu.matmul %47, %50, %cst_61 {dimension_numbers = #tpu.dot_dimension_numbers<[1], [0], [0], [1], [0, 0, 1, 1], [], []>} : vector<16x8xf32>, vector<8x24xf32>, vector<16x24xf32> -> vector<16x24xf32>
    %216 = vector.broadcast %52 : vector<1x24xf32> to vector<16x24xf32>
    %217 = arith.addf %215, %216 : vector<16x24xf32>
    %cst_62 = arith.constant dense<0.000000e+00> : vector<16x24xf32>
    %218 = tpu.matmul %214, %51, %cst_62 {dimension_numbers = #tpu.dot_dimension_numbers<[1], [0], [0], [1], [0, 0, 1, 1], [], []>} : vector<16x8xf32>, vector<8x24xf32>, vector<16x24xf32> -> vector<16x24xf32>
    %219 = vector.broadcast %53 : vector<1x24xf32> to vector<16x24xf32>
    %220 = arith.addf %218, %219 : vector<16x24xf32>
    %221 = vector.extract_strided_slice %217 {offsets = [0, 0], sizes = [16, 8], strides = [1, 1]} : vector<16x24xf32> to vector<16x8xf32>
    %222 = vector.extract_strided_slice %220 {offsets = [0, 0], sizes = [16, 8], strides = [1, 1]} : vector<16x24xf32> to vector<16x8xf32>
    %223 = arith.addf %221, %222 : vector<16x8xf32>
    %224 = arith.negf %223 : vector<16x8xf32>
    %225 = math.exp %224 : vector<16x8xf32>
    %cst_63 = arith.constant 1.000000e+00 : f32
    %226 = vector.broadcast %cst_63 : f32 to vector<16x8xf32>
    %227 = arith.addf %226, %225 : vector<16x8xf32>
    %228 = arith.divf %226, %227 : vector<16x8xf32>
    %229 = vector.extract_strided_slice %217 {offsets = [0, 8], sizes = [16, 8], strides = [1, 1]} : vector<16x24xf32> to vector<16x8xf32>
    %230 = vector.extract_strided_slice %220 {offsets = [0, 8], sizes = [16, 8], strides = [1, 1]} : vector<16x24xf32> to vector<16x8xf32>
    %231 = arith.addf %229, %230 : vector<16x8xf32>
    %232 = arith.negf %231 : vector<16x8xf32>
    %233 = math.exp %232 : vector<16x8xf32>
    %cst_64 = arith.constant 1.000000e+00 : f32
    %234 = vector.broadcast %cst_64 : f32 to vector<16x8xf32>
    %235 = arith.addf %234, %233 : vector<16x8xf32>
    %236 = arith.divf %234, %235 : vector<16x8xf32>
    %237 = vector.extract_strided_slice %217 {offsets = [0, 16], sizes = [16, 8], strides = [1, 1]} : vector<16x24xf32> to vector<16x8xf32>
    %238 = vector.extract_strided_slice %220 {offsets = [0, 16], sizes = [16, 8], strides = [1, 1]} : vector<16x24xf32> to vector<16x8xf32>
    %239 = arith.mulf %228, %238 : vector<16x8xf32>
    %240 = arith.addf %237, %239 : vector<16x8xf32>
    %241 = math.tanh %240 : vector<16x8xf32>
    %cst_65 = arith.constant 1.000000e+00 : f32
    %242 = vector.broadcast %cst_65 : f32 to vector<16x8xf32>
    %243 = arith.subf %242, %236 : vector<16x8xf32>
    %244 = arith.mulf %243, %241 : vector<16x8xf32>
    %245 = arith.mulf %236, %214 : vector<16x8xf32>
    %246 = arith.addf %244, %245 : vector<16x8xf32>
    %cst_66 = arith.constant dense<0.000000e+00> : vector<16x24xf32>
    %247 = tpu.matmul %48, %50, %cst_66 {dimension_numbers = #tpu.dot_dimension_numbers<[1], [0], [0], [1], [0, 0, 1, 1], [], []>} : vector<16x8xf32>, vector<8x24xf32>, vector<16x24xf32> -> vector<16x24xf32>
    %248 = vector.broadcast %52 : vector<1x24xf32> to vector<16x24xf32>
    %249 = arith.addf %247, %248 : vector<16x24xf32>
    %cst_67 = arith.constant dense<0.000000e+00> : vector<16x24xf32>
    %250 = tpu.matmul %246, %51, %cst_67 {dimension_numbers = #tpu.dot_dimension_numbers<[1], [0], [0], [1], [0, 0, 1, 1], [], []>} : vector<16x8xf32>, vector<8x24xf32>, vector<16x24xf32> -> vector<16x24xf32>
    %251 = vector.broadcast %53 : vector<1x24xf32> to vector<16x24xf32>
    %252 = arith.addf %250, %251 : vector<16x24xf32>
    %253 = vector.extract_strided_slice %249 {offsets = [0, 0], sizes = [16, 8], strides = [1, 1]} : vector<16x24xf32> to vector<16x8xf32>
    %254 = vector.extract_strided_slice %252 {offsets = [0, 0], sizes = [16, 8], strides = [1, 1]} : vector<16x24xf32> to vector<16x8xf32>
    %255 = arith.addf %253, %254 : vector<16x8xf32>
    %256 = arith.negf %255 : vector<16x8xf32>
    %257 = math.exp %256 : vector<16x8xf32>
    %cst_68 = arith.constant 1.000000e+00 : f32
    %258 = vector.broadcast %cst_68 : f32 to vector<16x8xf32>
    %259 = arith.addf %258, %257 : vector<16x8xf32>
    %260 = arith.divf %258, %259 : vector<16x8xf32>
    %261 = vector.extract_strided_slice %249 {offsets = [0, 8], sizes = [16, 8], strides = [1, 1]} : vector<16x24xf32> to vector<16x8xf32>
    %262 = vector.extract_strided_slice %252 {offsets = [0, 8], sizes = [16, 8], strides = [1, 1]} : vector<16x24xf32> to vector<16x8xf32>
    %263 = arith.addf %261, %262 : vector<16x8xf32>
    %264 = arith.negf %263 : vector<16x8xf32>
    %265 = math.exp %264 : vector<16x8xf32>
    %cst_69 = arith.constant 1.000000e+00 : f32
    %266 = vector.broadcast %cst_69 : f32 to vector<16x8xf32>
    %267 = arith.addf %266, %265 : vector<16x8xf32>
    %268 = arith.divf %266, %267 : vector<16x8xf32>
    %269 = vector.extract_strided_slice %249 {offsets = [0, 16], sizes = [16, 8], strides = [1, 1]} : vector<16x24xf32> to vector<16x8xf32>
    %270 = vector.extract_strided_slice %252 {offsets = [0, 16], sizes = [16, 8], strides = [1, 1]} : vector<16x24xf32> to vector<16x8xf32>
    %271 = arith.mulf %260, %270 : vector<16x8xf32>
    %272 = arith.addf %269, %271 : vector<16x8xf32>
    %273 = math.tanh %272 : vector<16x8xf32>
    %cst_70 = arith.constant 1.000000e+00 : f32
    %274 = vector.broadcast %cst_70 : f32 to vector<16x8xf32>
    %275 = arith.subf %274, %268 : vector<16x8xf32>
    %276 = arith.mulf %275, %273 : vector<16x8xf32>
    %277 = arith.mulf %268, %246 : vector<16x8xf32>
    %278 = arith.addf %276, %277 : vector<16x8xf32>
    %cst_71 = arith.constant dense<0.000000e+00> : vector<16x24xf32>
    %279 = tpu.matmul %49, %50, %cst_71 {dimension_numbers = #tpu.dot_dimension_numbers<[1], [0], [0], [1], [0, 0, 1, 1], [], []>} : vector<16x8xf32>, vector<8x24xf32>, vector<16x24xf32> -> vector<16x24xf32>
    %280 = vector.broadcast %52 : vector<1x24xf32> to vector<16x24xf32>
    %281 = arith.addf %279, %280 : vector<16x24xf32>
    %cst_72 = arith.constant dense<0.000000e+00> : vector<16x24xf32>
    %282 = tpu.matmul %278, %51, %cst_72 {dimension_numbers = #tpu.dot_dimension_numbers<[1], [0], [0], [1], [0, 0, 1, 1], [], []>} : vector<16x8xf32>, vector<8x24xf32>, vector<16x24xf32> -> vector<16x24xf32>
    %283 = vector.broadcast %53 : vector<1x24xf32> to vector<16x24xf32>
    %284 = arith.addf %282, %283 : vector<16x24xf32>
    %285 = vector.extract_strided_slice %281 {offsets = [0, 0], sizes = [16, 8], strides = [1, 1]} : vector<16x24xf32> to vector<16x8xf32>
    %286 = vector.extract_strided_slice %284 {offsets = [0, 0], sizes = [16, 8], strides = [1, 1]} : vector<16x24xf32> to vector<16x8xf32>
    %287 = arith.addf %285, %286 : vector<16x8xf32>
    %288 = arith.negf %287 : vector<16x8xf32>
    %289 = math.exp %288 : vector<16x8xf32>
    %cst_73 = arith.constant 1.000000e+00 : f32
    %290 = vector.broadcast %cst_73 : f32 to vector<16x8xf32>
    %291 = arith.addf %290, %289 : vector<16x8xf32>
    %292 = arith.divf %290, %291 : vector<16x8xf32>
    %293 = vector.extract_strided_slice %281 {offsets = [0, 8], sizes = [16, 8], strides = [1, 1]} : vector<16x24xf32> to vector<16x8xf32>
    %294 = vector.extract_strided_slice %284 {offsets = [0, 8], sizes = [16, 8], strides = [1, 1]} : vector<16x24xf32> to vector<16x8xf32>
    %295 = arith.addf %293, %294 : vector<16x8xf32>
    %296 = arith.negf %295 : vector<16x8xf32>
    %297 = math.exp %296 : vector<16x8xf32>
    %cst_74 = arith.constant 1.000000e+00 : f32
    %298 = vector.broadcast %cst_74 : f32 to vector<16x8xf32>
    %299 = arith.addf %298, %297 : vector<16x8xf32>
    %300 = arith.divf %298, %299 : vector<16x8xf32>
    %301 = vector.extract_strided_slice %281 {offsets = [0, 16], sizes = [16, 8], strides = [1, 1]} : vector<16x24xf32> to vector<16x8xf32>
    %302 = vector.extract_strided_slice %284 {offsets = [0, 16], sizes = [16, 8], strides = [1, 1]} : vector<16x24xf32> to vector<16x8xf32>
    %303 = arith.mulf %292, %302 : vector<16x8xf32>
    %304 = arith.addf %301, %303 : vector<16x8xf32>
    %305 = math.tanh %304 : vector<16x8xf32>
    %cst_75 = arith.constant 1.000000e+00 : f32
    %306 = vector.broadcast %cst_75 : f32 to vector<16x8xf32>
    %307 = arith.subf %306, %300 : vector<16x8xf32>
    %308 = arith.mulf %307, %305 : vector<16x8xf32>
    %309 = arith.mulf %300, %278 : vector<16x8xf32>
    %310 = arith.addf %308, %309 : vector<16x8xf32>
    %c0_76 = arith.constant 0 : index
    %c0_77 = arith.constant 0 : index
    %311 = vector.load %arg7[%c0_76, %c0_77] : memref<8x24xf32, #tpu.memory_space<vmem>>, vector<8x24xf32>
    %c0_78 = arith.constant 0 : index
    %c0_79 = arith.constant 0 : index
    %312 = vector.load %arg8[%c0_78, %c0_79] : memref<8x24xf32, #tpu.memory_space<vmem>>, vector<8x24xf32>
    %c0_80 = arith.constant 0 : index
    %c0_81 = arith.constant 0 : index
    %313 = vector.load %arg9[%c0_80, %c0_81] : memref<1x24xf32, #tpu.memory_space<vmem>>, vector<1x24xf32>
    %c0_82 = arith.constant 0 : index
    %c0_83 = arith.constant 0 : index
    %314 = vector.load %arg10[%c0_82, %c0_83] : memref<1x24xf32, #tpu.memory_space<vmem>>, vector<1x24xf32>
    %cst_84 = arith.constant 0.000000e+00 : f32
    %315 = vector.broadcast %cst_84 : f32 to vector<16x8xf32>
    %cst_85 = arith.constant dense<0.000000e+00> : vector<16x24xf32>
    %316 = tpu.matmul %118, %311, %cst_85 {dimension_numbers = #tpu.dot_dimension_numbers<[1], [0], [0], [1], [0, 0, 1, 1], [], []>} : vector<16x8xf32>, vector<8x24xf32>, vector<16x24xf32> -> vector<16x24xf32>
    %317 = vector.broadcast %313 : vector<1x24xf32> to vector<16x24xf32>
    %318 = arith.addf %316, %317 : vector<16x24xf32>
    %cst_86 = arith.constant dense<0.000000e+00> : vector<16x24xf32>
    %319 = tpu.matmul %315, %312, %cst_86 {dimension_numbers = #tpu.dot_dimension_numbers<[1], [0], [0], [1], [0, 0, 1, 1], [], []>} : vector<16x8xf32>, vector<8x24xf32>, vector<16x24xf32> -> vector<16x24xf32>
    %320 = vector.broadcast %314 : vector<1x24xf32> to vector<16x24xf32>
    %321 = arith.addf %319, %320 : vector<16x24xf32>
    %322 = vector.extract_strided_slice %318 {offsets = [0, 0], sizes = [16, 8], strides = [1, 1]} : vector<16x24xf32> to vector<16x8xf32>
    %323 = vector.extract_strided_slice %321 {offsets = [0, 0], sizes = [16, 8], strides = [1, 1]} : vector<16x24xf32> to vector<16x8xf32>
    %324 = arith.addf %322, %323 : vector<16x8xf32>
    %325 = arith.negf %324 : vector<16x8xf32>
    %326 = math.exp %325 : vector<16x8xf32>
    %cst_87 = arith.constant 1.000000e+00 : f32
    %327 = vector.broadcast %cst_87 : f32 to vector<16x8xf32>
    %328 = arith.addf %327, %326 : vector<16x8xf32>
    %329 = arith.divf %327, %328 : vector<16x8xf32>
    %330 = vector.extract_strided_slice %318 {offsets = [0, 8], sizes = [16, 8], strides = [1, 1]} : vector<16x24xf32> to vector<16x8xf32>
    %331 = vector.extract_strided_slice %321 {offsets = [0, 8], sizes = [16, 8], strides = [1, 1]} : vector<16x24xf32> to vector<16x8xf32>
    %332 = arith.addf %330, %331 : vector<16x8xf32>
    %333 = arith.negf %332 : vector<16x8xf32>
    %334 = math.exp %333 : vector<16x8xf32>
    %cst_88 = arith.constant 1.000000e+00 : f32
    %335 = vector.broadcast %cst_88 : f32 to vector<16x8xf32>
    %336 = arith.addf %335, %334 : vector<16x8xf32>
    %337 = arith.divf %335, %336 : vector<16x8xf32>
    %338 = vector.extract_strided_slice %318 {offsets = [0, 16], sizes = [16, 8], strides = [1, 1]} : vector<16x24xf32> to vector<16x8xf32>
    %339 = vector.extract_strided_slice %321 {offsets = [0, 16], sizes = [16, 8], strides = [1, 1]} : vector<16x24xf32> to vector<16x8xf32>
    %340 = arith.mulf %329, %339 : vector<16x8xf32>
    %341 = arith.addf %338, %340 : vector<16x8xf32>
    %342 = math.tanh %341 : vector<16x8xf32>
    %cst_89 = arith.constant 1.000000e+00 : f32
    %343 = vector.broadcast %cst_89 : f32 to vector<16x8xf32>
    %344 = arith.subf %343, %337 : vector<16x8xf32>
    %345 = arith.mulf %344, %342 : vector<16x8xf32>
    %346 = arith.mulf %337, %315 : vector<16x8xf32>
    %347 = arith.addf %345, %346 : vector<16x8xf32>
    %cst_90 = arith.constant dense<0.000000e+00> : vector<16x24xf32>
    %348 = tpu.matmul %182, %311, %cst_90 {dimension_numbers = #tpu.dot_dimension_numbers<[1], [0], [0], [1], [0, 0, 1, 1], [], []>} : vector<16x8xf32>, vector<8x24xf32>, vector<16x24xf32> -> vector<16x24xf32>
    %349 = vector.broadcast %313 : vector<1x24xf32> to vector<16x24xf32>
    %350 = arith.addf %348, %349 : vector<16x24xf32>
    %cst_91 = arith.constant dense<0.000000e+00> : vector<16x24xf32>
    %351 = tpu.matmul %347, %312, %cst_91 {dimension_numbers = #tpu.dot_dimension_numbers<[1], [0], [0], [1], [0, 0, 1, 1], [], []>} : vector<16x8xf32>, vector<8x24xf32>, vector<16x24xf32> -> vector<16x24xf32>
    %352 = vector.broadcast %314 : vector<1x24xf32> to vector<16x24xf32>
    %353 = arith.addf %351, %352 : vector<16x24xf32>
    %354 = vector.extract_strided_slice %350 {offsets = [0, 0], sizes = [16, 8], strides = [1, 1]} : vector<16x24xf32> to vector<16x8xf32>
    %355 = vector.extract_strided_slice %353 {offsets = [0, 0], sizes = [16, 8], strides = [1, 1]} : vector<16x24xf32> to vector<16x8xf32>
    %356 = arith.addf %354, %355 : vector<16x8xf32>
    %357 = arith.negf %356 : vector<16x8xf32>
    %358 = math.exp %357 : vector<16x8xf32>
    %cst_92 = arith.constant 1.000000e+00 : f32
    %359 = vector.broadcast %cst_92 : f32 to vector<16x8xf32>
    %360 = arith.addf %359, %358 : vector<16x8xf32>
    %361 = arith.divf %359, %360 : vector<16x8xf32>
    %362 = vector.extract_strided_slice %350 {offsets = [0, 8], sizes = [16, 8], strides = [1, 1]} : vector<16x24xf32> to vector<16x8xf32>
    %363 = vector.extract_strided_slice %353 {offsets = [0, 8], sizes = [16, 8], strides = [1, 1]} : vector<16x24xf32> to vector<16x8xf32>
    %364 = arith.addf %362, %363 : vector<16x8xf32>
    %365 = arith.negf %364 : vector<16x8xf32>
    %366 = math.exp %365 : vector<16x8xf32>
    %cst_93 = arith.constant 1.000000e+00 : f32
    %367 = vector.broadcast %cst_93 : f32 to vector<16x8xf32>
    %368 = arith.addf %367, %366 : vector<16x8xf32>
    %369 = arith.divf %367, %368 : vector<16x8xf32>
    %370 = vector.extract_strided_slice %350 {offsets = [0, 16], sizes = [16, 8], strides = [1, 1]} : vector<16x24xf32> to vector<16x8xf32>
    %371 = vector.extract_strided_slice %353 {offsets = [0, 16], sizes = [16, 8], strides = [1, 1]} : vector<16x24xf32> to vector<16x8xf32>
    %372 = arith.mulf %361, %371 : vector<16x8xf32>
    %373 = arith.addf %370, %372 : vector<16x8xf32>
    %374 = math.tanh %373 : vector<16x8xf32>
    %cst_94 = arith.constant 1.000000e+00 : f32
    %375 = vector.broadcast %cst_94 : f32 to vector<16x8xf32>
    %376 = arith.subf %375, %369 : vector<16x8xf32>
    %377 = arith.mulf %376, %374 : vector<16x8xf32>
    %378 = arith.mulf %369, %347 : vector<16x8xf32>
    %379 = arith.addf %377, %378 : vector<16x8xf32>
    %cst_95 = arith.constant dense<0.000000e+00> : vector<16x24xf32>
    %380 = tpu.matmul %246, %311, %cst_95 {dimension_numbers = #tpu.dot_dimension_numbers<[1], [0], [0], [1], [0, 0, 1, 1], [], []>} : vector<16x8xf32>, vector<8x24xf32>, vector<16x24xf32> -> vector<16x24xf32>
    %381 = vector.broadcast %313 : vector<1x24xf32> to vector<16x24xf32>
    %382 = arith.addf %380, %381 : vector<16x24xf32>
    %cst_96 = arith.constant dense<0.000000e+00> : vector<16x24xf32>
    %383 = tpu.matmul %379, %312, %cst_96 {dimension_numbers = #tpu.dot_dimension_numbers<[1], [0], [0], [1], [0, 0, 1, 1], [], []>} : vector<16x8xf32>, vector<8x24xf32>, vector<16x24xf32> -> vector<16x24xf32>
    %384 = vector.broadcast %314 : vector<1x24xf32> to vector<16x24xf32>
    %385 = arith.addf %383, %384 : vector<16x24xf32>
    %386 = vector.extract_strided_slice %382 {offsets = [0, 0], sizes = [16, 8], strides = [1, 1]} : vector<16x24xf32> to vector<16x8xf32>
    %387 = vector.extract_strided_slice %385 {offsets = [0, 0], sizes = [16, 8], strides = [1, 1]} : vector<16x24xf32> to vector<16x8xf32>
    %388 = arith.addf %386, %387 : vector<16x8xf32>
    %389 = arith.negf %388 : vector<16x8xf32>
    %390 = math.exp %389 : vector<16x8xf32>
    %cst_97 = arith.constant 1.000000e+00 : f32
    %391 = vector.broadcast %cst_97 : f32 to vector<16x8xf32>
    %392 = arith.addf %391, %390 : vector<16x8xf32>
    %393 = arith.divf %391, %392 : vector<16x8xf32>
    %394 = vector.extract_strided_slice %382 {offsets = [0, 8], sizes = [16, 8], strides = [1, 1]} : vector<16x24xf32> to vector<16x8xf32>
    %395 = vector.extract_strided_slice %385 {offsets = [0, 8], sizes = [16, 8], strides = [1, 1]} : vector<16x24xf32> to vector<16x8xf32>
    %396 = arith.addf %394, %395 : vector<16x8xf32>
    %397 = arith.negf %396 : vector<16x8xf32>
    %398 = math.exp %397 : vector<16x8xf32>
    %cst_98 = arith.constant 1.000000e+00 : f32
    %399 = vector.broadcast %cst_98 : f32 to vector<16x8xf32>
    %400 = arith.addf %399, %398 : vector<16x8xf32>
    %401 = arith.divf %399, %400 : vector<16x8xf32>
    %402 = vector.extract_strided_slice %382 {offsets = [0, 16], sizes = [16, 8], strides = [1, 1]} : vector<16x24xf32> to vector<16x8xf32>
    %403 = vector.extract_strided_slice %385 {offsets = [0, 16], sizes = [16, 8], strides = [1, 1]} : vector<16x24xf32> to vector<16x8xf32>
    %404 = arith.mulf %393, %403 : vector<16x8xf32>
    %405 = arith.addf %402, %404 : vector<16x8xf32>
    %406 = math.tanh %405 : vector<16x8xf32>
    %cst_99 = arith.constant 1.000000e+00 : f32
    %407 = vector.broadcast %cst_99 : f32 to vector<16x8xf32>
    %408 = arith.subf %407, %401 : vector<16x8xf32>
    %409 = arith.mulf %408, %406 : vector<16x8xf32>
    %410 = arith.mulf %401, %379 : vector<16x8xf32>
    %411 = arith.addf %409, %410 : vector<16x8xf32>
    %cst_100 = arith.constant dense<0.000000e+00> : vector<16x24xf32>
    %412 = tpu.matmul %310, %311, %cst_100 {dimension_numbers = #tpu.dot_dimension_numbers<[1], [0], [0], [1], [0, 0, 1, 1], [], []>} : vector<16x8xf32>, vector<8x24xf32>, vector<16x24xf32> -> vector<16x24xf32>
    %413 = vector.broadcast %313 : vector<1x24xf32> to vector<16x24xf32>
    %414 = arith.addf %412, %413 : vector<16x24xf32>
    %cst_101 = arith.constant dense<0.000000e+00> : vector<16x24xf32>
    %415 = tpu.matmul %411, %312, %cst_101 {dimension_numbers = #tpu.dot_dimension_numbers<[1], [0], [0], [1], [0, 0, 1, 1], [], []>} : vector<16x8xf32>, vector<8x24xf32>, vector<16x24xf32> -> vector<16x24xf32>
    %416 = vector.broadcast %314 : vector<1x24xf32> to vector<16x24xf32>
    %417 = arith.addf %415, %416 : vector<16x24xf32>
    %418 = vector.extract_strided_slice %414 {offsets = [0, 0], sizes = [16, 8], strides = [1, 1]} : vector<16x24xf32> to vector<16x8xf32>
    %419 = vector.extract_strided_slice %417 {offsets = [0, 0], sizes = [16, 8], strides = [1, 1]} : vector<16x24xf32> to vector<16x8xf32>
    %420 = arith.addf %418, %419 : vector<16x8xf32>
    %421 = arith.negf %420 : vector<16x8xf32>
    %422 = math.exp %421 : vector<16x8xf32>
    %cst_102 = arith.constant 1.000000e+00 : f32
    %423 = vector.broadcast %cst_102 : f32 to vector<16x8xf32>
    %424 = arith.addf %423, %422 : vector<16x8xf32>
    %425 = arith.divf %423, %424 : vector<16x8xf32>
    %426 = vector.extract_strided_slice %414 {offsets = [0, 8], sizes = [16, 8], strides = [1, 1]} : vector<16x24xf32> to vector<16x8xf32>
    %427 = vector.extract_strided_slice %417 {offsets = [0, 8], sizes = [16, 8], strides = [1, 1]} : vector<16x24xf32> to vector<16x8xf32>
    %428 = arith.addf %426, %427 : vector<16x8xf32>
    %429 = arith.negf %428 : vector<16x8xf32>
    %430 = math.exp %429 : vector<16x8xf32>
    %cst_103 = arith.constant 1.000000e+00 : f32
    %431 = vector.broadcast %cst_103 : f32 to vector<16x8xf32>
    %432 = arith.addf %431, %430 : vector<16x8xf32>
    %433 = arith.divf %431, %432 : vector<16x8xf32>
    %434 = vector.extract_strided_slice %414 {offsets = [0, 16], sizes = [16, 8], strides = [1, 1]} : vector<16x24xf32> to vector<16x8xf32>
    %435 = vector.extract_strided_slice %417 {offsets = [0, 16], sizes = [16, 8], strides = [1, 1]} : vector<16x24xf32> to vector<16x8xf32>
    %436 = arith.mulf %425, %435 : vector<16x8xf32>
    %437 = arith.addf %434, %436 : vector<16x8xf32>
    %438 = math.tanh %437 : vector<16x8xf32>
    %cst_104 = arith.constant 1.000000e+00 : f32
    %439 = vector.broadcast %cst_104 : f32 to vector<16x8xf32>
    %440 = arith.subf %439, %433 : vector<16x8xf32>
    %441 = arith.mulf %440, %438 : vector<16x8xf32>
    %442 = arith.mulf %433, %411 : vector<16x8xf32>
    %443 = arith.addf %441, %442 : vector<16x8xf32>
    %444 = vector.extract_strided_slice %310 {offsets = [0, 0], sizes = [8, 8], strides = [1, 1]} : vector<16x8xf32> to vector<8x8xf32>
    %c0_105 = arith.constant 0 : index
    %c0_106 = arith.constant 0 : index
    %445 = vector.load %arg20[%c0_105, %c0_106] : memref<8x32xf32, #tpu.memory_space<vmem>>, vector<8x8xf32>
    tpu.vector_store %arg20[%c0_105, %c0_106], %444 {strides = array<i32>} : memref<8x32xf32, #tpu.memory_space<vmem>>, vector<8x8xf32>,
    %446 = vector.extract_strided_slice %310 {offsets = [8, 0], sizes = [8, 8], strides = [1, 1]} : vector<16x8xf32> to vector<8x8xf32>
    %c0_107 = arith.constant 0 : index
    %c16 = arith.constant 16 : index
    %447 = vector.load %arg20[%c0_107, %c16] : memref<8x32xf32, #tpu.memory_space<vmem>>, vector<8x8xf32>
    tpu.vector_store %arg20[%c0_107, %c16], %446 {strides = array<i32>} : memref<8x32xf32, #tpu.memory_space<vmem>>, vector<8x8xf32>,
    %448 = vector.extract_strided_slice %443 {offsets = [0, 0], sizes = [8, 8], strides = [1, 1]} : vector<16x8xf32> to vector<8x8xf32>
    %c0_108 = arith.constant 0 : index
    %c8 = arith.constant 8 : index
    %449 = vector.load %arg20[%c0_108, %c8] : memref<8x32xf32, #tpu.memory_space<vmem>>, vector<8x8xf32>
    tpu.vector_store %arg20[%c0_108, %c8], %448 {strides = array<i32>} : memref<8x32xf32, #tpu.memory_space<vmem>>, vector<8x8xf32>,
    %450 = vector.extract_strided_slice %443 {offsets = [8, 0], sizes = [8, 8], strides = [1, 1]} : vector<16x8xf32> to vector<8x8xf32>
    %c0_109 = arith.constant 0 : index
    %c24 = arith.constant 24 : index
    %451 = vector.load %arg20[%c0_109, %c24] : memref<8x32xf32, #tpu.memory_space<vmem>>, vector<8x8xf32>
    tpu.vector_store %arg20[%c0_109, %c24], %450 {strides = array<i32>} : memref<8x32xf32, #tpu.memory_space<vmem>>, vector<8x8xf32>,
    %c0_110 = arith.constant 0 : index
    %c0_111 = arith.constant 0 : index
    %452 = vector.load %arg11[%c0_110, %c0_111] : memref<8x96xf32, #tpu.memory_space<vmem>>, vector<8x96xf32>
    %c0_112 = arith.constant 0 : index
    %c0_113 = arith.constant 0 : index
    %453 = vector.load %arg12[%c0_112, %c0_113] : memref<32x96xf32, #tpu.memory_space<vmem>>, vector<32x96xf32>
    %c0_114 = arith.constant 0 : index
    %c0_115 = arith.constant 0 : index
    %454 = vector.load %arg13[%c0_114, %c0_115] : memref<1x96xf32, #tpu.memory_space<vmem>>, vector<1x96xf32>
    %c0_116 = arith.constant 0 : index
    %c0_117 = arith.constant 0 : index
    %455 = vector.load %arg14[%c0_116, %c0_117] : memref<1x96xf32, #tpu.memory_space<vmem>>, vector<1x96xf32>
    %c0_118 = arith.constant 0 : index
    %c0_119 = arith.constant 0 : index
    %456 = vector.load %arg15[%c0_118, %c0_119] : memref<32x8xf32, #tpu.memory_space<vmem>>, vector<32x8xf32>
    %c0_120 = arith.constant 0 : index
    %c0_121 = arith.constant 0 : index
    %457 = vector.load %arg16[%c0_120, %c0_121] : memref<1x8xf32, #tpu.memory_space<vmem>>, vector<1x8xf32>
    %c0_122 = arith.constant 0 : index
    %c0_123 = arith.constant 0 : index
    %458 = vector.load %arg17[%c0_122, %c0_123] : memref<8x4xf32, #tpu.memory_space<vmem>>, vector<8x4xf32>
    %c0_124 = arith.constant 0 : index
    %c0_125 = arith.constant 0 : index
    %459 = vector.load %arg18[%c0_124, %c0_125] : memref<1x4xf32, #tpu.memory_space<vmem>>, vector<1x4xf32>
    %c0_126 = arith.constant 0 : index
    %c0_127 = arith.constant 0 : index
    %460 = vector.load %arg20[%c0_126, %c0_127] : memref<8x32xf32, #tpu.memory_space<vmem>>, vector<8x32xf32>
    %cst_128 = arith.constant dense<0.000000e+00> : vector<8x96xf32>
    %461 = tpu.matmul %6, %452, %cst_128 {dimension_numbers = #tpu.dot_dimension_numbers<[1], [0], [0], [1], [0, 0, 1, 1], [], []>} : vector<8x8xf32>, vector<8x96xf32>, vector<8x96xf32> -> vector<8x96xf32>
    %462 = vector.broadcast %454 : vector<1x96xf32> to vector<8x96xf32>
    %463 = arith.addf %461, %462 : vector<8x96xf32>
    %cst_129 = arith.constant dense<0.000000e+00> : vector<8x96xf32>
    %464 = tpu.matmul %460, %453, %cst_129 {dimension_numbers = #tpu.dot_dimension_numbers<[1], [0], [0], [1], [0, 0, 1, 1], [], []>} : vector<8x32xf32>, vector<32x96xf32>, vector<8x96xf32> -> vector<8x96xf32>
    %465 = vector.broadcast %455 : vector<1x96xf32> to vector<8x96xf32>
    %466 = arith.addf %464, %465 : vector<8x96xf32>
    %467 = vector.extract_strided_slice %463 {offsets = [0, 0], sizes = [8, 32], strides = [1, 1]} : vector<8x96xf32> to vector<8x32xf32>
    %468 = vector.extract_strided_slice %466 {offsets = [0, 0], sizes = [8, 32], strides = [1, 1]} : vector<8x96xf32> to vector<8x32xf32>
    %469 = arith.addf %467, %468 : vector<8x32xf32>
    %470 = arith.negf %469 : vector<8x32xf32>
    %471 = math.exp %470 : vector<8x32xf32>
    %cst_130 = arith.constant 1.000000e+00 : f32
    %472 = vector.broadcast %cst_130 : f32 to vector<8x32xf32>
    %473 = arith.addf %472, %471 : vector<8x32xf32>
    %474 = arith.divf %472, %473 : vector<8x32xf32>
    %475 = vector.extract_strided_slice %463 {offsets = [0, 32], sizes = [8, 32], strides = [1, 1]} : vector<8x96xf32> to vector<8x32xf32>
    %476 = vector.extract_strided_slice %466 {offsets = [0, 32], sizes = [8, 32], strides = [1, 1]} : vector<8x96xf32> to vector<8x32xf32>
    %477 = arith.addf %475, %476 : vector<8x32xf32>
    %478 = arith.negf %477 : vector<8x32xf32>
    %479 = math.exp %478 : vector<8x32xf32>
    %cst_131 = arith.constant 1.000000e+00 : f32
    %480 = vector.broadcast %cst_131 : f32 to vector<8x32xf32>
    %481 = arith.addf %480, %479 : vector<8x32xf32>
    %482 = arith.divf %480, %481 : vector<8x32xf32>
    %483 = vector.extract_strided_slice %463 {offsets = [0, 64], sizes = [8, 32], strides = [1, 1]} : vector<8x96xf32> to vector<8x32xf32>
    %484 = vector.extract_strided_slice %466 {offsets = [0, 64], sizes = [8, 32], strides = [1, 1]} : vector<8x96xf32> to vector<8x32xf32>
    %485 = arith.mulf %474, %484 : vector<8x32xf32>
    %486 = arith.addf %483, %485 : vector<8x32xf32>
    %487 = math.tanh %486 : vector<8x32xf32>
    %cst_132 = arith.constant 1.000000e+00 : f32
    %488 = vector.broadcast %cst_132 : f32 to vector<8x32xf32>
    %489 = arith.subf %488, %482 : vector<8x32xf32>
    %490 = arith.mulf %489, %487 : vector<8x32xf32>
    %491 = arith.mulf %482, %460 : vector<8x32xf32>
    %492 = arith.addf %490, %491 : vector<8x32xf32>
    %cst_133 = arith.constant dense<0.000000e+00> : vector<8x8xf32>
    %493 = tpu.matmul %492, %456, %cst_133 {dimension_numbers = #tpu.dot_dimension_numbers<[1], [0], [0], [1], [0, 0, 1, 1], [], []>} : vector<8x32xf32>, vector<32x8xf32>, vector<8x8xf32> -> vector<8x8xf32>
    %494 = vector.broadcast %457 : vector<1x8xf32> to vector<8x8xf32>
    %495 = arith.addf %493, %494 : vector<8x8xf32>
    %cst_134 = arith.constant dense<0.000000e+00> : vector<8x4xf32>
    %496 = tpu.matmul %495, %458, %cst_134 {dimension_numbers = #tpu.dot_dimension_numbers<[1], [0], [0], [1], [0, 0, 1, 1], [], []>} : vector<8x8xf32>, vector<8x4xf32>, vector<8x4xf32> -> vector<8x4xf32>
    %497 = vector.broadcast %459 : vector<1x4xf32> to vector<8x4xf32>
    %498 = arith.addf %496, %497 : vector<8x4xf32>
    %c0_135 = arith.constant 0 : index
    %c0_136 = arith.constant 0 : index
    %c0_137 = arith.constant 0 : index
    %499 = vector.load %arg19[%c0_135, %c0_136, %c0_137] : memref<8x8x4xf32, #tpu.memory_space<vmem>>, vector<1x8x4xf32>
    %500 = vector.shape_cast %499 : vector<1x8x4xf32> to vector<8x4xf32>
    %501 = vector.shape_cast %498 : vector<8x4xf32> to vector<1x8x4xf32>
    tpu.vector_store %arg19[%c0_135, %c0_136, %c0_137], %501 {strides = array<i32>} : memref<8x8x4xf32, #tpu.memory_space<vmem>>, vector<1x8x4xf32>,
    %cst_138 = arith.constant dense<0.000000e+00> : vector<8x96xf32>
    %502 = tpu.matmul %6, %452, %cst_138 {dimension_numbers = #tpu.dot_dimension_numbers<[1], [0], [0], [1], [0, 0, 1, 1], [], []>} : vector<8x8xf32>, vector<8x96xf32>, vector<8x96xf32> -> vector<8x96xf32>
    %503 = vector.broadcast %454 : vector<1x96xf32> to vector<8x96xf32>
    %504 = arith.addf %502, %503 : vector<8x96xf32>
    %cst_139 = arith.constant dense<0.000000e+00> : vector<8x96xf32>
    %505 = tpu.matmul %492, %453, %cst_139 {dimension_numbers = #tpu.dot_dimension_numbers<[1], [0], [0], [1], [0, 0, 1, 1], [], []>} : vector<8x32xf32>, vector<32x96xf32>, vector<8x96xf32> -> vector<8x96xf32>
    %506 = vector.broadcast %455 : vector<1x96xf32> to vector<8x96xf32>
    %507 = arith.addf %505, %506 : vector<8x96xf32>
    %508 = vector.extract_strided_slice %504 {offsets = [0, 0], sizes = [8, 32], strides = [1, 1]} : vector<8x96xf32> to vector<8x32xf32>
    %509 = vector.extract_strided_slice %507 {offsets = [0, 0], sizes = [8, 32], strides = [1, 1]} : vector<8x96xf32> to vector<8x32xf32>
    %510 = arith.addf %508, %509 : vector<8x32xf32>
    %511 = arith.negf %510 : vector<8x32xf32>
    %512 = math.exp %511 : vector<8x32xf32>
    %cst_140 = arith.constant 1.000000e+00 : f32
    %513 = vector.broadcast %cst_140 : f32 to vector<8x32xf32>
    %514 = arith.addf %513, %512 : vector<8x32xf32>
    %515 = arith.divf %513, %514 : vector<8x32xf32>
    %516 = vector.extract_strided_slice %504 {offsets = [0, 32], sizes = [8, 32], strides = [1, 1]} : vector<8x96xf32> to vector<8x32xf32>
    %517 = vector.extract_strided_slice %507 {offsets = [0, 32], sizes = [8, 32], strides = [1, 1]} : vector<8x96xf32> to vector<8x32xf32>
    %518 = arith.addf %516, %517 : vector<8x32xf32>
    %519 = arith.negf %518 : vector<8x32xf32>
    %520 = math.exp %519 : vector<8x32xf32>
    %cst_141 = arith.constant 1.000000e+00 : f32
    %521 = vector.broadcast %cst_141 : f32 to vector<8x32xf32>
    %522 = arith.addf %521, %520 : vector<8x32xf32>
    %523 = arith.divf %521, %522 : vector<8x32xf32>
    %524 = vector.extract_strided_slice %504 {offsets = [0, 64], sizes = [8, 32], strides = [1, 1]} : vector<8x96xf32> to vector<8x32xf32>
    %525 = vector.extract_strided_slice %507 {offsets = [0, 64], sizes = [8, 32], strides = [1, 1]} : vector<8x96xf32> to vector<8x32xf32>
    %526 = arith.mulf %515, %525 : vector<8x32xf32>
    %527 = arith.addf %524, %526 : vector<8x32xf32>
    %528 = math.tanh %527 : vector<8x32xf32>
    %cst_142 = arith.constant 1.000000e+00 : f32
    %529 = vector.broadcast %cst_142 : f32 to vector<8x32xf32>
    %530 = arith.subf %529, %523 : vector<8x32xf32>
    %531 = arith.mulf %530, %528 : vector<8x32xf32>
    %532 = arith.mulf %523, %492 : vector<8x32xf32>
    %533 = arith.addf %531, %532 : vector<8x32xf32>
    %cst_143 = arith.constant dense<0.000000e+00> : vector<8x8xf32>
    %534 = tpu.matmul %533, %456, %cst_143 {dimension_numbers = #tpu.dot_dimension_numbers<[1], [0], [0], [1], [0, 0, 1, 1], [], []>} : vector<8x32xf32>, vector<32x8xf32>, vector<8x8xf32> -> vector<8x8xf32>
    %535 = vector.broadcast %457 : vector<1x8xf32> to vector<8x8xf32>
    %536 = arith.addf %534, %535 : vector<8x8xf32>
    %cst_144 = arith.constant dense<0.000000e+00> : vector<8x4xf32>
    %537 = tpu.matmul %536, %458, %cst_144 {dimension_numbers = #tpu.dot_dimension_numbers<[1], [0], [0], [1], [0, 0, 1, 1], [], []>} : vector<8x8xf32>, vector<8x4xf32>, vector<8x4xf32> -> vector<8x4xf32>
    %538 = vector.broadcast %459 : vector<1x4xf32> to vector<8x4xf32>
    %539 = arith.addf %537, %538 : vector<8x4xf32>
    %c1_145 = arith.constant 1 : index
    %c0_146 = arith.constant 0 : index
    %c0_147 = arith.constant 0 : index
    %540 = vector.load %arg19[%c1_145, %c0_146, %c0_147] : memref<8x8x4xf32, #tpu.memory_space<vmem>>, vector<1x8x4xf32>
    %541 = vector.shape_cast %540 : vector<1x8x4xf32> to vector<8x4xf32>
    %542 = vector.shape_cast %539 : vector<8x4xf32> to vector<1x8x4xf32>
    tpu.vector_store %arg19[%c1_145, %c0_146, %c0_147], %542 {strides = array<i32>} : memref<8x8x4xf32, #tpu.memory_space<vmem>>, vector<1x8x4xf32>,
    %cst_148 = arith.constant dense<0.000000e+00> : vector<8x96xf32>
    %543 = tpu.matmul %11, %452, %cst_148 {dimension_numbers = #tpu.dot_dimension_numbers<[1], [0], [0], [1], [0, 0, 1, 1], [], []>} : vector<8x8xf32>, vector<8x96xf32>, vector<8x96xf32> -> vector<8x96xf32>
    %544 = vector.broadcast %454 : vector<1x96xf32> to vector<8x96xf32>
    %545 = arith.addf %543, %544 : vector<8x96xf32>
    %cst_149 = arith.constant dense<0.000000e+00> : vector<8x96xf32>
    %546 = tpu.matmul %533, %453, %cst_149 {dimension_numbers = #tpu.dot_dimension_numbers<[1], [0], [0], [1], [0, 0, 1, 1], [], []>} : vector<8x32xf32>, vector<32x96xf32>, vector<8x96xf32> -> vector<8x96xf32>
    %547 = vector.broadcast %455 : vector<1x96xf32> to vector<8x96xf32>
    %548 = arith.addf %546, %547 : vector<8x96xf32>
    %549 = vector.extract_strided_slice %545 {offsets = [0, 0], sizes = [8, 32], strides = [1, 1]} : vector<8x96xf32> to vector<8x32xf32>
    %550 = vector.extract_strided_slice %548 {offsets = [0, 0], sizes = [8, 32], strides = [1, 1]} : vector<8x96xf32> to vector<8x32xf32>
    %551 = arith.addf %549, %550 : vector<8x32xf32>
    %552 = arith.negf %551 : vector<8x32xf32>
    %553 = math.exp %552 : vector<8x32xf32>
    %cst_150 = arith.constant 1.000000e+00 : f32
    %554 = vector.broadcast %cst_150 : f32 to vector<8x32xf32>
    %555 = arith.addf %554, %553 : vector<8x32xf32>
    %556 = arith.divf %554, %555 : vector<8x32xf32>
    %557 = vector.extract_strided_slice %545 {offsets = [0, 32], sizes = [8, 32], strides = [1, 1]} : vector<8x96xf32> to vector<8x32xf32>
    %558 = vector.extract_strided_slice %548 {offsets = [0, 32], sizes = [8, 32], strides = [1, 1]} : vector<8x96xf32> to vector<8x32xf32>
    %559 = arith.addf %557, %558 : vector<8x32xf32>
    %560 = arith.negf %559 : vector<8x32xf32>
    %561 = math.exp %560 : vector<8x32xf32>
    %cst_151 = arith.constant 1.000000e+00 : f32
    %562 = vector.broadcast %cst_151 : f32 to vector<8x32xf32>
    %563 = arith.addf %562, %561 : vector<8x32xf32>
    %564 = arith.divf %562, %563 : vector<8x32xf32>
    %565 = vector.extract_strided_slice %545 {offsets = [0, 64], sizes = [8, 32], strides = [1, 1]} : vector<8x96xf32> to vector<8x32xf32>
    %566 = vector.extract_strided_slice %548 {offsets = [0, 64], sizes = [8, 32], strides = [1, 1]} : vector<8x96xf32> to vector<8x32xf32>
    %567 = arith.mulf %556, %566 : vector<8x32xf32>
    %568 = arith.addf %565, %567 : vector<8x32xf32>
    %569 = math.tanh %568 : vector<8x32xf32>
    %cst_152 = arith.constant 1.000000e+00 : f32
    %570 = vector.broadcast %cst_152 : f32 to vector<8x32xf32>
    %571 = arith.subf %570, %564 : vector<8x32xf32>
    %572 = arith.mulf %571, %569 : vector<8x32xf32>
    %573 = arith.mulf %564, %533 : vector<8x32xf32>
    %574 = arith.addf %572, %573 : vector<8x32xf32>
    %cst_153 = arith.constant dense<0.000000e+00> : vector<8x8xf32>
    %575 = tpu.matmul %574, %456, %cst_153 {dimension_numbers = #tpu.dot_dimension_numbers<[1], [0], [0], [1], [0, 0, 1, 1], [], []>} : vector<8x32xf32>, vector<32x8xf32>, vector<8x8xf32> -> vector<8x8xf32>
    %576 = vector.broadcast %457 : vector<1x8xf32> to vector<8x8xf32>
    %577 = arith.addf %575, %576 : vector<8x8xf32>
    %cst_154 = arith.constant dense<0.000000e+00> : vector<8x4xf32>
    %578 = tpu.matmul %577, %458, %cst_154 {dimension_numbers = #tpu.dot_dimension_numbers<[1], [0], [0], [1], [0, 0, 1, 1], [], []>} : vector<8x8xf32>, vector<8x4xf32>, vector<8x4xf32> -> vector<8x4xf32>
    %579 = vector.broadcast %459 : vector<1x4xf32> to vector<8x4xf32>
    %580 = arith.addf %578, %579 : vector<8x4xf32>
    %c2_155 = arith.constant 2 : index
    %c0_156 = arith.constant 0 : index
    %c0_157 = arith.constant 0 : index
    %581 = vector.load %arg19[%c2_155, %c0_156, %c0_157] : memref<8x8x4xf32, #tpu.memory_space<vmem>>, vector<1x8x4xf32>
    %582 = vector.shape_cast %581 : vector<1x8x4xf32> to vector<8x4xf32>
    %583 = vector.shape_cast %580 : vector<8x4xf32> to vector<1x8x4xf32>
    tpu.vector_store %arg19[%c2_155, %c0_156, %c0_157], %583 {strides = array<i32>} : memref<8x8x4xf32, #tpu.memory_space<vmem>>, vector<1x8x4xf32>,
    %cst_158 = arith.constant dense<0.000000e+00> : vector<8x96xf32>
    %584 = tpu.matmul %16, %452, %cst_158 {dimension_numbers = #tpu.dot_dimension_numbers<[1], [0], [0], [1], [0, 0, 1, 1], [], []>} : vector<8x8xf32>, vector<8x96xf32>, vector<8x96xf32> -> vector<8x96xf32>
    %585 = vector.broadcast %454 : vector<1x96xf32> to vector<8x96xf32>
    %586 = arith.addf %584, %585 : vector<8x96xf32>
    %cst_159 = arith.constant dense<0.000000e+00> : vector<8x96xf32>
    %587 = tpu.matmul %574, %453, %cst_159 {dimension_numbers = #tpu.dot_dimension_numbers<[1], [0], [0], [1], [0, 0, 1, 1], [], []>} : vector<8x32xf32>, vector<32x96xf32>, vector<8x96xf32> -> vector<8x96xf32>
    %588 = vector.broadcast %455 : vector<1x96xf32> to vector<8x96xf32>
    %589 = arith.addf %587, %588 : vector<8x96xf32>
    %590 = vector.extract_strided_slice %586 {offsets = [0, 0], sizes = [8, 32], strides = [1, 1]} : vector<8x96xf32> to vector<8x32xf32>
    %591 = vector.extract_strided_slice %589 {offsets = [0, 0], sizes = [8, 32], strides = [1, 1]} : vector<8x96xf32> to vector<8x32xf32>
    %592 = arith.addf %590, %591 : vector<8x32xf32>
    %593 = arith.negf %592 : vector<8x32xf32>
    %594 = math.exp %593 : vector<8x32xf32>
    %cst_160 = arith.constant 1.000000e+00 : f32
    %595 = vector.broadcast %cst_160 : f32 to vector<8x32xf32>
    %596 = arith.addf %595, %594 : vector<8x32xf32>
    %597 = arith.divf %595, %596 : vector<8x32xf32>
    %598 = vector.extract_strided_slice %586 {offsets = [0, 32], sizes = [8, 32], strides = [1, 1]} : vector<8x96xf32> to vector<8x32xf32>
    %599 = vector.extract_strided_slice %589 {offsets = [0, 32], sizes = [8, 32], strides = [1, 1]} : vector<8x96xf32> to vector<8x32xf32>
    %600 = arith.addf %598, %599 : vector<8x32xf32>
    %601 = arith.negf %600 : vector<8x32xf32>
    %602 = math.exp %601 : vector<8x32xf32>
    %cst_161 = arith.constant 1.000000e+00 : f32
    %603 = vector.broadcast %cst_161 : f32 to vector<8x32xf32>
    %604 = arith.addf %603, %602 : vector<8x32xf32>
    %605 = arith.divf %603, %604 : vector<8x32xf32>
    %606 = vector.extract_strided_slice %586 {offsets = [0, 64], sizes = [8, 32], strides = [1, 1]} : vector<8x96xf32> to vector<8x32xf32>
    %607 = vector.extract_strided_slice %589 {offsets = [0, 64], sizes = [8, 32], strides = [1, 1]} : vector<8x96xf32> to vector<8x32xf32>
    %608 = arith.mulf %597, %607 : vector<8x32xf32>
    %609 = arith.addf %606, %608 : vector<8x32xf32>
    %610 = math.tanh %609 : vector<8x32xf32>
    %cst_162 = arith.constant 1.000000e+00 : f32
    %611 = vector.broadcast %cst_162 : f32 to vector<8x32xf32>
    %612 = arith.subf %611, %605 : vector<8x32xf32>
    %613 = arith.mulf %612, %610 : vector<8x32xf32>
    %614 = arith.mulf %605, %574 : vector<8x32xf32>
    %615 = arith.addf %613, %614 : vector<8x32xf32>
    %cst_163 = arith.constant dense<0.000000e+00> : vector<8x8xf32>
    %616 = tpu.matmul %615, %456, %cst_163 {dimension_numbers = #tpu.dot_dimension_numbers<[1], [0], [0], [1], [0, 0, 1, 1], [], []>} : vector<8x32xf32>, vector<32x8xf32>, vector<8x8xf32> -> vector<8x8xf32>
    %617 = vector.broadcast %457 : vector<1x8xf32> to vector<8x8xf32>
    %618 = arith.addf %616, %617 : vector<8x8xf32>
    %cst_164 = arith.constant dense<0.000000e+00> : vector<8x4xf32>
    %619 = tpu.matmul %618, %458, %cst_164 {dimension_numbers = #tpu.dot_dimension_numbers<[1], [0], [0], [1], [0, 0, 1, 1], [], []>} : vector<8x8xf32>, vector<8x4xf32>, vector<8x4xf32> -> vector<8x4xf32>
    %620 = vector.broadcast %459 : vector<1x4xf32> to vector<8x4xf32>
    %621 = arith.addf %619, %620 : vector<8x4xf32>
    %c3_165 = arith.constant 3 : index
    %c0_166 = arith.constant 0 : index
    %c0_167 = arith.constant 0 : index
    %622 = vector.load %arg19[%c3_165, %c0_166, %c0_167] : memref<8x8x4xf32, #tpu.memory_space<vmem>>, vector<1x8x4xf32>
    %623 = vector.shape_cast %622 : vector<1x8x4xf32> to vector<8x4xf32>
    %624 = vector.shape_cast %621 : vector<8x4xf32> to vector<1x8x4xf32>
    tpu.vector_store %arg19[%c3_165, %c0_166, %c0_167], %624 {strides = array<i32>} : memref<8x8x4xf32, #tpu.memory_space<vmem>>, vector<1x8x4xf32>,
    %cst_168 = arith.constant dense<0.000000e+00> : vector<8x96xf32>
    %625 = tpu.matmul %21, %452, %cst_168 {dimension_numbers = #tpu.dot_dimension_numbers<[1], [0], [0], [1], [0, 0, 1, 1], [], []>} : vector<8x8xf32>, vector<8x96xf32>, vector<8x96xf32> -> vector<8x96xf32>
    %626 = vector.broadcast %454 : vector<1x96xf32> to vector<8x96xf32>
    %627 = arith.addf %625, %626 : vector<8x96xf32>
    %cst_169 = arith.constant dense<0.000000e+00> : vector<8x96xf32>
    %628 = tpu.matmul %615, %453, %cst_169 {dimension_numbers = #tpu.dot_dimension_numbers<[1], [0], [0], [1], [0, 0, 1, 1], [], []>} : vector<8x32xf32>, vector<32x96xf32>, vector<8x96xf32> -> vector<8x96xf32>
    %629 = vector.broadcast %455 : vector<1x96xf32> to vector<8x96xf32>
    %630 = arith.addf %628, %629 : vector<8x96xf32>
    %631 = vector.extract_strided_slice %627 {offsets = [0, 0], sizes = [8, 32], strides = [1, 1]} : vector<8x96xf32> to vector<8x32xf32>
    %632 = vector.extract_strided_slice %630 {offsets = [0, 0], sizes = [8, 32], strides = [1, 1]} : vector<8x96xf32> to vector<8x32xf32>
    %633 = arith.addf %631, %632 : vector<8x32xf32>
    %634 = arith.negf %633 : vector<8x32xf32>
    %635 = math.exp %634 : vector<8x32xf32>
    %cst_170 = arith.constant 1.000000e+00 : f32
    %636 = vector.broadcast %cst_170 : f32 to vector<8x32xf32>
    %637 = arith.addf %636, %635 : vector<8x32xf32>
    %638 = arith.divf %636, %637 : vector<8x32xf32>
    %639 = vector.extract_strided_slice %627 {offsets = [0, 32], sizes = [8, 32], strides = [1, 1]} : vector<8x96xf32> to vector<8x32xf32>
    %640 = vector.extract_strided_slice %630 {offsets = [0, 32], sizes = [8, 32], strides = [1, 1]} : vector<8x96xf32> to vector<8x32xf32>
    %641 = arith.addf %639, %640 : vector<8x32xf32>
    %642 = arith.negf %641 : vector<8x32xf32>
    %643 = math.exp %642 : vector<8x32xf32>
    %cst_171 = arith.constant 1.000000e+00 : f32
    %644 = vector.broadcast %cst_171 : f32 to vector<8x32xf32>
    %645 = arith.addf %644, %643 : vector<8x32xf32>
    %646 = arith.divf %644, %645 : vector<8x32xf32>
    %647 = vector.extract_strided_slice %627 {offsets = [0, 64], sizes = [8, 32], strides = [1, 1]} : vector<8x96xf32> to vector<8x32xf32>
    %648 = vector.extract_strided_slice %630 {offsets = [0, 64], sizes = [8, 32], strides = [1, 1]} : vector<8x96xf32> to vector<8x32xf32>
    %649 = arith.mulf %638, %648 : vector<8x32xf32>
    %650 = arith.addf %647, %649 : vector<8x32xf32>
    %651 = math.tanh %650 : vector<8x32xf32>
    %cst_172 = arith.constant 1.000000e+00 : f32
    %652 = vector.broadcast %cst_172 : f32 to vector<8x32xf32>
    %653 = arith.subf %652, %646 : vector<8x32xf32>
    %654 = arith.mulf %653, %651 : vector<8x32xf32>
    %655 = arith.mulf %646, %615 : vector<8x32xf32>
    %656 = arith.addf %654, %655 : vector<8x32xf32>
    %cst_173 = arith.constant dense<0.000000e+00> : vector<8x8xf32>
    %657 = tpu.matmul %656, %456, %cst_173 {dimension_numbers = #tpu.dot_dimension_numbers<[1], [0], [0], [1], [0, 0, 1, 1], [], []>} : vector<8x32xf32>, vector<32x8xf32>, vector<8x8xf32> -> vector<8x8xf32>
    %658 = vector.broadcast %457 : vector<1x8xf32> to vector<8x8xf32>
    %659 = arith.addf %657, %658 : vector<8x8xf32>
    %cst_174 = arith.constant dense<0.000000e+00> : vector<8x4xf32>
    %660 = tpu.matmul %659, %458, %cst_174 {dimension_numbers = #tpu.dot_dimension_numbers<[1], [0], [0], [1], [0, 0, 1, 1], [], []>} : vector<8x8xf32>, vector<8x4xf32>, vector<8x4xf32> -> vector<8x4xf32>
    %661 = vector.broadcast %459 : vector<1x4xf32> to vector<8x4xf32>
    %662 = arith.addf %660, %661 : vector<8x4xf32>
    %c4_175 = arith.constant 4 : index
    %c0_176 = arith.constant 0 : index
    %c0_177 = arith.constant 0 : index
    %663 = vector.load %arg19[%c4_175, %c0_176, %c0_177] : memref<8x8x4xf32, #tpu.memory_space<vmem>>, vector<1x8x4xf32>
    %664 = vector.shape_cast %663 : vector<1x8x4xf32> to vector<8x4xf32>
    %665 = vector.shape_cast %662 : vector<8x4xf32> to vector<1x8x4xf32>
    tpu.vector_store %arg19[%c4_175, %c0_176, %c0_177], %665 {strides = array<i32>} : memref<8x8x4xf32, #tpu.memory_space<vmem>>, vector<1x8x4xf32>,
    %cst_178 = arith.constant dense<0.000000e+00> : vector<8x96xf32>
    %666 = tpu.matmul %26, %452, %cst_178 {dimension_numbers = #tpu.dot_dimension_numbers<[1], [0], [0], [1], [0, 0, 1, 1], [], []>} : vector<8x8xf32>, vector<8x96xf32>, vector<8x96xf32> -> vector<8x96xf32>
    %667 = vector.broadcast %454 : vector<1x96xf32> to vector<8x96xf32>
    %668 = arith.addf %666, %667 : vector<8x96xf32>
    %cst_179 = arith.constant dense<0.000000e+00> : vector<8x96xf32>
    %669 = tpu.matmul %656, %453, %cst_179 {dimension_numbers = #tpu.dot_dimension_numbers<[1], [0], [0], [1], [0, 0, 1, 1], [], []>} : vector<8x32xf32>, vector<32x96xf32>, vector<8x96xf32> -> vector<8x96xf32>
    %670 = vector.broadcast %455 : vector<1x96xf32> to vector<8x96xf32>
    %671 = arith.addf %669, %670 : vector<8x96xf32>
    %672 = vector.extract_strided_slice %668 {offsets = [0, 0], sizes = [8, 32], strides = [1, 1]} : vector<8x96xf32> to vector<8x32xf32>
    %673 = vector.extract_strided_slice %671 {offsets = [0, 0], sizes = [8, 32], strides = [1, 1]} : vector<8x96xf32> to vector<8x32xf32>
    %674 = arith.addf %672, %673 : vector<8x32xf32>
    %675 = arith.negf %674 : vector<8x32xf32>
    %676 = math.exp %675 : vector<8x32xf32>
    %cst_180 = arith.constant 1.000000e+00 : f32
    %677 = vector.broadcast %cst_180 : f32 to vector<8x32xf32>
    %678 = arith.addf %677, %676 : vector<8x32xf32>
    %679 = arith.divf %677, %678 : vector<8x32xf32>
    %680 = vector.extract_strided_slice %668 {offsets = [0, 32], sizes = [8, 32], strides = [1, 1]} : vector<8x96xf32> to vector<8x32xf32>
    %681 = vector.extract_strided_slice %671 {offsets = [0, 32], sizes = [8, 32], strides = [1, 1]} : vector<8x96xf32> to vector<8x32xf32>
    %682 = arith.addf %680, %681 : vector<8x32xf32>
    %683 = arith.negf %682 : vector<8x32xf32>
    %684 = math.exp %683 : vector<8x32xf32>
    %cst_181 = arith.constant 1.000000e+00 : f32
    %685 = vector.broadcast %cst_181 : f32 to vector<8x32xf32>
    %686 = arith.addf %685, %684 : vector<8x32xf32>
    %687 = arith.divf %685, %686 : vector<8x32xf32>
    %688 = vector.extract_strided_slice %668 {offsets = [0, 64], sizes = [8, 32], strides = [1, 1]} : vector<8x96xf32> to vector<8x32xf32>
    %689 = vector.extract_strided_slice %671 {offsets = [0, 64], sizes = [8, 32], strides = [1, 1]} : vector<8x96xf32> to vector<8x32xf32>
    %690 = arith.mulf %679, %689 : vector<8x32xf32>
    %691 = arith.addf %688, %690 : vector<8x32xf32>
    %692 = math.tanh %691 : vector<8x32xf32>
    %cst_182 = arith.constant 1.000000e+00 : f32
    %693 = vector.broadcast %cst_182 : f32 to vector<8x32xf32>
    %694 = arith.subf %693, %687 : vector<8x32xf32>
    %695 = arith.mulf %694, %692 : vector<8x32xf32>
    %696 = arith.mulf %687, %656 : vector<8x32xf32>
    %697 = arith.addf %695, %696 : vector<8x32xf32>
    %cst_183 = arith.constant dense<0.000000e+00> : vector<8x8xf32>
    %698 = tpu.matmul %697, %456, %cst_183 {dimension_numbers = #tpu.dot_dimension_numbers<[1], [0], [0], [1], [0, 0, 1, 1], [], []>} : vector<8x32xf32>, vector<32x8xf32>, vector<8x8xf32> -> vector<8x8xf32>
    %699 = vector.broadcast %457 : vector<1x8xf32> to vector<8x8xf32>
    %700 = arith.addf %698, %699 : vector<8x8xf32>
    %cst_184 = arith.constant dense<0.000000e+00> : vector<8x4xf32>
    %701 = tpu.matmul %700, %458, %cst_184 {dimension_numbers = #tpu.dot_dimension_numbers<[1], [0], [0], [1], [0, 0, 1, 1], [], []>} : vector<8x8xf32>, vector<8x4xf32>, vector<8x4xf32> -> vector<8x4xf32>
    %702 = vector.broadcast %459 : vector<1x4xf32> to vector<8x4xf32>
    %703 = arith.addf %701, %702 : vector<8x4xf32>
    %c5_185 = arith.constant 5 : index
    %c0_186 = arith.constant 0 : index
    %c0_187 = arith.constant 0 : index
    %704 = vector.load %arg19[%c5_185, %c0_186, %c0_187] : memref<8x8x4xf32, #tpu.memory_space<vmem>>, vector<1x8x4xf32>
    %705 = vector.shape_cast %704 : vector<1x8x4xf32> to vector<8x4xf32>
    %706 = vector.shape_cast %703 : vector<8x4xf32> to vector<1x8x4xf32>
    tpu.vector_store %arg19[%c5_185, %c0_186, %c0_187], %706 {strides = array<i32>} : memref<8x8x4xf32, #tpu.memory_space<vmem>>, vector<1x8x4xf32>,
    %cst_188 = arith.constant dense<0.000000e+00> : vector<8x96xf32>
    %707 = tpu.matmul %31, %452, %cst_188 {dimension_numbers = #tpu.dot_dimension_numbers<[1], [0], [0], [1], [0, 0, 1, 1], [], []>} : vector<8x8xf32>, vector<8x96xf32>, vector<8x96xf32> -> vector<8x96xf32>
    %708 = vector.broadcast %454 : vector<1x96xf32> to vector<8x96xf32>
    %709 = arith.addf %707, %708 : vector<8x96xf32>
    %cst_189 = arith.constant dense<0.000000e+00> : vector<8x96xf32>
    %710 = tpu.matmul %697, %453, %cst_189 {dimension_numbers = #tpu.dot_dimension_numbers<[1], [0], [0], [1], [0, 0, 1, 1], [], []>} : vector<8x32xf32>, vector<32x96xf32>, vector<8x96xf32> -> vector<8x96xf32>
    %711 = vector.broadcast %455 : vector<1x96xf32> to vector<8x96xf32>
    %712 = arith.addf %710, %711 : vector<8x96xf32>
    %713 = vector.extract_strided_slice %709 {offsets = [0, 0], sizes = [8, 32], strides = [1, 1]} : vector<8x96xf32> to vector<8x32xf32>
    %714 = vector.extract_strided_slice %712 {offsets = [0, 0], sizes = [8, 32], strides = [1, 1]} : vector<8x96xf32> to vector<8x32xf32>
    %715 = arith.addf %713, %714 : vector<8x32xf32>
    %716 = arith.negf %715 : vector<8x32xf32>
    %717 = math.exp %716 : vector<8x32xf32>
    %cst_190 = arith.constant 1.000000e+00 : f32
    %718 = vector.broadcast %cst_190 : f32 to vector<8x32xf32>
    %719 = arith.addf %718, %717 : vector<8x32xf32>
    %720 = arith.divf %718, %719 : vector<8x32xf32>
    %721 = vector.extract_strided_slice %709 {offsets = [0, 32], sizes = [8, 32], strides = [1, 1]} : vector<8x96xf32> to vector<8x32xf32>
    %722 = vector.extract_strided_slice %712 {offsets = [0, 32], sizes = [8, 32], strides = [1, 1]} : vector<8x96xf32> to vector<8x32xf32>
    %723 = arith.addf %721, %722 : vector<8x32xf32>
    %724 = arith.negf %723 : vector<8x32xf32>
    %725 = math.exp %724 : vector<8x32xf32>
    %cst_191 = arith.constant 1.000000e+00 : f32
    %726 = vector.broadcast %cst_191 : f32 to vector<8x32xf32>
    %727 = arith.addf %726, %725 : vector<8x32xf32>
    %728 = arith.divf %726, %727 : vector<8x32xf32>
    %729 = vector.extract_strided_slice %709 {offsets = [0, 64], sizes = [8, 32], strides = [1, 1]} : vector<8x96xf32> to vector<8x32xf32>
    %730 = vector.extract_strided_slice %712 {offsets = [0, 64], sizes = [8, 32], strides = [1, 1]} : vector<8x96xf32> to vector<8x32xf32>
    %731 = arith.mulf %720, %730 : vector<8x32xf32>
    %732 = arith.addf %729, %731 : vector<8x32xf32>
    %733 = math.tanh %732 : vector<8x32xf32>
    %cst_192 = arith.constant 1.000000e+00 : f32
    %734 = vector.broadcast %cst_192 : f32 to vector<8x32xf32>
    %735 = arith.subf %734, %728 : vector<8x32xf32>
    %736 = arith.mulf %735, %733 : vector<8x32xf32>
    %737 = arith.mulf %728, %697 : vector<8x32xf32>
    %738 = arith.addf %736, %737 : vector<8x32xf32>
    %cst_193 = arith.constant dense<0.000000e+00> : vector<8x8xf32>
    %739 = tpu.matmul %738, %456, %cst_193 {dimension_numbers = #tpu.dot_dimension_numbers<[1], [0], [0], [1], [0, 0, 1, 1], [], []>} : vector<8x32xf32>, vector<32x8xf32>, vector<8x8xf32> -> vector<8x8xf32>
    %740 = vector.broadcast %457 : vector<1x8xf32> to vector<8x8xf32>
    %741 = arith.addf %739, %740 : vector<8x8xf32>
    %cst_194 = arith.constant dense<0.000000e+00> : vector<8x4xf32>
    %742 = tpu.matmul %741, %458, %cst_194 {dimension_numbers = #tpu.dot_dimension_numbers<[1], [0], [0], [1], [0, 0, 1, 1], [], []>} : vector<8x8xf32>, vector<8x4xf32>, vector<8x4xf32> -> vector<8x4xf32>
    %743 = vector.broadcast %459 : vector<1x4xf32> to vector<8x4xf32>
    %744 = arith.addf %742, %743 : vector<8x4xf32>
    %c6_195 = arith.constant 6 : index
    %c0_196 = arith.constant 0 : index
    %c0_197 = arith.constant 0 : index
    %745 = vector.load %arg19[%c6_195, %c0_196, %c0_197] : memref<8x8x4xf32, #tpu.memory_space<vmem>>, vector<1x8x4xf32>
    %746 = vector.shape_cast %745 : vector<1x8x4xf32> to vector<8x4xf32>
    %747 = vector.shape_cast %744 : vector<8x4xf32> to vector<1x8x4xf32>
    tpu.vector_store %arg19[%c6_195, %c0_196, %c0_197], %747 {strides = array<i32>} : memref<8x8x4xf32, #tpu.memory_space<vmem>>, vector<1x8x4xf32>,
    %cst_198 = arith.constant dense<0.000000e+00> : vector<8x96xf32>
    %748 = tpu.matmul %36, %452, %cst_198 {dimension_numbers = #tpu.dot_dimension_numbers<[1], [0], [0], [1], [0, 0, 1, 1], [], []>} : vector<8x8xf32>, vector<8x96xf32>, vector<8x96xf32> -> vector<8x96xf32>
    %749 = vector.broadcast %454 : vector<1x96xf32> to vector<8x96xf32>
    %750 = arith.addf %748, %749 : vector<8x96xf32>
    %cst_199 = arith.constant dense<0.000000e+00> : vector<8x96xf32>
    %751 = tpu.matmul %738, %453, %cst_199 {dimension_numbers = #tpu.dot_dimension_numbers<[1], [0], [0], [1], [0, 0, 1, 1], [], []>} : vector<8x32xf32>, vector<32x96xf32>, vector<8x96xf32> -> vector<8x96xf32>
    %752 = vector.broadcast %455 : vector<1x96xf32> to vector<8x96xf32>
    %753 = arith.addf %751, %752 : vector<8x96xf32>
    %754 = vector.extract_strided_slice %750 {offsets = [0, 0], sizes = [8, 32], strides = [1, 1]} : vector<8x96xf32> to vector<8x32xf32>
    %755 = vector.extract_strided_slice %753 {offsets = [0, 0], sizes = [8, 32], strides = [1, 1]} : vector<8x96xf32> to vector<8x32xf32>
    %756 = arith.addf %754, %755 : vector<8x32xf32>
    %757 = arith.negf %756 : vector<8x32xf32>
    %758 = math.exp %757 : vector<8x32xf32>
    %cst_200 = arith.constant 1.000000e+00 : f32
    %759 = vector.broadcast %cst_200 : f32 to vector<8x32xf32>
    %760 = arith.addf %759, %758 : vector<8x32xf32>
    %761 = arith.divf %759, %760 : vector<8x32xf32>
    %762 = vector.extract_strided_slice %750 {offsets = [0, 32], sizes = [8, 32], strides = [1, 1]} : vector<8x96xf32> to vector<8x32xf32>
    %763 = vector.extract_strided_slice %753 {offsets = [0, 32], sizes = [8, 32], strides = [1, 1]} : vector<8x96xf32> to vector<8x32xf32>
    %764 = arith.addf %762, %763 : vector<8x32xf32>
    %765 = arith.negf %764 : vector<8x32xf32>
    %766 = math.exp %765 : vector<8x32xf32>
    %cst_201 = arith.constant 1.000000e+00 : f32
    %767 = vector.broadcast %cst_201 : f32 to vector<8x32xf32>
    %768 = arith.addf %767, %766 : vector<8x32xf32>
    %769 = arith.divf %767, %768 : vector<8x32xf32>
    %770 = vector.extract_strided_slice %750 {offsets = [0, 64], sizes = [8, 32], strides = [1, 1]} : vector<8x96xf32> to vector<8x32xf32>
    %771 = vector.extract_strided_slice %753 {offsets = [0, 64], sizes = [8, 32], strides = [1, 1]} : vector<8x96xf32> to vector<8x32xf32>
    %772 = arith.mulf %761, %771 : vector<8x32xf32>
    %773 = arith.addf %770, %772 : vector<8x32xf32>
    %774 = math.tanh %773 : vector<8x32xf32>
    %cst_202 = arith.constant 1.000000e+00 : f32
    %775 = vector.broadcast %cst_202 : f32 to vector<8x32xf32>
    %776 = arith.subf %775, %769 : vector<8x32xf32>
    %777 = arith.mulf %776, %774 : vector<8x32xf32>
    %778 = arith.mulf %769, %738 : vector<8x32xf32>
    %779 = arith.addf %777, %778 : vector<8x32xf32>
    %cst_203 = arith.constant dense<0.000000e+00> : vector<8x8xf32>
    %780 = tpu.matmul %779, %456, %cst_203 {dimension_numbers = #tpu.dot_dimension_numbers<[1], [0], [0], [1], [0, 0, 1, 1], [], []>} : vector<8x32xf32>, vector<32x8xf32>, vector<8x8xf32> -> vector<8x8xf32>
    %781 = vector.broadcast %457 : vector<1x8xf32> to vector<8x8xf32>
    %782 = arith.addf %780, %781 : vector<8x8xf32>
    %cst_204 = arith.constant dense<0.000000e+00> : vector<8x4xf32>
    %783 = tpu.matmul %782, %458, %cst_204 {dimension_numbers = #tpu.dot_dimension_numbers<[1], [0], [0], [1], [0, 0, 1, 1], [], []>} : vector<8x8xf32>, vector<8x4xf32>, vector<8x4xf32> -> vector<8x4xf32>
    %784 = vector.broadcast %459 : vector<1x4xf32> to vector<8x4xf32>
    %785 = arith.addf %783, %784 : vector<8x4xf32>
    %c7_205 = arith.constant 7 : index
    %c0_206 = arith.constant 0 : index
    %c0_207 = arith.constant 0 : index
    %786 = vector.load %arg19[%c7_205, %c0_206, %c0_207] : memref<8x8x4xf32, #tpu.memory_space<vmem>>, vector<1x8x4xf32>
    %787 = vector.shape_cast %786 : vector<1x8x4xf32> to vector<8x4xf32>
    %788 = vector.shape_cast %785 : vector<8x4xf32> to vector<1x8x4xf32>
    tpu.vector_store %arg19[%c7_205, %c0_206, %c0_207], %788 {strides = array<i32>} : memref<8x8x4xf32, #tpu.memory_space<vmem>>, vector<1x8x4xf32>,
    return
  }
}

</mosaic_0001>

<bundles_post_ra>
// kernel: dtcr_forward.3
= control target key start
LH: loop header
LB: loop body
LE: loop exit
PB: predicated region body
PF: predicated region fallthrough
CT: control target
= control target key end

     0   :  { %s1055_s0 = inlined_call_operand.vmem [shape: f32[8,32], index: 0, kind: input, shape index: {}]   ;;  %s1056_s1 = inlined_call_operand.vmem [shape: f32[8,3], index: 1, kind: input, shape index: {}]   ;;  %s1057_s2 = inlined_call_operand.vmem [shape: f32[32,128], index: 2, kind: input, shape index: {}]   ;;  %s1058_s3 = inlined_call_operand.vmem [shape: f32[1,128], index: 3, kind: input, shape index: {}]   ;;  %s1059_s4 = inlined_call_operand.vmem [shape: f32[128,128], index: 4, kind: input, shape index: {}]   ;;  %s1060_s5 = inlined_call_operand.vmem [shape: f32[1,128], index: 5, kind: input, shape index: {}]   ;;  %s1061_s6 = inlined_call_operand.vmem [shape: f32[128,128], index: 6, kind: input, shape index: {}]   ;;  %s1062_s7 = inlined_call_operand.vmem [shape: f32[1,128], index: 7, kind: input, shape index: {}]   ;;  %s1063_s8 = inlined_call_operand.vmem [shape: f32[8,8], index: 8, kind: output, shape index: {0}]   ;;  %s1064_s9 = inlined_call_operand.hbm [shape: f32[3,3], index: 9, kind: output, shape index: {1}]   ;;  %s1065_s10 = inlined_call_operand.vmem [shape: f32[8,128], index: 10, kind: output, shape index: {2}]  }
   0x1   :  { %v110_v0 = vld [vmem:[%s1056_s1] sm:$0xff] }
   0x2   :  { %v33_v1 = vld [vmem:[%s1055_s0] sm:$0xff] }
   0x3   :  { %16 = vsyncpa [#allocation3], 0  ;;  %111 = vxpose.xlu0.b32.start.end [1/1] (short) (narrow) %v110_v0, 8  ;;  %v826_v2 = vmov 0.0   ;;  %vm827_vm0 = vmmov 0   ;;  %vm34_vm1 = vcmask 261120  }
   0x4   :  { %649 = vmatprep.subr.mxu1 %v826_v2  ;;  %651 = vmatprep.mubr.msk.f32.mxu1 %vm827_vm0, %v826_v2  ;;  %v291_v3 = vld [vmem:[%s1057_s2] sm:$0xff]  ;;  %v292_v4 = vld [vmem:[%s1057_s2 + $0x8] sm:$0xff]  ;;  %v828_v6 = vmov 0.0|0.0   ;;  %v293_v7 = vld [vmem:[%s1057_s2 + $0x10] sm:$0xff]  ;;  %vm108_vm2 = vcmask 64512   ;;  %vm289_vm3 = vcmask 18432  }
   0x5   :  { %650 = vmatpush3.msra.mxu1 %v33_v1  ;;  %644 = vmatprep.subr.mxu0 %v826_v2  ;;  %v741_v5 = vpack.c.bf16 %v292_v4, %v291_v3  ;;  %v294_v8 = vld [vmem:[%s1057_s2 + $0x18] sm:$0xff]  ;;  %v373_v15 = vld [vmem:[%s1059_s4] sm:$0xff]  ;;  %v374_v16 = vld [vmem:[%s1059_s4 + $0x8] sm:$0xff]  ;;  %s829_s19 = smov [#allocation2]  }
   0x6   :  { %646 = vmatprep.mubr.msk.f32.mxu0 %vm827_vm0, %v826_v2  ;;  %645 = vmatpush3.xpose.msk.msra.mxu0 %vm34_vm1, %v33_v1  ;;  %v744_v9 = vpack.c.bf16 %v294_v8, %v293_v7  ;;  %v747_v19 = vpack.c.bf16 %v374_v16, %v373_v15  ;;  %v375_v20 = vld [vmem:[%s1059_s4 + $0x10] sm:$0xff]  ;;  %v376_v21 = vld [vmem:[%s1059_s4 + $0x18] sm:$0xff]  ;;  %v377_v23 = vld [vmem:[%s1059_s4 + $0x20] sm:$0xff]  ;;  %s575_s20 = sshll.u32 %s829_s19, 4  ;;  %s576_s20 = int_to_ptr.vmem [resolvable:$true] %s575_s20 }
   0x7   :  { %654 = vmatprep.subr.mxu1 %v826_v2  ;;  %740 = vmatprep.subr.bf16.mxu0 %v828_v6  ;;  %v750_v22 = vpack.c.bf16 %v376_v21, %v375_v20  ;;  %v378_v24 = vld [vmem:[%s1059_s4 + $0x28] sm:$0xff]  ;;  %v379_v26 = vld [vmem:[%s1059_s4 + $0x30] sm:$0xff]  ;;  %v380_v27 = vld [vmem:[%s1059_s4 + $0x38] sm:$0xff]  ;;  %s802_s0 = scalar_lea.vmem %s576_s20, 64  ;;  %p807_p1 = scmp.lt.s32.totalorder %s576_s20, %s576_s20 }
   0x8   :  { %v753_v25 = vpack.c.bf16 %v378_v24, %v377_v23  ;;  %v756_v28 = vpack.c.bf16 %v380_v27, %v379_v26  ;;  %v381_v29 = vld [vmem:[%s1059_s4 + $0x40] sm:$0xff]  ;;  %v382_v30 = vld [vmem:[%s1059_s4 + $0x48] sm:$0xff]  ;;  %v383_v32 = vld [vmem:[%s1059_s4 + $0x50] sm:$0xff]  ;;  %p803_p0 = scmp.ne.s32.totalorder %s576_s20, %s802_s0  ;;  %p808_p2 = scmp.lt.s32.totalorder %s802_s0, %s802_s0 }
   0x9   :  { %647 = vmatmul.mubr.msk.f32.vlgmr.msra.gmra.mrb[0].mxu0 %vm34_vm1, %v33_v1  ;;  %v759_v31 = vpack.c.bf16 %v382_v30, %v381_v29  ;;  %v384_v33 = vld [vmem:[%s1059_s4 + $0x58] sm:$0xff]  ;;  %v385_v35 = vld [vmem:[%s1059_s4 + $0x60] sm:$0xff]  ;;  %v386_v36 = vld [vmem:[%s1059_s4 + $0x68] sm:$0xff] }
   0xa   :  { %742 = vmatpush3.bf16.msra.mxu0 %v741_v5  ;;  %667 = vmatprep.mubr.msk.f32.mxu0 %vm827_vm0, %v826_v2  ;;  %v762_v34 = vpack.c.bf16 %v384_v33, %v383_v32  ;;  %v765_v37 = vpack.c.bf16 %v386_v36, %v385_v35  ;;  %v594_v38 = vld [vmem:[%s1058_s3] ss:$0 sm:$0xff]  ;;  %v387_v39 = vld [vmem:[%s1059_s4 + $0x70] sm:$0xff]  ;;  %v388_v40 = vld [vmem:[%s1059_s4 + $0x78] sm:$0xff]  ;;  %p809_p3 = por %p808_p2, %p807_p1 }
   0xb   :  { %743 = vmatprep.subr.bf16.mxu0 %v828_v6  ;;  %v768_v42 = vpack.c.bf16 %v388_v40, %v387_v39  ;;  %v467_v44 = vld [vmem:[%s1061_s6] sm:$0xff]  ;;  %v468_v45 = vld [vmem:[%s1061_s6 + $0x8] sm:$0xff]  ;;  %v469_v46 = vld [vmem:[%s1061_s6 + $0x10] sm:$0xff] }
   0xc   :  { %v771_v47 = vpack.c.bf16 %v468_v45, %v467_v44  ;;  %v470_v48 = vld [vmem:[%s1061_s6 + $0x18] sm:$0xff]  ;;  %v471_v50 = vld [vmem:[%s1061_s6 + $0x20] sm:$0xff]  ;;  %v472_v51 = vld [vmem:[%s1061_s6 + $0x28] sm:$0xff]  ;;  %p810_p4 = pnand %p809_p3, %p803_p0 }
   0xd   :  { %v774_v49 = vpack.c.bf16 %v470_v48, %v469_v46  ;;  %v777_v52 = vpack.c.bf16 %v472_v51, %v471_v50  ;;  %v473_v53 = vld [vmem:[%s1061_s6 + $0x30] sm:$0xff]  ;;  %v474_v54 = vld [vmem:[%s1061_s6 + $0x38] sm:$0xff]  ;;  %v475_v56 = vld [vmem:[%s1061_s6 + $0x40] sm:$0xff] }
   0xe   :  { %745 = vmatpush3.bf16.msra.mxu0 %v744_v9  ;;  %v780_v55 = vpack.c.bf16 %v474_v54, %v473_v53  ;;  %v476_v57 = vld [vmem:[%s1061_s6 + $0x48] sm:$0xff]  ;;  %v477_v59 = vld [vmem:[%s1061_s6 + $0x50] sm:$0xff]  ;;  %v478_v60 = vld [vmem:[%s1061_s6 + $0x58] sm:$0xff] }
   0xf   :  { %770 = vmatprep.subr.bf16.mxu0 %v828_v6  ;;  %v783_v58 = vpack.c.bf16 %v476_v57, %v475_v56  ;;  %v786_v61 = vpack.c.bf16 %v478_v60, %v477_v59  ;;  %v479_v62 = vld [vmem:[%s1061_s6 + $0x60] sm:$0xff]  ;;  %v480_v63 = vld [vmem:[%s1061_s6 + $0x68] sm:$0xff] }
  0x10   :  { %v789_v0 = vpack.c.bf16 %v480_v63, %v479_v62  ;;  %v596_v7 = vld [vmem:[%s1060_s5] ss:$0 sm:$0xff] }
  0x11   :  { %668 = vmatmul.mubr.msk.f32.vlgmr.msra.gmra.mrb[2].mxu0 %vm34_vm1, %v33_v1  ;;  %v481_v1 = vld [vmem:[%s1061_s6 + $0x70] sm:$0xff] }
  0x12   :  { %737 = vmatprep.mubr.msk.f32.mxu0 %vm827_vm0, %v826_v2  ;;  %772 = vmatpush3.bf16.msra.mxu0 %v771_v47 }
  0x13   :  { %773 = vmatprep.subr.bf16.mxu0 %v828_v6 }
  0x16   :  { %775 = vmatpush3.bf16.msra.mxu0 %v774_v49 }
  0x17   :  { %776 = vmatprep.subr.bf16.mxu0 %v828_v6 }
  0x1a   :  { %778 = vmatpush3.bf16.msra.mxu0 %v777_v52 }
  0x1b   :  { %779 = vmatprep.subr.bf16.mxu0 %v828_v6 }
  0x1e   :  { %781 = vmatpush3.bf16.msra.mxu0 %v780_v55 }
  0x1f   :  { %782 = vmatprep.subr.bf16.mxu0 %v828_v6 }
  0x22   :  { %784 = vmatpush3.bf16.msra.mxu0 %v783_v58 }
  0x23   :  { %785 = vmatprep.subr.bf16.mxu0 %v828_v6 }
  0x26   :  { %787 = vmatpush3.bf16.msra.mxu0 %v786_v61 }
  0x27   :  { %788 = vmatprep.subr.bf16.mxu0 %v828_v6 }
  0x2a   :  { %790 = vmatpush3.bf16.msra.mxu0 %v789_v0 }
  0x2b   :  { %791 = vmatprep.subr.bf16.mxu0 %v828_v6 }
  0x83   :  { %v127_v10 = vpop.trf.xlu0 }
  0x84   :  { %652 = vmatmul.mubr.msk.f32.vlgmr.msra.gmra.mrb[0].mxu1 %vm108_vm2, %v127_v10 }
  0x85   :  { %656 = vmatprep.mubr.msk.f32.mxu1 %vm827_vm0, %v826_v2 }
  0xdc   :  { %v104_v11 = vpop.f32.mrb[0].mxu0 }
  0xdd   :  { %109 = vst.msk [vmem:[%s1063_s8] sm:$0xff] %vm108_vm2, %v104_v11  ;;  %v648_v12 = vpop.f32.mrb[1].mxu0 }
  0xe4   :  { %v368_v13 = vpop.f32.mrb[2].mxu0 }
  0xe5   :  { %v669_v14 = vpop.f32.mrb[3].mxu0  ;;  %v369_v41 = vadd.f32 %v594_v38, %v368_v13 }
  0xe7   :  { %v372_v43 = vmax.f32 %v369_v41, 0.0 }
 0x157   :  { %v212_v17 = vpop.f32.mrb[0].mxu1 }
 0x158   :  { %v653_v18 = vpop.f32.mrb[1].mxu1  ;;  %655 = vmatpush3.xpose.msk.msra.mxu1 %vm34_vm1, %v212_v17 }
 0x159   :  { %746 = vmatprep.subr.bf16.mxu1 %v828_v6 }
 0x15b   :  { %657 = vmatmul.mubr.msk.f32.vlgmr.msra.gmra.mrb[2].mxu1 %vm34_vm1, %v212_v17 }
 0x15c   :  { %748 = vmatpush3.bf16.msra.mxu1 %v747_v19  ;;  %702 = vmatprep.mubr.msk.f32.mxu1 %vm827_vm0, %v826_v2  ;;  %v482_v2 = vld [vmem:[%s1061_s6 + $0x78] sm:$0xff] }
 0x15d   :  { %749 = vmatprep.subr.bf16.mxu1 %v828_v6  ;;  %v792_v3 = vpack.c.bf16 %v482_v2, %v481_v1 }
 0x15f   :  { %793 = vmatpush3.bf16.msra.mxu0 %v792_v3 }
 0x160   :  { %751 = vmatpush3.bf16.msra.mxu1 %v750_v22 }
 0x161   :  { %752 = vmatprep.subr.bf16.mxu1 %v828_v6 }
 0x164   :  { %754 = vmatpush3.bf16.msra.mxu1 %v753_v25 }
 0x165   :  { %755 = vmatprep.subr.bf16.mxu1 %v828_v6 }
 0x168   :  { %757 = vmatpush3.bf16.msra.mxu1 %v756_v28 }
 0x169   :  { %758 = vmatprep.subr.bf16.mxu1 %v828_v6 }
 0x16c   :  { %760 = vmatpush3.bf16.msra.mxu1 %v759_v31 }
 0x16d   :  { %761 = vmatprep.subr.bf16.mxu1 %v828_v6 }
 0x170   :  { %763 = vmatpush3.bf16.msra.mxu1 %v762_v34 }
 0x171   :  { %764 = vmatprep.subr.bf16.mxu1 %v828_v6 }
 0x174   :  { %766 = vmatpush3.bf16.msra.mxu1 %v765_v37 }
 0x175   :  { %767 = vmatprep.subr.bf16.mxu1 %v828_v6 }
 0x178   :  { %769 = vmatpush3.bf16.msra.mxu1 %v768_v42 }
 0x17b   :  { %703 = vmatmul.mubr.f32.vlgmr.msra.gmra.mrb[4].mxu1 %v372_v43 }
 0x22e   :  { %v285_v4 = vpop.f32.mrb[2].mxu1 }
 0x22f   :  { %290 = vst.msk [vmem:[#allocation2] sm:$0x7] %vm289_vm3, %v285_v4  ;;  %v658_v5 = vpop.f32.mrb[3].mxu1 }
 0x24e   :  { %v462_v8 = vpop.f32.mrb[4].mxu1 }
 0x24f   :  { %v463_v6 = vadd.f32 %v596_v7, %v462_v8  ;;  %v704_v9 = vpop.f32.mrb[5].mxu1 }
 0x251   :  { %v466_v10 = vmax.f32 %v463_v6, 0.0 }
 0x253   :  { %738 = vmatmul.mubr.f32.vlgmr.msra.gmra.mrb[4].mxu0 %v466_v10 }
 0x254   :  { %813 = shalt.err (!%p810_p4)
}
 0x255   :  { %s814_s21 = scalar_lea.hbm %s1064_s9, 64 }
 0x256   :  { %p815_p5 = scmp.ne.s32.totalorder %s1064_s9, %s814_s21  ;;  %p818_p6 = scmp.lt.u32.totalorder %s814_s21, %s1064_s9 }
 0x258   :  { %p820_p7 = pnand %p818_p6, %p815_p5 }
 0x25a   :  { %823 = shalt.err (!%p820_p7)
}
 0x25b   :  { %578 = dma.vmem_to_hbm [thread:$0]  %s576_s20, 64, %s1064_s9, [#allocation3]   ;;  %v597_v11 = vld [vmem:[%s1062_s7] ss:$0 sm:$0xff] }
 0x326   :  { %v556_v12 = vpop.f32.mrb[4].mxu0 }
 0x327   :  { %v557_v13 = vadd.f32 %v597_v11, %v556_v12  ;;  %v739_v14 = vpop.f32.mrb[5].mxu0 }
 0x329   :  { %v598_v15 = vmul.f32 -1.442695, %v557_v13 }
 0x32b   :  { %798 = vpow2.f32 %v598_v15 }
 0x335   :  { %v799_v16 = vpop.eup %798 }
 0x336   :  { %v563_v17 = vadd.f32 1.0, %v799_v16 }
 0x338   :  { %800 = vrcp.f32 %v563_v17 }
 0x342   :  { %v801_v18 = vpop.eup %800 }
 0x343   :  { %566 = vst [vmem:[%s1065_s10] sm:$0xff] %v801_v18 }
 0x344   :  { %824 = dma.done.wait [#allocation3], 64  }
 0x345   :  { %825 = vsyncadd [#allocation3], 4294967232 }
 0x346   :  { %588 = vsyncpa [#allocation3], 1 }

// kernel: dtcr_forward.2
= control target key start
LH: loop header
LB: loop body
LE: loop exit
PB: predicated region body
PF: predicated region fallthrough
CT: control target
= control target key end

     0   :  { %vm77_vm0 = vcmask 1043456   ;;  %vm73_vm1 = vcmask 31744   ;;  %v6850_v0 = vmov 0.0   ;;  %vm6851_vm2 = vmmov 0   ;;  %s6852_s22 = smov 112   ;;  %s6859_s24 = smov 96   ;;  %s7809_s1 = inlined_call_operand.vmem [shape: f32[4,8], index: 1, kind: input, shape index: {}]   ;;  %s7810_s0 = inlined_call_operand.vmem [shape: f32[8,8,4], index: 0, kind: input, shape index: {}]   ;;  %s7811_s4 = inlined_call_operand.vmem [shape: f32[8,24], index: 4, kind: input, shape index: {}]   ;;  %s7812_s3 = inlined_call_operand.vmem [shape: f32[8,24], index: 3, kind: input, shape index: {}]   ;;  %s7813_s2 = inlined_call_operand.vmem [shape: f32[1,8], index: 2, kind: input, shape index: {}]   ;;  %s7814_s6 = inlined_call_operand.vmem [shape: f32[1,24], index: 6, kind: input, shape index: {}]   ;;  %s7815_s5 = inlined_call_operand.vmem [shape: f32[1,24], index: 5, kind: input, shape index: {}]   ;;  %s7816_s7 = inlined_call_operand.vmem [shape: f32[8,24], index: 7, kind: input, shape index: {}]   ;;  %s7817_s8 = inlined_call_operand.vmem [shape: f32[8,24], index: 8, kind: input, shape index: {}]   ;;  %s7818_s10 = inlined_call_operand.vmem [shape: f32[1,24], index: 10, kind: input, shape index: {}]   ;;  %s7819_s9 = inlined_call_operand.vmem [shape: f32[1,24], index: 9, kind: input, shape index: {}]   ;;  %s7820_s11 = inlined_call_operand.vmem [shape: f32[8,96], index: 11, kind: input, shape index: {}]   ;;  %s7821_s20 = inlined_call_operand.vmem [shape: f32[8,32], index: 20, kind: output, shape index: {1}]   ;;  %s7822_s12 = inlined_call_operand.vmem [shape: f32[32,96], index: 12, kind: input, shape index: {}]   ;;  %s7823_s14 = inlined_call_operand.vmem [shape: f32[1,96], index: 14, kind: input, shape index: {}]   ;;  %s7824_s13 = inlined_call_operand.vmem [shape: f32[1,96], index: 13, kind: input, shape index: {}]   ;;  %s7825_s15 = inlined_call_operand.vmem [shape: f32[32,8], index: 15, kind: input, shape index: {}]   ;;  %s7826_s17 = inlined_call_operand.vmem [shape: f32[8,4], index: 17, kind: input, shape index: {}]   ;;  %s7827_s16 = inlined_call_operand.vmem [shape: f32[1,8], index: 16, kind: input, shape index: {}]   ;;  %s7828_s18 = inlined_call_operand.vmem [shape: f32[1,4], index: 18, kind: input, shape index: {}]   ;;  %s7829_s19 = inlined_call_operand.vmem [shape: f32[8,8,4], index: 19, kind: output, shape index: {0}]  }
   0x1   :  { %7831 = sst [smem:[#allocation2_spill]] %s7809_s1  ;;  %6145 = vmatprep.subr.mxu1 %v6850_v0  ;;  %6147 = vmatprep.mubr.msk.f32.mxu1 %vm6851_vm2, %v6850_v0  ;;  %vm686_vm3 = vcmask 64512   ;;  %v7065_v31 = vld [vmem:[%s7814_s6] ss:$0 sm:$0xff]  ;;  %vm3275_vm4 = vcmask 195712   ;;  %vm3277_vm5 = vcmask 130112  }
   0x2   :  { %7832 = sst [smem:[#allocation3_spill]] %s7810_s0  ;;  %s7836_s23 = sld [smem:[#allocation2_spill]]  ;;  %6140 = vmatprep.subr.mxu0 %v6850_v0  ;;  %6142 = vmatprep.mubr.msk.f32.mxu0 %vm6851_vm2, %v6850_v0  ;;  %v5820_v42 = vld [vmem:[%s7815_s5] ss:$0 sm:$0xff]  ;;  %vm3283_vm6 = vcmask 261312   ;;  %vm3382_vm7 = vcmask 261120  }
   0x3   :  { %7833 = sst [smem:[#allocation4_spill]] %s7811_s4  ;;  %s7837_s25 = sld [smem:[#allocation3_spill]] }
   0x4   :  { %7834 = sst [smem:[#allocation5_spill]] %s7812_s3  ;;  %s7838_s3 = sld [smem:[#allocation4_spill]] }
   0x5   :  { %7835 = sst [smem:[#allocation6_spill]] %s7813_s2  ;;  %s7839_s2 = sld [smem:[#allocation5_spill]] }
   0x6   :  { %s7840_s1 = sld [smem:[#allocation6_spill]]  ;;  %s6853_s5 = smov 16  }
   0x7   :  { %s6854_s4 = smov 120  }
   0x8   :  { %v64_v1 = vld [vmem:[%s7836_s23] sm:$0xf] }
   0x9   :  { %v5799_v2 = vld [vmem:[%s7837_s25 + $0x8] sm:$0xff]  ;;  %6146 = vmatpush3.msk.msra.mxu1 %vm77_vm0, %v64_v1  ;;  %v66_v3 = vld [vmem:[%s7837_s25] sm:$0xff]  ;;  %6141 = vmatpush3.msk.msra.mxu0 %vm77_vm0, %v64_v1  ;;  %v5805_v4 = vld [vmem:[%s7837_s25 + $0x18] sm:$0xff] }
   0xa   :  { %6148 = vmatmul.mubr.msk.f32.vlgmr.msra.gmra.mrb[0].mxu1 %vm73_vm1, %v5799_v2  ;;  %6155 = vmatprep.subr.mxu1 %v6850_v0  ;;  %v5802_v5 = vld [vmem:[%s7837_s25 + $0x10] sm:$0xff]  ;;  %v5811_v6 = vld [vmem:[%s7837_s25 + $0x28] sm:$0xff]  ;;  %v5808_v7 = vld [vmem:[%s7837_s25 + $0x20] sm:$0xff] }
   0xb   :  { %6156 = vmatpush3.msk.msra.mxu1 %vm77_vm0, %v64_v1  ;;  %6157 = vmatprep.mubr.msk.f32.mxu1 %vm6851_vm2, %v6850_v0  ;;  %v5817_v8 = vld [vmem:[%s7837_s25 + $0x38] sm:$0xff]  ;;  %v7025_v9 = vld [vmem:[%s7838_s3] sm:$0xff]  ;;  %v5814_v10 = vld [vmem:[%s7837_s25 + $0x30] sm:$0xff] }
   0xc   :  { %6143 = vmatmul.mubr.msk.f32.vlgmr.msra.gmra.mrb[0].mxu0 %vm73_vm1, %v66_v3  ;;  %6165 = vmatprep.subr.mxu1 %v6850_v0  ;;  %v7047_v11 = vld [vmem:[%s7839_s2] sm:$0xff] }
   0xd   :  { %6150 = vmatprep.subr.mxu0 %v6850_v0  ;;  %6152 = vmatprep.mubr.msk.f32.mxu0 %vm6851_vm2, %v6850_v0  ;;  %v5796_v14 = vld [vmem:[%s7840_s1] ss:$0 sm:$0xff] }
   0xe   :  { %6158 = vmatmul.mubr.msk.f32.vlgmr.msra.gmra.mrb[2].mxu1 %vm73_vm1, %v5805_v4  ;;  %6151 = vmatpush3.msk.msra.mxu0 %vm77_vm0, %v64_v1 }
   0xf   :  { %6166 = vmatpush3.msk.msra.mxu1 %vm77_vm0, %v64_v1  ;;  %6167 = vmatprep.mubr.msk.f32.mxu1 %vm6851_vm2, %v6850_v0 }
  0x10   :  { %6153 = vmatmul.mubr.msk.f32.vlgmr.msra.gmra.mrb[2].mxu0 %vm73_vm1, %v5802_v5  ;;  %6175 = vmatprep.subr.mxu1 %v6850_v0 }
  0x11   :  { %6160 = vmatprep.subr.mxu0 %v6850_v0  ;;  %6162 = vmatprep.mubr.msk.f32.mxu0 %vm6851_vm2, %v6850_v0 }
  0x12   :  { %6168 = vmatmul.mubr.msk.f32.vlgmr.msra.gmra.mrb[4].mxu1 %vm73_vm1, %v5811_v6  ;;  %6161 = vmatpush3.msk.msra.mxu0 %vm77_vm0, %v64_v1 }
  0x13   :  { %6176 = vmatpush3.msk.msra.mxu1 %vm77_vm0, %v64_v1  ;;  %6177 = vmatprep.mubr.msk.f32.mxu1 %vm6851_vm2, %v6850_v0 }
  0x14   :  { %6163 = vmatmul.mubr.msk.f32.vlgmr.msra.gmra.mrb[4].mxu0 %vm73_vm1, %v5808_v7  ;;  %6170 = vmatprep.subr.mxu0 %v6850_v0 }
  0x15   :  { %6171 = vmatpush3.msk.msra.mxu0 %vm77_vm0, %v64_v1  ;;  %6172 = vmatprep.mubr.msk.f32.mxu0 %vm6851_vm2, %v6850_v0 }
  0x16   :  { %6178 = vmatmul.mubr.msk.f32.vlgmr.msra.gmra.mrb[6].mxu1 %vm73_vm1, %v5817_v8  ;;  %6185 = vmatprep.subr.mxu1 %v7025_v9 }
  0x17   :  { %6186 = vmatpush3.msra.mxu1 %v7025_v9  ;;  %6187 = vmatprep.mubr.f32.mxu1 %v6850_v0 }
  0x18   :  { %6173 = vmatmul.mubr.msk.f32.vlgmr.msra.gmra.mrb[6].mxu0 %vm73_vm1, %v5814_v10  ;;  %6195 = vmatprep.subr.mxu1 %v7025_v9 }
  0x19   :  { %6180 = vmatprep.subr.mxu0 %v7047_v11 }
  0x1a   :  { %6188 = vmatmul.mubr.f32.vlgmr.msra.gmra.mrb[8].mxu1 %v6850_v0  ;;  %6181 = vmatpush3.msra.mxu0 %v7047_v11 }
  0x1b   :  { %6196 = vmatpush3.msra.mxu1 %v7025_v9  ;;  %6190 = vmatprep.subr.mxu0 %v7047_v11 }
  0x1c   :  { %6205 = vmatprep.subr.mxu1 %v7025_v9 }
  0xdd   :  { %v222_v12 = vpop.f32.mrb[0].mxu1 }
  0xde   :  { %v6149_v13 = vpop.f32.mrb[1].mxu1  ;;  %v7059_v29 = vadd.f32 %v5796_v14, %v222_v12 }
  0xdf   :  { %v147_v15 = vpop.f32.mrb[0].mxu0 }
  0xe0   :  { %v7055_v17 = vadd.f32 %v5796_v14, %v147_v15  ;;  %v6144_v18 = vpop.f32.mrb[1].mxu0 }
  0xe1   :  { %v372_v16 = vpop.f32.mrb[2].mxu1 }
  0xe2   :  { %v6159_v19 = vpop.f32.mrb[3].mxu1  ;;  %6182 = vmatprep.mubr.msk.f32.mxu0 %vm686_vm3, %v7055_v17  ;;  %v7086_v40 = vadd.f32 %v5796_v14, %v372_v16 }
  0xe3   :  { %v297_v20 = vpop.f32.mrb[2].mxu0 }
  0xe4   :  { %v6154_v22 = vpop.f32.mrb[3].mxu0  ;;  %v7067_v32 = vadd.f32 %v5796_v14, %v297_v20 }
  0xe5   :  { %v522_v21 = vpop.f32.mrb[4].mxu1 }
  0xe6   :  { %v6169_v23 = vpop.f32.mrb[5].mxu1  ;;  %v7081_v38 = vadd.f32 %v5796_v14, %v522_v21 }
  0xe7   :  { %v447_v24 = vpop.f32.mrb[4].mxu0 }
  0xe8   :  { %v6164_v26 = vpop.f32.mrb[5].mxu0  ;;  %v7088_v41 = vadd.f32 %v5796_v14, %v447_v24 }
  0xe9   :  { %v672_v25 = vpop.f32.mrb[6].mxu1 }
  0xea   :  { %v673_v27 = vadd.f32 %v5796_v14, %v672_v25  ;;  %v6179_v28 = vpop.f32.mrb[7].mxu1 }
  0xeb   :  { %v597_v30 = vpop.f32.mrb[6].mxu0 }
  0xec   :  { %6183 = vmatmul.mubr.msk.f32.vlgmr.msra.gmra.mrb[8].mxu0 %vm686_vm3, %v673_v27  ;;  %v7069_v33 = vadd.f32 %v5796_v14, %v597_v30  ;;  %v6174_v35 = vpop.f32.mrb[7].mxu0 }
  0xed   :  { %6192 = vmatprep.mubr.msk.f32.mxu0 %vm686_vm3, %v7059_v29  ;;  %6191 = vmatpush3.msra.mxu0 %v7047_v11  ;;  %v6189_v34 = vpop.f32.mrb[8].mxu1 }
  0xee   :  { %6200 = vmatprep.subr.mxu0 %v7047_v11  ;;  %v843_v36 = vpop.f32.mrb[9].mxu1  ;;  %v849_v39 = vadd.f32 %v6189_v34, %v7065_v31 }
  0xef   :  { %v844_v37 = vadd.f32 %v7065_v31, %v843_v36 }
  0xf0   :  { %6193 = vmatmul.mubr.msk.f32.vlgmr.msra.gmra.mrb[10].mxu0 %vm686_vm3, %v7069_v33 }
  0xf1   :  { %6201 = vmatpush3.msra.mxu0 %v7047_v11  ;;  %6202 = vmatprep.mubr.msk.f32.mxu0 %vm686_vm3, %v7067_v32 }
  0xf2   :  { %6210 = vmatprep.subr.mxu0 %v7047_v11  ;;  %868 = vrot.lane.b32.xlu0 %v844_v37, %s6852_s22 }
  0xf4   :  { %6203 = vmatmul.mubr.msk.f32.vlgmr.msra.gmra.mrb[12].mxu0 %vm686_vm3, %v7081_v38 }
  0xf5   :  { %6212 = vmatprep.mubr.msk.f32.mxu0 %vm686_vm3, %v7086_v40  ;;  %6211 = vmatpush3.msra.mxu0 %v7047_v11 }
  0xf6   :  { %6220 = vmatprep.subr.mxu0 %v7047_v11  ;;  %870 = vrot.lane.b32.xlu0 %v849_v39, %s6852_s22 }
  0xf8   :  { %6213 = vmatmul.mubr.msk.f32.vlgmr.msra.gmra.mrb[14].mxu0 %vm686_vm3, %v7088_v41 }
  0xf9   :  { %6221 = vmatpush3.msra.mxu0 %v7047_v11  ;;  %6222 = vmatprep.mubr.msk.f32.mxu0 %vm686_vm3, %v7088_v41 }
  0xfa   :  { %6230 = vmatprep.subr.mxu0 %v7047_v11 }
  0xfc   :  { %6223 = vmatmul.mubr.msk.f32.vlgmr.msra.gmra.mrb[16].mxu0 %vm686_vm3, %v7086_v40 }
  0xfd   :  { %6232 = vmatprep.mubr.msk.f32.mxu0 %vm686_vm3, %v7081_v38  ;;  %6231 = vmatpush3.msra.mxu0 %v7047_v11 }
  0xfe   :  { %6240 = vmatprep.subr.mxu0 %v7047_v11 }
 0x100   :  { %6233 = vmatmul.mubr.msk.f32.vlgmr.msra.gmra.mrb[18].mxu0 %vm686_vm3, %v7067_v32 }
 0x101   :  { %6241 = vmatpush3.msra.mxu0 %v7047_v11  ;;  %6242 = vmatprep.mubr.msk.f32.mxu0 %vm686_vm3, %v7069_v33 }
 0x102   :  { %6250 = vmatprep.subr.mxu0 %v7047_v11 }
 0x104   :  { %6243 = vmatmul.mubr.msk.f32.vlgmr.msra.gmra.mrb[20].mxu0 %vm686_vm3, %v7059_v29 }
 0x105   :  { %6252 = vmatprep.mubr.msk.f32.mxu0 %vm686_vm3, %v673_v27  ;;  %6251 = vmatpush3.msra.mxu0 %v7047_v11 }
 0x108   :  { %6253 = vmatmul.mubr.msk.f32.vlgmr.msra.gmra.mrb[22].mxu0 %vm686_vm3, %v7055_v17 }
 0x164   :  { %v869_v18 = vpop.permute.xlu0 %868 }
 0x168   :  { %v871_v26 = vpop.permute.xlu0 %870 }
 0x1bf   :  { %v6184_v43 = vpop.f32.mrb[8].mxu0 }
 0x1c0   :  { %v765_v44 = vadd.f32 %v6184_v43, %v5820_v42  ;;  %v759_v45 = vpop.f32.mrb[9].mxu0 }
 0x1c1   :  { %v760_v46 = vadd.f32 %v5820_v42, %v759_v45 }
 0x1c2   :  { %v853_v47 = vadd.f32 %v849_v39, %v765_v44 }
 0x1c3   :  { %v852_v48 = vadd.f32 %v844_v37, %v760_v46  ;;  %v6194_v49 = vpop.f32.mrb[10].mxu0 }
 0x1c4   :  { %v5825_v50 = vmul.f32 -1.442695, %v853_v47  ;;  %v7124_v51 = vadd.f32 %v6194_v49, %v5820_v42  ;;  %v976_v52 = vpop.f32.mrb[11].mxu0 }
 0x1c5   :  { %v5824_v53 = vmul.f32 -1.442695, %v852_v48  ;;  %v7126_v54 = vadd.f32 %v5820_v42, %v976_v52 }
 0x1c6   :  { %6657 = vpow2.f32 %v5825_v50 }
 0x1c7   :  { %6659 = vpow2.f32 %v5824_v53  ;;  %v6204_v55 = vpop.f32.mrb[12].mxu0 }
 0x1c8   :  { %v7128_v56 = vadd.f32 %v6204_v55, %v5820_v42  ;;  %v1194_v57 = vpop.f32.mrb[13].mxu0 }
 0x1c9   :  { %v7130_v58 = vadd.f32 %v5820_v42, %v1194_v57 }
 0x1cb   :  { %v6214_v59 = vpop.f32.mrb[14].mxu0 }
 0x1cc   :  { %v7132_v60 = vadd.f32 %v6214_v59, %v5820_v42  ;;  %v1412_v61 = vpop.f32.mrb[15].mxu0 }
 0x1cd   :  { %v7134_v62 = vadd.f32 %v5820_v42, %v1412_v61 }
 0x1cf   :  { %v6224_v63 = vpop.f32.mrb[16].mxu0 }
 0x1d0   :  { %v6658_v1 = vpop.eup %6657  ;;  %v7136_v2 = vadd.f32 %v6224_v63, %v5820_v42  ;;  %v1624_v3 = vpop.f32.mrb[17].mxu0 }
 0x1d1   :  { %v6660_v4 = vpop.eup %6659  ;;  %v7138_v5 = vadd.f32 %v5820_v42, %v1624_v3  ;;  %v861_v6 = vadd.f32 1.0, %v6658_v1 }
 0x1d2   :  { %v860_v7 = vadd.f32 1.0, %v6660_v4 }
 0x1d3   :  { %v6234_v8 = vpop.f32.mrb[18].mxu0 }
 0x1d4   :  { %6661 = vrcp.f32 %v860_v7  ;;  %v7140_v10 = vadd.f32 %v6234_v8, %v5820_v42  ;;  %v1836_v11 = vpop.f32.mrb[19].mxu0 }
 0x1d5   :  { %v7142_v12 = vadd.f32 %v5820_v42, %v1836_v11  ;;  %6663 = vrcp.f32 %v861_v6 }
 0x1d7   :  { %v6244_v13 = vpop.f32.mrb[20].mxu0 }
 0x1d8   :  { %v7144_v14 = vadd.f32 %v6244_v13, %v5820_v42  ;;  %v2048_v15 = vpop.f32.mrb[21].mxu0 }
 0x1d9   :  { %v7146_v16 = vadd.f32 %v5820_v42, %v2048_v15 }
 0x1db   :  { %v6254_v19 = vpop.f32.mrb[22].mxu0 }
 0x1dc   :  { %v7148_v20 = vadd.f32 %v6254_v19, %v5820_v42  ;;  %v2260_v21 = vpop.f32.mrb[23].mxu0 }
 0x1dd   :  { %v7150_v22 = vadd.f32 %v5820_v42, %v2260_v21 }
 0x1de   :  { %v6662_v23 = vpop.eup %6661 }
 0x1df   :  { %v874_v24 = vmul.f32 %v6662_v23, %v869_v18  ;;  %v6664_v25 = vpop.eup %6663  ;;  %v888_v39 = vsub.f32 1.0, %v6662_v23  ;;  %v900_v43 = vmul.f32 0.0, %v6662_v23 }
 0x1e0   :  { %v875_v27 = vmul.f32 %v6664_v25, %v871_v26  ;;  %v889_v48 = vsub.f32 1.0, %v6664_v25  ;;  %v901_v50 = vmul.f32 0.0, %v6664_v25 }
 0x1e1   :  { %878 = vrot.lane.b32.xlu1 %v874_v24, %s6853_s5 }
 0x1e5   :  { %880 = vrot.lane.b32.xlu1 %v875_v27, %s6853_s5 }
 0x253   :  { %v879_v28 = vpop.permute.xlu1 %878 }
 0x254   :  { %v884_v30 = vadd.f32 %v879_v28, %v760_v46 }
 0x256   :  { %6665 = vtanh.f32 %v884_v30 }
 0x257   :  { %v881_v34 = vpop.permute.xlu1 %880 }
 0x258   :  { %v885_v35 = vadd.f32 %v881_v34, %v765_v44  ;;  %v7177_v34 = vld [vmem:[%s7816_s7] sm:$0xff] }
 0x259   :  { %6260 = vmatprep.subr.mxu0 %v7177_v34 }
 0x25a   :  { %6667 = vtanh.f32 %v885_v35  ;;  %6261 = vmatpush3.msra.mxu0 %v7177_v34 }
 0x25b   :  { %6270 = vmatprep.subr.mxu0 %v7177_v34 }
 0x260   :  { %v6666_v36 = vpop.eup %6665 }
 0x261   :  { %892 = vrot.lane.b32.xlu0 %v6666_v36, %s6854_s4 }
 0x264   :  { %v6668_v37 = vpop.eup %6667 }
 0x265   :  { %894 = vrot.lane.b32.xlu1 %v6668_v37, %s6854_s4 }
 0x2d3   :  { %v893_v42 = vpop.permute.xlu0 %892 }
 0x2d4   :  { %v898_v45 = vmul.f32 %v893_v42, %v888_v39 }
 0x2d6   :  { %v902_v47 = vadd.f32 %v900_v43, %v898_v45 }
 0x2d7   :  { %v895_v49 = vpop.permute.xlu1 %894 }
 0x2d8   :  { %v899_v46 = vmul.f32 %v895_v49, %v889_v48  ;;  %987 = vrot.lane.b32.xlu0 %v902_v47, %s6854_s4 }
 0x2da   :  { %v903_v44 = vadd.f32 %v901_v50, %v899_v46 }
 0x2dc   :  { %989 = vrot.lane.b32.xlu1 %v903_v44, %s6854_s4 }
 0x34a   :  { %v988_v52 = vpop.permute.xlu0 %987 }
 0x34b   :  { %6197 = vmatprep.mubr.msk.f32.mxu1 %vm686_vm3, %v988_v52 }
 0x34e   :  { %v990_v53 = vpop.permute.xlu1 %989 }
 0x34f   :  { %6198 = vmatmul.mubr.msk.f32.vlgmr.msra.gmra.mrb[10].mxu1 %vm686_vm3, %v990_v53 }
 0x350   :  { %6206 = vmatpush3.msra.mxu1 %v7025_v9 }
 0x351   :  { %6215 = vmatprep.subr.mxu1 %v7025_v9 }
 0x422   :  { %v6199_v55 = vpop.f32.mrb[10].mxu1 }
 0x423   :  { %v1067_v57 = vadd.f32 %v6199_v55, %v7065_v31  ;;  %v1061_v59 = vpop.f32.mrb[11].mxu1 }
 0x424   :  { %v1062_v61 = vadd.f32 %v7065_v31, %v1061_v59 }
 0x425   :  { %1088 = vrot.lane.b32.xlu1 %v1067_v57, %s6852_s22  ;;  %v1071_v63 = vadd.f32 %v1067_v57, %v7124_v51 }
 0x426   :  { %1086 = vrot.lane.b32.xlu0 %v1062_v61, %s6852_s22  ;;  %v1070_v1 = vadd.f32 %v1062_v61, %v7126_v54 }
 0x427   :  { %v5831_v3 = vmul.f32 -1.442695, %v1071_v63 }
 0x428   :  { %v5830_v4 = vmul.f32 -1.442695, %v1070_v1 }
 0x429   :  { %6669 = vpow2.f32 %v5831_v3 }
 0x42a   :  { %6671 = vpow2.f32 %v5830_v4 }
 0x433   :  { %v6670_v6 = vpop.eup %6669 }
 0x434   :  { %v6672_v7 = vpop.eup %6671  ;;  %v1079_v8 = vadd.f32 1.0, %v6670_v6 }
 0x435   :  { %v1078_v11 = vadd.f32 1.0, %v6672_v7 }
 0x436   :  { %6673 = vrcp.f32 %v1079_v8 }
 0x437   :  { %6675 = vrcp.f32 %v1078_v11 }
 0x440   :  { %v6674_v13 = vpop.eup %6673 }
 0x441   :  { %v6676_v18 = vpop.eup %6675  ;;  %v1119_v36 = vmul.f32 %v6674_v13, %v903_v44 }
 0x442   :  { %v1106_v35 = vsub.f32 1.0, %v6676_v18  ;;  %v1118_v42 = vmul.f32 %v6676_v18, %v902_v47 }
 0x497   :  { %v1089_v15 = vpop.permute.xlu1 %1088 }
 0x498   :  { %v1093_v19 = vmul.f32 %v6674_v13, %v1089_v15  ;;  %v1087_v21 = vpop.permute.xlu0 %1086 }
 0x499   :  { %v1092_v23 = vmul.f32 %v6676_v18, %v1087_v21 }
 0x49a   :  { %1098 = vrot.lane.b32.xlu1 %v1093_v19, %s6853_s5 }
 0x49b   :  { %1096 = vrot.lane.b32.xlu0 %v1092_v23, %s6853_s5 }
 0x50c   :  { %v1099_v24 = vpop.permute.xlu1 %1098 }
 0x50d   :  { %v1103_v25 = vadd.f32 %v1099_v24, %v7124_v51  ;;  %v1097_v26 = vpop.permute.xlu0 %1096  ;;  %v1107_v51 = vsub.f32 1.0, %v6674_v13 }
 0x50e   :  { %v1102_v27 = vadd.f32 %v1097_v26, %v7126_v54 }
 0x50f   :  { %6677 = vtanh.f32 %v1103_v25 }
 0x510   :  { %6679 = vtanh.f32 %v1102_v27 }
 0x519   :  { %v6678_v28 = vpop.eup %6677 }
 0x51a   :  { %v6680_v30 = vpop.eup %6679  ;;  %1112 = vrot.lane.b32.xlu1 %v6678_v28, %s6854_s4 }
 0x51b   :  { %1110 = vrot.lane.b32.xlu0 %v6680_v30, %s6854_s4 }
 0x58c   :  { %v1113_v54 = vpop.permute.xlu1 %1112 }
 0x58d   :  { %v1117_v37 = vmul.f32 %v1113_v54, %v1107_v51  ;;  %v1111_v39 = vpop.permute.xlu0 %1110 }
 0x58e   :  { %v1116_v43 = vmul.f32 %v1111_v39, %v1106_v35 }
 0x58f   :  { %v1121_v45 = vadd.f32 %v1119_v36, %v1117_v37 }
 0x590   :  { %v1120_v48 = vadd.f32 %v1118_v42, %v1116_v43 }
 0x591   :  { %1207 = vrot.lane.b32.xlu1 %v1121_v45, %s6854_s4 }
 0x592   :  { %1205 = vrot.lane.b32.xlu0 %v1120_v48, %s6854_s4 }
 0x603   :  { %v1208_v50 = vpop.permute.xlu1 %1207 }
 0x604   :  { %v1206_v49 = vpop.permute.xlu0 %1205 }
 0x605   :  { %6207 = vmatprep.mubr.msk.f32.mxu1 %vm686_vm3, %v1206_v49  ;;  %6262 = vmatprep.mubr.msk.f32.mxu0 %vm686_vm3, %v1206_v49 }
 0x606   :  { %6208 = vmatmul.mubr.msk.f32.vlgmr.msra.gmra.mrb[12].mxu1 %vm686_vm3, %v1208_v50  ;;  %6263 = vmatmul.mubr.msk.f32.vlgmr.msra.gmra.mrb[24].mxu0 %vm686_vm3, %v1208_v50 }
 0x607   :  { %6216 = vmatpush3.msra.mxu1 %v7025_v9  ;;  %6271 = vmatpush3.msra.mxu0 %v7177_v34 }
 0x608   :  { %6225 = vmatprep.subr.mxu1 %v7025_v9  ;;  %6280 = vmatprep.subr.mxu0 %v7177_v34 }
 0x6d9   :  { %v6209_v47 = vpop.f32.mrb[12].mxu1  ;;  %v7192_v46 = vpop.f32.mrb[24].mxu0 }
 0x6da   :  { %v1285_v44 = vadd.f32 %v6209_v47, %v7065_v31  ;;  %v1279_v52 = vpop.f32.mrb[13].mxu1  ;;  %v7195_v53 = vpop.f32.mrb[25].mxu0 }
 0x6db   :  { %v1280_v55 = vadd.f32 %v7065_v31, %v1279_v52 }
 0x6dc   :  { %1306 = vrot.lane.b32.xlu1 %v1285_v44, %s6852_s22  ;;  %v1289_v57 = vadd.f32 %v1285_v44, %v7128_v56 }
 0x6dd   :  { %1304 = vrot.lane.b32.xlu0 %v1280_v55, %s6852_s22  ;;  %v1288_v59 = vadd.f32 %v1280_v55, %v7130_v58 }
 0x6de   :  { %v5837_v61 = vmul.f32 -1.442695, %v1289_v57 }
 0x6df   :  { %v5836_v63 = vmul.f32 -1.442695, %v1288_v59 }
 0x6e0   :  { %6681 = vpow2.f32 %v5837_v61 }
 0x6e1   :  { %6683 = vpow2.f32 %v5836_v63 }
 0x6ea   :  { %v6682_v1 = vpop.eup %6681 }
 0x6eb   :  { %v6684_v3 = vpop.eup %6683  ;;  %v1297_v4 = vadd.f32 1.0, %v6682_v1 }
 0x6ec   :  { %v1296_v6 = vadd.f32 1.0, %v6684_v3 }
 0x6ed   :  { %6685 = vrcp.f32 %v1297_v4 }
 0x6ee   :  { %6687 = vrcp.f32 %v1296_v6 }
 0x6f7   :  { %v6686_v7 = vpop.eup %6685 }
 0x6f8   :  { %v6688_v11 = vpop.eup %6687  ;;  %v1325_v27 = vsub.f32 1.0, %v6686_v7  ;;  %v1337_v51 = vmul.f32 %v6686_v7, %v1121_v45 }
 0x6f9   :  { %v1324_v30 = vsub.f32 1.0, %v6688_v11  ;;  %v1336_v36 = vmul.f32 %v6688_v11, %v1120_v48 }
 0x74e   :  { %v1307_v8 = vpop.permute.xlu1 %1306 }
 0x74f   :  { %v1311_v13 = vmul.f32 %v6686_v7, %v1307_v8  ;;  %v1305_v15 = vpop.permute.xlu0 %1304 }
 0x750   :  { %v1310_v18 = vmul.f32 %v6688_v11, %v1305_v15 }
 0x751   :  { %1316 = vrot.lane.b32.xlu1 %v1311_v13, %s6853_s5 }
 0x752   :  { %1314 = vrot.lane.b32.xlu0 %v1310_v18, %s6853_s5 }
 0x7c3   :  { %v1317_v19 = vpop.permute.xlu1 %1316 }
 0x7c4   :  { %v1321_v21 = vadd.f32 %v1317_v19, %v7128_v56  ;;  %v1315_v23 = vpop.permute.xlu0 %1314 }
 0x7c5   :  { %v1320_v24 = vadd.f32 %v1315_v23, %v7130_v58 }
 0x7c6   :  { %6689 = vtanh.f32 %v1321_v21 }
 0x7c7   :  { %6691 = vtanh.f32 %v1320_v24 }
 0x7d0   :  { %v6690_v25 = vpop.eup %6689 }
 0x7d1   :  { %v6692_v26 = vpop.eup %6691  ;;  %1330 = vrot.lane.b32.xlu1 %v6690_v25, %s6854_s4 }
 0x7d2   :  { %1328 = vrot.lane.b32.xlu0 %v6692_v26, %s6854_s4 }
 0x843   :  { %v1331_v28 = vpop.permute.xlu1 %1330 }
 0x844   :  { %v1335_v54 = vmul.f32 %v1331_v28, %v1325_v27  ;;  %v1329_v35 = vpop.permute.xlu0 %1328 }
 0x845   :  { %v1334_v37 = vmul.f32 %v1329_v35, %v1324_v30 }
 0x846   :  { %v1339_v56 = vadd.f32 %v1337_v51, %v1335_v54 }
 0x847   :  { %v1338_v39 = vadd.f32 %v1336_v36, %v1334_v37 }
 0x848   :  { %1425 = vrot.lane.b32.xlu1 %v1339_v56, %s6854_s4 }
 0x849   :  { %1423 = vrot.lane.b32.xlu0 %v1338_v39, %s6854_s4 }
 0x8ba   :  { %v1426_v42 = vpop.permute.xlu1 %1425 }
 0x8bb   :  { %v1424_v58 = vpop.permute.xlu0 %1423 }
 0x8bc   :  { %6217 = vmatprep.mubr.msk.f32.mxu1 %vm686_vm3, %v1424_v58 }
 0x8bd   :  { %6218 = vmatmul.mubr.msk.f32.vlgmr.msra.gmra.mrb[14].mxu1 %vm686_vm3, %v1426_v42 }
 0x8be   :  { %6226 = vmatpush3.msra.mxu1 %v7025_v9 }
 0x8bf   :  { %6235 = vmatprep.subr.mxu1 %v7025_v9 }
 0x990   :  { %v6219_v43 = vpop.f32.mrb[14].mxu1 }
 0x991   :  { %v1503_v45 = vadd.f32 %v6219_v43, %v7065_v31  ;;  %v1497_v48 = vpop.f32.mrb[15].mxu1 }
 0x992   :  { %v1498_v49 = vadd.f32 %v7065_v31, %v1497_v48 }
 0x993   :  { %1524 = vrot.lane.b32.xlu1 %v1503_v45, %s6852_s22  ;;  %v1507_v50 = vadd.f32 %v1503_v45, %v7132_v60 }
 0x994   :  { %1522 = vrot.lane.b32.xlu0 %v1498_v49, %s6852_s22  ;;  %v1506_v47 = vadd.f32 %v1498_v49, %v7134_v62 }
 0x995   :  { %v5843_v44 = vmul.f32 -1.442695, %v1507_v50 }
 0x996   :  { %v5842_v52 = vmul.f32 -1.442695, %v1506_v47 }
 0x997   :  { %6693 = vpow2.f32 %v5843_v44 }
 0x998   :  { %6695 = vpow2.f32 %v5842_v52 }
 0x9a1   :  { %v6694_v55 = vpop.eup %6693 }
 0x9a2   :  { %v6696_v57 = vpop.eup %6695  ;;  %v1515_v59 = vadd.f32 1.0, %v6694_v55 }
 0x9a3   :  { %v1514_v61 = vadd.f32 1.0, %v6696_v57 }
 0x9a4   :  { %6697 = vrcp.f32 %v1515_v59 }
 0x9a5   :  { %6699 = vrcp.f32 %v1514_v61 }
 0x9ae   :  { %v6698_v63 = vpop.eup %6697 }
 0x9af   :  { %v6700_v3 = vpop.eup %6699  ;;  %v1543_v21 = vsub.f32 1.0, %v6698_v63  ;;  %v1555_v25 = vmul.f32 %v6698_v63, %v1339_v56 }
 0x9b0   :  { %v1542_v24 = vsub.f32 1.0, %v6700_v3  ;;  %v1554_v28 = vmul.f32 %v6700_v3, %v1338_v39 }
 0xa05   :  { %v1525_v1 = vpop.permute.xlu1 %1524 }
 0xa06   :  { %v1529_v4 = vmul.f32 %v6698_v63, %v1525_v1  ;;  %v1523_v6 = vpop.permute.xlu0 %1522 }
 0xa07   :  { %v1528_v7 = vmul.f32 %v6700_v3, %v1523_v6 }
 0xa08   :  { %1534 = vrot.lane.b32.xlu1 %v1529_v4, %s6853_s5 }
 0xa09   :  { %1532 = vrot.lane.b32.xlu0 %v1528_v7, %s6853_s5 }
 0xa7a   :  { %v1535_v8 = vpop.permute.xlu1 %1534 }
 0xa7b   :  { %v1539_v11 = vadd.f32 %v1535_v8, %v7132_v60  ;;  %v1533_v13 = vpop.permute.xlu0 %1532 }
 0xa7c   :  { %v1538_v15 = vadd.f32 %v1533_v13, %v7134_v62 }
 0xa7d   :  { %6701 = vtanh.f32 %v1539_v11 }
 0xa7e   :  { %6703 = vtanh.f32 %v1538_v15 }
 0xa87   :  { %v6702_v18 = vpop.eup %6701 }
 0xa88   :  { %v6704_v19 = vpop.eup %6703  ;;  %1548 = vrot.lane.b32.xlu1 %v6702_v18, %s6854_s4 }
 0xa89   :  { %1546 = vrot.lane.b32.xlu0 %v6704_v19, %s6854_s4 }
 0xafa   :  { %v1549_v23 = vpop.permute.xlu1 %1548 }
 0xafb   :  { %v1553_v26 = vmul.f32 %v1549_v23, %v1543_v21  ;;  %v1547_v27 = vpop.permute.xlu0 %1546 }
 0xafc   :  { %v1552_v30 = vmul.f32 %v1547_v27, %v1542_v24 }
 0xafd   :  { %v1557_v60 = vadd.f32 %v1555_v25, %v1553_v26 }
 0xafe   :  { %v1556_v51 = vadd.f32 %v1554_v28, %v1552_v30 }
 0xaff   :  { %1637 = vrot.lane.b32.xlu1 %v1557_v60, %s6854_s4 }
 0xb00   :  { %1635 = vrot.lane.b32.xlu0 %v1556_v51, %s6854_s4 }
 0xb71   :  { %v1638_v54 = vpop.permute.xlu1 %1637 }
 0xb72   :  { %v1636_v62 = vpop.permute.xlu0 %1635 }
 0xb73   :  { %6227 = vmatprep.mubr.msk.f32.mxu1 %vm686_vm3, %v1636_v62  ;;  %6272 = vmatprep.mubr.msk.f32.mxu0 %vm686_vm3, %v1636_v62 }
 0xb74   :  { %6228 = vmatmul.mubr.msk.f32.vlgmr.msra.gmra.mrb[16].mxu1 %vm686_vm3, %v1638_v54  ;;  %6273 = vmatmul.mubr.msk.f32.vlgmr.msra.gmra.mrb[26].mxu0 %vm686_vm3, %v1638_v54 }
 0xb75   :  { %6236 = vmatpush3.msra.mxu1 %v7025_v9  ;;  %6281 = vmatpush3.msra.mxu0 %v7177_v34 }
 0xb76   :  { %6245 = vmatprep.subr.mxu1 %v7025_v9  ;;  %6290 = vmatprep.subr.mxu0 %v7177_v34 }
 0xc47   :  { %v6229_v35 = vpop.f32.mrb[16].mxu1  ;;  %v7236_v36 = vpop.f32.mrb[26].mxu0 }
 0xc48   :  { %v1715_v37 = vadd.f32 %v6229_v35, %v7065_v31  ;;  %v1709_v56 = vpop.f32.mrb[17].mxu1  ;;  %v7239_v39 = vpop.f32.mrb[27].mxu0 }
 0xc49   :  { %v1710_v58 = vadd.f32 %v7065_v31, %v1709_v56 }
 0xc4a   :  { %1736 = vrot.lane.b32.xlu1 %v1715_v37, %s6852_s22  ;;  %v1719_v42 = vadd.f32 %v1715_v37, %v7136_v2 }
 0xc4b   :  { %1734 = vrot.lane.b32.xlu0 %v1710_v58, %s6852_s22  ;;  %v1718_v43 = vadd.f32 %v1710_v58, %v7138_v5 }
 0xc4c   :  { %v5849_v45 = vmul.f32 -1.442695, %v1719_v42 }
 0xc4d   :  { %v5848_v48 = vmul.f32 -1.442695, %v1718_v43 }
 0xc4e   :  { %6705 = vpow2.f32 %v5849_v45 }
 0xc4f   :  { %6707 = vpow2.f32 %v5848_v48 }
 0xc58   :  { %v6706_v49 = vpop.eup %6705 }
 0xc59   :  { %v6708_v50 = vpop.eup %6707  ;;  %v1727_v47 = vadd.f32 1.0, %v6706_v49 }
 0xc5a   :  { %v1726_v44 = vadd.f32 1.0, %v6708_v50 }
 0xc5b   :  { %6709 = vrcp.f32 %v1727_v47 }
 0xc5c   :  { %6711 = vrcp.f32 %v1726_v44 }
 0xc65   :  { %v6710_v52 = vpop.eup %6709 }
 0xc66   :  { %v6712_v57 = vpop.eup %6711  ;;  %v1755_v11 = vsub.f32 1.0, %v6710_v52  ;;  %v1767_v18 = vmul.f32 %v6710_v52, %v1557_v60 }
 0xc67   :  { %v1754_v15 = vsub.f32 1.0, %v6712_v57  ;;  %v1766_v23 = vmul.f32 %v6712_v57, %v1556_v51 }
 0xcbc   :  { %v1737_v55 = vpop.permute.xlu1 %1736 }
 0xcbd   :  { %v1741_v59 = vmul.f32 %v6710_v52, %v1737_v55  ;;  %v1735_v61 = vpop.permute.xlu0 %1734 }
 0xcbe   :  { %v1740_v63 = vmul.f32 %v6712_v57, %v1735_v61 }
 0xcbf   :  { %1746 = vrot.lane.b32.xlu1 %v1741_v59, %s6853_s5 }
 0xcc0   :  { %1744 = vrot.lane.b32.xlu0 %v1740_v63, %s6853_s5 }
 0xd31   :  { %v1747_v1 = vpop.permute.xlu1 %1746 }
 0xd32   :  { %v1751_v3 = vadd.f32 %v1747_v1, %v7136_v2  ;;  %v1745_v4 = vpop.permute.xlu0 %1744 }
 0xd33   :  { %v1750_v6 = vadd.f32 %v1745_v4, %v7138_v5 }
 0xd34   :  { %6713 = vtanh.f32 %v1751_v3 }
 0xd35   :  { %6715 = vtanh.f32 %v1750_v6 }
 0xd3e   :  { %v6714_v7 = vpop.eup %6713 }
 0xd3f   :  { %v6716_v8 = vpop.eup %6715  ;;  %1760 = vrot.lane.b32.xlu1 %v6714_v7, %s6854_s4 }
 0xd40   :  { %1758 = vrot.lane.b32.xlu0 %v6716_v8, %s6854_s4 }
 0xdb1   :  { %v1761_v13 = vpop.permute.xlu1 %1760 }
 0xdb2   :  { %v1765_v19 = vmul.f32 %v1761_v13, %v1755_v11  ;;  %v1759_v21 = vpop.permute.xlu0 %1758 }
 0xdb3   :  { %v1764_v24 = vmul.f32 %v1759_v21, %v1754_v15 }
 0xdb4   :  { %v1769_v2 = vadd.f32 %v1767_v18, %v1765_v19 }
 0xdb5   :  { %v1768_v25 = vadd.f32 %v1766_v23, %v1764_v24 }
 0xdb6   :  { %1849 = vrot.lane.b32.xlu1 %v1769_v2, %s6854_s4 }
 0xdb7   :  { %1847 = vrot.lane.b32.xlu0 %v1768_v25, %s6854_s4 }
 0xe28   :  { %v1850_v26 = vpop.permute.xlu1 %1849 }
 0xe29   :  { %v1848_v5 = vpop.permute.xlu0 %1847 }
 0xe2a   :  { %6237 = vmatprep.mubr.msk.f32.mxu1 %vm686_vm3, %v1848_v5 }
 0xe2b   :  { %6238 = vmatmul.mubr.msk.f32.vlgmr.msra.gmra.mrb[18].mxu1 %vm686_vm3, %v1850_v26 }
 0xe2c   :  { %6246 = vmatpush3.msra.mxu1 %v7025_v9 }
 0xe2d   :  { %6255 = vmatprep.subr.mxu1 %v7025_v9 }
 0xefe   :  { %v6239_v27 = vpop.f32.mrb[18].mxu1 }
 0xeff   :  { %v1927_v28 = vadd.f32 %v6239_v27, %v7065_v31  ;;  %v1921_v30 = vpop.f32.mrb[19].mxu1 }
 0xf00   :  { %v1922_v60 = vadd.f32 %v7065_v31, %v1921_v30 }
 0xf01   :  { %1948 = vrot.lane.b32.xlu1 %v1927_v28, %s6852_s22  ;;  %v1931_v51 = vadd.f32 %v1927_v28, %v7140_v10 }
 0xf02   :  { %1946 = vrot.lane.b32.xlu0 %v1922_v60, %s6852_s22  ;;  %v1930_v62 = vadd.f32 %v1922_v60, %v7142_v12 }
 0xf03   :  { %v5855_v54 = vmul.f32 -1.442695, %v1931_v51 }
 0xf04   :  { %v5854_v35 = vmul.f32 -1.442695, %v1930_v62 }
 0xf05   :  { %6717 = vpow2.f32 %v5855_v54 }
 0xf06   :  { %6719 = vpow2.f32 %v5854_v35 }
 0xf0f   :  { %v6718_v37 = vpop.eup %6717 }
 0xf10   :  { %v6720_v56 = vpop.eup %6719  ;;  %v1939_v58 = vadd.f32 1.0, %v6718_v37 }
 0xf11   :  { %v1938_v42 = vadd.f32 1.0, %v6720_v56 }
 0xf12   :  { %6721 = vrcp.f32 %v1939_v58 }
 0xf13   :  { %6723 = vrcp.f32 %v1938_v42 }
 0xf1c   :  { %v6722_v43 = vpop.eup %6721 }
 0xf1d   :  { %v6724_v48 = vpop.eup %6723  ;;  %v1967_v63 = vsub.f32 1.0, %v6722_v43  ;;  %v1979_v4 = vmul.f32 %v6722_v43, %v1769_v2 }
 0xf1e   :  { %v1966_v3 = vsub.f32 1.0, %v6724_v48  ;;  %v1978_v8 = vmul.f32 %v6724_v48, %v1768_v25 }
 0xf73   :  { %v1949_v45 = vpop.permute.xlu1 %1948 }
 0xf74   :  { %v1953_v49 = vmul.f32 %v6722_v43, %v1949_v45  ;;  %v1947_v50 = vpop.permute.xlu0 %1946 }
 0xf75   :  { %v1952_v47 = vmul.f32 %v6724_v48, %v1947_v50  ;;  %v7298_v48 = vld [vmem:[%s7817_s8] sm:$0xff] }
 0xf76   :  { %1958 = vrot.lane.b32.xlu1 %v1953_v49, %s6853_s5 }
 0xf77   :  { %1956 = vrot.lane.b32.xlu0 %v1952_v47, %s6853_s5 }
 0xfe8   :  { %v1959_v44 = vpop.permute.xlu1 %1958 }
 0xfe9   :  { %v1963_v52 = vadd.f32 %v1959_v44, %v7140_v10  ;;  %v1957_v55 = vpop.permute.xlu0 %1956 }
 0xfea   :  { %v1962_v57 = vadd.f32 %v1957_v55, %v7142_v12 }
 0xfeb   :  { %6725 = vtanh.f32 %v1963_v52 }
 0xfec   :  { %6727 = vtanh.f32 %v1962_v57 }
 0xff5   :  { %v6726_v59 = vpop.eup %6725 }
 0xff6   :  { %v6728_v61 = vpop.eup %6727  ;;  %1972 = vrot.lane.b32.xlu1 %v6726_v59, %s6854_s4 }
 0xff7   :  { %1970 = vrot.lane.b32.xlu0 %v6728_v61, %s6854_s4 }
0x1068   :  { %v1973_v1 = vpop.permute.xlu1 %1972 }
0x1069   :  { %v1977_v6 = vmul.f32 %v1973_v1, %v1967_v63  ;;  %v1971_v7 = vpop.permute.xlu0 %1970 }
0x106a   :  { %v1976_v11 = vmul.f32 %v1971_v7, %v1966_v3 }
0x106b   :  { %v1981_v10 = vadd.f32 %v1979_v4, %v1977_v6  ;;  %v7324_v4 = vld [vmem:[%s7818_s10] ss:$0 sm:$0xff] }
0x106c   :  { %v1980_v13 = vadd.f32 %v1978_v8, %v1976_v11 }
0x106d   :  { %2061 = vrot.lane.b32.xlu1 %v1981_v10, %s6854_s4 }
0x106e   :  { %2059 = vrot.lane.b32.xlu0 %v1980_v13, %s6854_s4 }
0x10df   :  { %v2062_v15 = vpop.permute.xlu1 %2061 }
0x10e0   :  { %v2060_v12 = vpop.permute.xlu0 %2059 }
0x10e1   :  { %6247 = vmatprep.mubr.msk.f32.mxu1 %vm686_vm3, %v2060_v12  ;;  %6282 = vmatprep.mubr.msk.f32.mxu0 %vm686_vm3, %v2060_v12 }
0x10e2   :  { %6248 = vmatmul.mubr.msk.f32.vlgmr.msra.gmra.mrb[20].mxu1 %vm686_vm3, %v2062_v15  ;;  %6283 = vmatmul.mubr.msk.f32.vlgmr.msra.gmra.mrb[28].mxu0 %vm686_vm3, %v2062_v15 }
0x10e3   :  { %6256 = vmatpush3.msra.mxu1 %v7025_v9  ;;  %6291 = vmatpush3.msra.mxu0 %v7177_v34 }
0x10e4   :  { %6300 = vmatprep.subr.mxu0 %v6850_v0  ;;  %6265 = vmatprep.subr.mxu1 %v7298_v48 }
0x11b5   :  { %v6249_v18 = vpop.f32.mrb[20].mxu1  ;;  %v7279_v19 = vpop.f32.mrb[28].mxu0 }
0x11b6   :  { %v2139_v21 = vadd.f32 %v6249_v18, %v7065_v31  ;;  %v2133_v23 = vpop.f32.mrb[21].mxu1  ;;  %v7282_v24 = vpop.f32.mrb[29].mxu0 }
0x11b7   :  { %v2134_v2 = vadd.f32 %v7065_v31, %v2133_v23 }
0x11b8   :  { %2160 = vrot.lane.b32.xlu1 %v2139_v21, %s6852_s22  ;;  %v2143_v9 = vadd.f32 %v2139_v21, %v7144_v14 }
0x11b9   :  { %2158 = vrot.lane.b32.xlu0 %v2134_v2, %s6852_s22  ;;  %v2142_v34 = vadd.f32 %v2134_v2, %v7146_v16 }
0x11ba   :  { %v5861_v25 = vmul.f32 -1.442695, %v2143_v9 }
0x11bb   :  { %v5860_v5 = vmul.f32 -1.442695, %v2142_v34 }
0x11bc   :  { %6729 = vpow2.f32 %v5861_v25 }
0x11bd   :  { %6731 = vpow2.f32 %v5860_v5 }
0x11c6   :  { %v6730_v26 = vpop.eup %6729 }
0x11c7   :  { %v6732_v27 = vpop.eup %6731  ;;  %v2151_v28 = vadd.f32 1.0, %v6730_v26 }
0x11c8   :  { %v2150_v30 = vadd.f32 1.0, %v6732_v27 }
0x11c9   :  { %6733 = vrcp.f32 %v2151_v28 }
0x11ca   :  { %6735 = vrcp.f32 %v2150_v30 }
0x11d3   :  { %v6734_v60 = vpop.eup %6733 }
0x11d4   :  { %v6736_v51 = vpop.eup %6735  ;;  %v2179_v49 = vsub.f32 1.0, %v6734_v60  ;;  %v2191_v47 = vmul.f32 %v6734_v60, %v1981_v10  ;;  %v7333_v10 = vld [vmem:[%s7819_s9] ss:$0 sm:$0xff] }
0x11d5   :  { %v2178_v50 = vsub.f32 1.0, %v6736_v51  ;;  %v2190_v52 = vmul.f32 %v6736_v51, %v1980_v13  ;;  %v2488_v13 = vadd.f32 %v7192_v46, %v7333_v10  ;;  %v2483_v12 = vadd.f32 %v7333_v10, %v7195_v53 }
0x122a   :  { %v2161_v31 = vpop.permute.xlu1 %2160 }
0x122b   :  { %v2165_v62 = vmul.f32 %v6734_v60, %v2161_v31  ;;  %v2159_v54 = vpop.permute.xlu0 %2158 }
0x122c   :  { %v2164_v35 = vmul.f32 %v6736_v51, %v2159_v54 }
0x122d   :  { %2170 = vrot.lane.b32.xlu1 %v2165_v62, %s6853_s5 }
0x122e   :  { %2168 = vrot.lane.b32.xlu0 %v2164_v35, %s6853_s5 }
0x129f   :  { %v2171_v37 = vpop.permute.xlu1 %2170 }
0x12a0   :  { %v2175_v56 = vadd.f32 %v2171_v37, %v7144_v14  ;;  %v2169_v58 = vpop.permute.xlu0 %2168 }
0x12a1   :  { %v2174_v42 = vadd.f32 %v2169_v58, %v7146_v16 }
0x12a2   :  { %6737 = vtanh.f32 %v2175_v56 }
0x12a3   :  { %6739 = vtanh.f32 %v2174_v42 }
0x12ac   :  { %v6738_v43 = vpop.eup %6737 }
0x12ad   :  { %v6740_v45 = vpop.eup %6739  ;;  %2184 = vrot.lane.b32.xlu1 %v6738_v43, %s6854_s4 }
0x12ae   :  { %2182 = vrot.lane.b32.xlu0 %v6740_v45, %s6854_s4 }
0x131f   :  { %v2185_v14 = vpop.permute.xlu1 %2184 }
0x1320   :  { %v2189_v16 = vmul.f32 %v2185_v14, %v2179_v49  ;;  %v2183_v44 = vpop.permute.xlu0 %2182 }
0x1321   :  { %v2188_v55 = vmul.f32 %v2183_v44, %v2178_v50 }
0x1322   :  { %v7301_v57 = vadd.f32 %v2191_v47, %v2189_v16 }
0x1323   :  { %v7303_v59 = vadd.f32 %v2190_v52, %v2188_v55 }
0x1324   :  { %2273 = vrot.lane.b32.xlu1 %v7301_v57, %s6854_s4 }
0x1325   :  { %2271 = vrot.lane.b32.xlu0 %v7303_v59, %s6854_s4 }
0x1396   :  { %v2274_v63 = vpop.permute.xlu1 %2273 }
0x1397   :  { %v2272_v61 = vpop.permute.xlu0 %2271 }
0x1398   :  { %6257 = vmatprep.mubr.msk.f32.mxu1 %vm686_vm3, %v2272_v61 }
0x1399   :  { %6258 = vmatmul.mubr.msk.f32.vlgmr.msra.gmra.mrb[22].mxu1 %vm686_vm3, %v2274_v63  ;;  %v2696_v63 = vadd.f32 %v7236_v36, %v7333_v10 }
0x139a   :  { %6266 = vmatpush3.msra.mxu1 %v7298_v48  ;;  %6267 = vmatprep.mubr.f32.mxu1 %v6850_v0 }
0x139b   :  { %6275 = vmatprep.subr.mxu1 %v7298_v48 }
0x139d   :  { %6268 = vmatmul.mubr.f32.vlgmr.msra.gmra.mrb[24].mxu1 %v6850_v0 }
0x139e   :  { %6276 = vmatpush3.msra.mxu1 %v7298_v48 }
0x139f   :  { %6285 = vmatprep.subr.mxu1 %v7298_v48 }
0x146c   :  { %v7317_v1 = vpop.f32.mrb[22].mxu1 }
0x146d   :  { %v7319_v3 = vpop.f32.mrb[23].mxu1 }
0x1470   :  { %v6269_v6 = vpop.f32.mrb[24].mxu1 }
0x1471   :  { %v2569_v7 = vadd.f32 %v6269_v6, %v7324_v4  ;;  %v2563_v8 = vpop.f32.mrb[25].mxu1  ;;  %v2691_v6 = vadd.f32 %v7333_v10, %v7239_v39 }
0x1472   :  { %v2564_v11 = vadd.f32 %v7324_v4, %v2563_v8 }
0x1473   :  { %2590 = vrot.lane.b32.xlu1 %v2569_v7, %s6852_s22  ;;  %v2573_v15 = vadd.f32 %v2569_v7, %v2488_v13 }
0x1474   :  { %2588 = vrot.lane.b32.xlu0 %v2564_v11, %s6852_s22  ;;  %v2572_v18 = vadd.f32 %v2564_v11, %v2483_v12 }
0x1475   :  { %v5873_v21 = vmul.f32 -1.442695, %v2573_v15 }
0x1476   :  { %v5872_v23 = vmul.f32 -1.442695, %v2572_v18 }
0x1477   :  { %6741 = vpow2.f32 %v5873_v21 }
0x1478   :  { %6743 = vpow2.f32 %v5872_v23 }
0x1481   :  { %v6742_v2 = vpop.eup %6741 }
0x1482   :  { %v6744_v9 = vpop.eup %6743  ;;  %v2581_v34 = vadd.f32 1.0, %v6742_v2 }
0x1483   :  { %v2580_v25 = vadd.f32 1.0, %v6744_v9 }
0x1484   :  { %6745 = vrcp.f32 %v2581_v34 }
0x1485   :  { %6747 = vrcp.f32 %v2580_v25 }
0x148e   :  { %v6746_v5 = vpop.eup %6745 }
0x148f   :  { %v6748_v27 = vpop.eup %6747  ;;  %v2609_v35 = vsub.f32 1.0, %v6746_v5  ;;  %v2621_v58 = vmul.f32 0.0, %v6746_v5 }
0x1490   :  { %v2608_v56 = vsub.f32 1.0, %v6748_v27  ;;  %v2620_v45 = vmul.f32 0.0, %v6748_v27 }
0x14e5   :  { %v2591_v26 = vpop.permute.xlu1 %2590 }
0x14e6   :  { %v2595_v28 = vmul.f32 %v6746_v5, %v2591_v26  ;;  %v2589_v46 = vpop.permute.xlu0 %2588 }
0x14e7   :  { %v2594_v30 = vmul.f32 %v6748_v27, %v2589_v46 }
0x14e8   :  { %2600 = vrot.lane.b32.xlu1 %v2595_v28, %s6853_s5 }
0x14e9   :  { %2598 = vrot.lane.b32.xlu0 %v2594_v30, %s6853_s5 }
0x155a   :  { %v2601_v53 = vpop.permute.xlu1 %2600 }
0x155b   :  { %v2605_v60 = vadd.f32 %v2601_v53, %v2488_v13  ;;  %v2599_v31 = vpop.permute.xlu0 %2598 }
0x155c   :  { %v2604_v51 = vadd.f32 %v2599_v31, %v2483_v12 }
0x155d   :  { %6749 = vtanh.f32 %v2605_v60 }
0x155e   :  { %6751 = vtanh.f32 %v2604_v51 }
0x1567   :  { %v6750_v62 = vpop.eup %6749 }
0x1568   :  { %v6752_v54 = vpop.eup %6751  ;;  %2614 = vrot.lane.b32.xlu1 %v6750_v62, %s6854_s4 }
0x1569   :  { %2612 = vrot.lane.b32.xlu0 %v6752_v54, %s6854_s4 }
0x15da   :  { %v2615_v37 = vpop.permute.xlu1 %2614 }
0x15db   :  { %v2619_v42 = vmul.f32 %v2615_v37, %v2609_v35  ;;  %v2613_v43 = vpop.permute.xlu0 %2612 }
0x15dc   :  { %v2618_v49 = vmul.f32 %v2613_v43, %v2608_v56 }
0x15dd   :  { %v2623_v14 = vadd.f32 %v2621_v58, %v2619_v42 }
0x15de   :  { %v2622_v50 = vadd.f32 %v2620_v45, %v2618_v49 }
0x15df   :  { %2703 = vrot.lane.b32.xlu1 %v2623_v14, %s6854_s4 }
0x15e0   :  { %2701 = vrot.lane.b32.xlu0 %v2622_v50, %s6854_s4 }
0x1651   :  { %v2704_v16 = vpop.permute.xlu1 %2703 }
0x1652   :  { %v2702_v47 = vpop.permute.xlu0 %2701 }
0x1653   :  { %6277 = vmatprep.mubr.msk.f32.mxu1 %vm686_vm3, %v2702_v47 }
0x1654   :  { %6278 = vmatmul.mubr.msk.f32.vlgmr.msra.gmra.mrb[26].mxu1 %vm686_vm3, %v2704_v16 }
0x1655   :  { %6286 = vmatpush3.msra.mxu1 %v7298_v48 }
0x1656   :  { %6295 = vmatprep.subr.mxu1 %v7298_v48 }
0x1727   :  { %v6279_v44 = vpop.f32.mrb[26].mxu1 }
0x1728   :  { %v2781_v52 = vadd.f32 %v6279_v44, %v7324_v4  ;;  %v2775_v55 = vpop.f32.mrb[27].mxu1  ;;  %v2903_v44 = vadd.f32 %v7333_v10, %v7282_v24 }
0x1729   :  { %v2776_v61 = vadd.f32 %v7324_v4, %v2775_v55 }
0x172a   :  { %2802 = vrot.lane.b32.xlu1 %v2781_v52, %s6852_s22  ;;  %v2785_v7 = vadd.f32 %v2781_v52, %v2696_v63 }
0x172b   :  { %2800 = vrot.lane.b32.xlu0 %v2776_v61, %s6852_s22  ;;  %v2784_v8 = vadd.f32 %v2776_v61, %v2691_v6 }
0x172c   :  { %v5879_v11 = vmul.f32 -1.442695, %v2785_v7 }
0x172d   :  { %v5878_v13 = vmul.f32 -1.442695, %v2784_v8 }
0x172e   :  { %6753 = vpow2.f32 %v5879_v11 }
0x172f   :  { %6755 = vpow2.f32 %v5878_v13 }
0x1738   :  { %v6754_v12 = vpop.eup %6753 }
0x1739   :  { %v6756_v15 = vpop.eup %6755  ;;  %v2793_v18 = vadd.f32 1.0, %v6754_v12 }
0x173a   :  { %v2792_v21 = vadd.f32 1.0, %v6756_v15 }
0x173b   :  { %6757 = vrcp.f32 %v2793_v18 }
0x173c   :  { %6759 = vrcp.f32 %v2792_v21 }
0x1745   :  { %v6758_v23 = vpop.eup %6757 }
0x1746   :  { %v6760_v9 = vpop.eup %6759  ;;  %v2821_v30 = vsub.f32 1.0, %v6758_v23  ;;  %v2833_v31 = vmul.f32 %v6758_v23, %v2623_v14 }
0x1747   :  { %v2820_v60 = vsub.f32 1.0, %v6760_v9  ;;  %v2832_v54 = vmul.f32 %v6760_v9, %v2622_v50  ;;  %v6849_v50 = vld [vmem:[%s7814_s6] ss:$0 sm:$0xff]  ;;  %s6857_s6 = smov 64  }
0x1748   :  { %v2351_v47 = vadd.f32 %v6849_v50, %v7317_v1  ;;  %v2346_v16 = vadd.f32 %v6849_v50, %v7319_v3 }
0x174a   :  { %v2355_v61 = vadd.f32 %v2351_v47, %v7148_v20 }
0x174c   :  { %v5867_v7 = vmul.f32 -1.442695, %v2355_v61 }
0x179c   :  { %v2803_v2 = vpop.permute.xlu1 %2802 }
0x179d   :  { %v2807_v34 = vmul.f32 %v6758_v23, %v2803_v2  ;;  %v2801_v36 = vpop.permute.xlu0 %2800 }
0x179e   :  { %v2806_v25 = vmul.f32 %v6760_v9, %v2801_v36 }
0x179f   :  { %2812 = vrot.lane.b32.xlu1 %v2807_v34, %s6853_s5 }
0x17a0   :  { %2810 = vrot.lane.b32.xlu0 %v2806_v25, %s6853_s5 }
0x1811   :  { %v2813_v39 = vpop.permute.xlu1 %2812 }
0x1812   :  { %v2817_v5 = vadd.f32 %v2813_v39, %v2696_v63  ;;  %v2811_v26 = vpop.permute.xlu0 %2810 }
0x1813   :  { %v2816_v27 = vadd.f32 %v2811_v26, %v2691_v6  ;;  %v2354_v6 = vadd.f32 %v2346_v16, %v7150_v22 }
0x1814   :  { %6761 = vtanh.f32 %v2817_v5 }
0x1815   :  { %6763 = vtanh.f32 %v2816_v27  ;;  %v5866_v3 = vmul.f32 -1.442695, %v2354_v6 }
0x181e   :  { %v6762_v28 = vpop.eup %6761 }
0x181f   :  { %v6764_v46 = vpop.eup %6763  ;;  %2826 = vrot.lane.b32.xlu1 %v6762_v28, %s6854_s4 }
0x1820   :  { %2824 = vrot.lane.b32.xlu0 %v6764_v46, %s6854_s4 }
0x1891   :  { %v2827_v53 = vpop.permute.xlu1 %2826 }
0x1892   :  { %v2831_v51 = vmul.f32 %v2827_v53, %v2821_v30  ;;  %v2825_v62 = vpop.permute.xlu0 %2824 }
0x1893   :  { %v2830_v35 = vmul.f32 %v2825_v62, %v2820_v60 }
0x1894   :  { %v7361_v37 = vadd.f32 %v2833_v31, %v2831_v51 }
0x1895   :  { %v7363_v56 = vadd.f32 %v2832_v54, %v2830_v35 }
0x1896   :  { %2915 = vrot.lane.b32.xlu1 %v7361_v37, %s6854_s4 }
0x1897   :  { %2913 = vrot.lane.b32.xlu0 %v7363_v56, %s6854_s4 }
0x1908   :  { %v2916_v42 = vpop.permute.xlu1 %2915 }
0x1909   :  { %v2914_v58 = vpop.permute.xlu0 %2913 }
0x190a   :  { %6287 = vmatprep.mubr.msk.f32.mxu1 %vm686_vm3, %v2914_v58 }
0x190b   :  { %6288 = vmatmul.mubr.msk.f32.vlgmr.msra.gmra.mrb[28].mxu1 %vm686_vm3, %v2916_v42 }
0x190c   :  { %6296 = vmatpush3.msra.mxu1 %v7298_v48  ;;  %v2908_v48 = vadd.f32 %v7279_v19, %v7333_v10 }
0x19de   :  { %v6289_v43 = vpop.f32.mrb[28].mxu1 }
0x19df   :  { %v2993_v45 = vadd.f32 %v6289_v43, %v7324_v4  ;;  %v2987_v49 = vpop.f32.mrb[29].mxu1 }
0x19e0   :  { %v2988_v14 = vadd.f32 %v7324_v4, %v2987_v49 }
0x19e1   :  { %3014 = vrot.lane.b32.xlu1 %v2993_v45, %s6852_s22  ;;  %v2997_v52 = vadd.f32 %v2993_v45, %v2908_v48 }
0x19e2   :  { %3012 = vrot.lane.b32.xlu0 %v2988_v14, %s6852_s22  ;;  %v2996_v55 = vadd.f32 %v2988_v14, %v2903_v44 }
0x19e3   :  { %v5885_v63 = vmul.f32 -1.442695, %v2997_v52 }
0x19e4   :  { %v5884_v1 = vmul.f32 -1.442695, %v2996_v55 }
0x19e5   :  { %2372 = vrot.lane.b32.xlu1 %v2351_v47, %s6852_s22  ;;  %6765 = vpow2.f32 %v5885_v63 }
0x19e6   :  { %2370 = vrot.lane.b32.xlu0 %v2346_v16, %s6852_s22  ;;  %6767 = vpow2.f32 %v5884_v1 }
0x19e7   :  { %6769 = vpow2.f32 %v5867_v7 }
0x19e8   :  { %6771 = vpow2.f32 %v5866_v3 }
0x19ef   :  { %v6766_v8 = vpop.eup %6765 }
0x19f0   :  { %v6768_v11 = vpop.eup %6767  ;;  %v3005_v19 = vadd.f32 1.0, %v6766_v8 }
0x19f1   :  { %v6770_v13 = vpop.eup %6769  ;;  %v3004_v12 = vadd.f32 1.0, %v6768_v11  ;;  %v7423_v11 = vld [vmem:[%s7820_s11] sm:$0xff]  ;;  %s6855_s11 = smov 8  }
0x19f2   :  { %v6772_v24 = vpop.eup %6771  ;;  %v2363_v15 = vadd.f32 1.0, %v6770_v13  ;;  %6773 = vrcp.f32 %v3005_v19 }
0x19f3   :  { %v2362_v18 = vadd.f32 1.0, %v6772_v24  ;;  %6775 = vrcp.f32 %v3004_v12 }
0x19f4   :  { %6777 = vrcp.f32 %v2363_v15 }
0x19f5   :  { %6779 = vrcp.f32 %v2362_v18 }
0x19fc   :  { %v6774_v21 = vpop.eup %6773 }
0x19fd   :  { %v6776_v2 = vpop.eup %6775  ;;  %v3033_v45 = vsub.f32 1.0, %v6774_v21  ;;  %v3045_v14 = vmul.f32 %v6774_v21, %v7361_v37 }
0x19fe   :  { %v6778_v25 = vpop.eup %6777  ;;  %v3044_v47 = vmul.f32 %v6776_v2, %v7363_v56 }
0x19ff   :  { %v6780_v5 = vpop.eup %6779  ;;  %v2403_v63 = vmul.f32 %v6778_v25, %v7301_v57 }
0x1a00   :  { %v2390_v61 = vsub.f32 1.0, %v6780_v5  ;;  %v2402_v37 = vmul.f32 %v6780_v5, %v7303_v59 }
0x1a53   :  { %v3015_v23 = vpop.permute.xlu1 %3014 }
0x1a54   :  { %v3019_v9 = vmul.f32 %v6774_v21, %v3015_v23  ;;  %v3013_v34 = vpop.permute.xlu0 %3012 }
0x1a55   :  { %v3018_v36 = vmul.f32 %v6776_v2, %v3013_v34 }
0x1a56   :  { %3024 = vrot.lane.b32.xlu1 %v3019_v9, %s6853_s5 }
0x1a57   :  { %v2373_v39 = vpop.permute.xlu1 %2372  ;;  %3022 = vrot.lane.b32.xlu0 %v3018_v36, %s6853_s5 }
0x1a58   :  { %v2377_v26 = vmul.f32 %v6778_v25, %v2373_v39  ;;  %v2371_v27 = vpop.permute.xlu0 %2370 }
0x1a59   :  { %v2376_v28 = vmul.f32 %v6780_v5, %v2371_v27 }
0x1a5a   :  { %2382 = vrot.lane.b32.xlu1 %v2377_v26, %s6853_s5 }
0x1a5b   :  { %2380 = vrot.lane.b32.xlu0 %v2376_v28, %s6853_s5 }
0x1ac8   :  { %v3025_v46 = vpop.permute.xlu1 %3024 }
0x1ac9   :  { %v3029_v30 = vadd.f32 %v3025_v46, %v2908_v48  ;;  %v3023_v53 = vpop.permute.xlu0 %3022 }
0x1aca   :  { %v3028_v60 = vadd.f32 %v3023_v53, %v2903_v44  ;;  %v2391_v44 = vsub.f32 1.0, %v6778_v25 }
0x1acb   :  { %6781 = vtanh.f32 %v3029_v30 }
0x1acc   :  { %6783 = vtanh.f32 %v3028_v60  ;;  %v2383_v31 = vpop.permute.xlu1 %2382 }
0x1acd   :  { %v2387_v51 = vadd.f32 %v2383_v31, %v7148_v20  ;;  %v2381_v62 = vpop.permute.xlu0 %2380  ;;  %v3032_v20 = vsub.f32 1.0, %v6776_v2 }
0x1ace   :  { %v2386_v54 = vadd.f32 %v2381_v62, %v7150_v22 }
0x1acf   :  { %6785 = vtanh.f32 %v2387_v51 }
0x1ad0   :  { %6787 = vtanh.f32 %v2386_v54 }
0x1ad5   :  { %v6782_v35 = vpop.eup %6781 }
0x1ad6   :  { %v6784_v58 = vpop.eup %6783  ;;  %3038 = vrot.lane.b32.xlu1 %v6782_v35, %s6854_s4 }
0x1ad7   :  { %3036 = vrot.lane.b32.xlu0 %v6784_v58, %s6854_s4 }
0x1ad9   :  { %v6786_v42 = vpop.eup %6785 }
0x1ada   :  { %v6788_v43 = vpop.eup %6787  ;;  %2396 = vrot.lane.b32.xlu1 %v6786_v42, %s6854_s4  ;;  %v3286_v42 = vld [vmem:[%s7822_s12] sm:$0xff] }
0x1adb   :  { %2394 = vrot.lane.b32.xlu0 %v6788_v43, %s6854_s4  ;;  %v3287_v43 = vld [vmem:[%s7822_s12 + $0x8] sm:$0xff] }
0x1b48   :  { %v3039_v49 = vpop.permute.xlu1 %3038 }
0x1b49   :  { %v3043_v22 = vmul.f32 %v3039_v49, %v3033_v45  ;;  %v3037_v50 = vpop.permute.xlu0 %3036  ;;  %v7457_v45 = vpack.c.bf16 %v3287_v43, %v3286_v42  ;;  %v6856_v49 = vmov 0.0|0.0  }
0x1b4a   :  { %v3042_v16 = vmul.f32 %v3037_v50, %v3032_v20  ;;  %6551 = vmatprep.subr.bf16.mxu1 %v6856_v49  ;;  %v3288_v20 = vld [vmem:[%s7822_s12 + $0x10] sm:$0xff] }
0x1b4b   :  { %v7401_v48 = vadd.f32 %v3045_v14, %v3043_v22  ;;  %v3289_v14 = vld [vmem:[%s7822_s12 + $0x18] sm:$0xff] }
0x1b4c   :  { %v7403_v52 = vadd.f32 %v3044_v47, %v3042_v16  ;;  %v2397_v55 = vpop.permute.xlu1 %2396  ;;  %v7468_v22 = vpack.c.bf16 %v3289_v14, %v3288_v20 }
0x1b4d   :  { %v2401_v6 = vmul.f32 %v2397_v55, %v2391_v44  ;;  %3137 = vrot.lane.b32.xlu1 %v7401_v48, %s6854_s4  ;;  %v2395_v1 = vpop.permute.xlu0 %2394 }
0x1b4e   :  { %v2400_v7 = vmul.f32 %v2395_v1, %v2390_v61  ;;  %3135 = vrot.lane.b32.xlu0 %v7403_v52, %s6854_s4 }
0x1b4f   :  { %v7411_v56 = vadd.f32 %v2403_v63, %v2401_v6 }
0x1b50   :  { %v2404_v3 = vadd.f32 %v2402_v37, %v2400_v7 }
0x1b51   :  { %3052 = vrot.lane.b32.xlu1 %v7411_v56, %s6854_s4 }
0x1b52   :  { %3050 = vrot.lane.b32.xlu0 %v2404_v3, %s6854_s4 }
0x1bbf   :  { %v3138_v57 = vpop.permute.xlu1 %3137 }
0x1bc0   :  { %v3136_v8 = vpop.permute.xlu0 %3135 }
0x1bc1   :  { %6297 = vmatprep.mubr.msk.f32.mxu1 %vm686_vm3, %v3136_v8 }
0x1bc2   :  { %6298 = vmatmul.mubr.msk.f32.vlgmr.msra.gmra.mrb[30].mxu1 %vm686_vm3, %v3138_v57 }
0x1bc3   :  { %6313 = vmatprep.mubr.msk.f32.mxu1 %vm6851_vm2, %v6850_v0  ;;  %v3053_v19 = vpop.permute.xlu1 %3052  ;;  %6553 = vmatpush3.bf16.msra.mxu1 %v7457_v45 }
0x1bc4   :  { %v3051_v59 = vpop.permute.xlu0 %3050  ;;  %6554 = vmatprep.subr.bf16.mxu1 %v6856_v49 }
0x1bc5   :  { %3271 = vst.msk [vmem:[%s7821_s20] sm:$0xff] %vm686_vm3, %v3051_v59  ;;  %6292 = vmatprep.mubr.msk.f32.mxu0 %vm686_vm3, %v3051_v59  ;;  %v7501_v59 = vld [vmem:[%s7824_s13] ss:$0 sm:$0xff] }
0x1bc6   :  { %6293 = vmatmul.mubr.msk.f32.vlgmr.msra.gmra.mrb[30].mxu0 %vm686_vm3, %v3053_v19 }
0x1bc7   :  { %6301 = vmatpush3.msra.mxu0 %v7423_v11  ;;  %6302 = vmatprep.mubr.msk.f32.mxu0 %vm6851_vm2, %v6850_v0 }
0x1bc8   :  { %6557 = vmatprep.subr.bf16.mxu0 %v6856_v49  ;;  %6556 = vmatpush3.bf16.msra.mxu1 %v7468_v22 }
0x1bc9   :  { %6327 = vmatprep.subr.mxu1 %v6850_v0 }
0x1bca   :  { %6303 = vmatmul.mubr.msk.f32.vlgmr.msra.gmra.mrb[32].mxu0 %vm686_vm3, %v7055_v17 }
0x1bcb   :  { %6324 = vmatprep.mubr.msk.f32.mxu0 %vm6851_vm2, %v6850_v0 }
0x1c95   :  { %v6299_v13 = vpop.f32.mrb[30].mxu1 }
0x1c96   :  { %v3215_v12 = vadd.f32 %v6299_v13, %v7324_v4  ;;  %v3209_v24 = vpop.f32.mrb[31].mxu1 }
0x1c97   :  { %v3210_v15 = vadd.f32 %v7324_v4, %v3209_v24 }
0x1c98   :  { %3236 = vrot.lane.b32.xlu0 %v3215_v12, %s6852_s22 }
0x1c99   :  { %3234 = vrot.lane.b32.xlu1 %v3210_v15, %s6852_s22  ;;  %v6294_v18 = vpop.f32.mrb[30].mxu0 }
0x1c9a   :  { %v3124_v21 = vpop.f32.mrb[31].mxu0  ;;  %v3130_v17 = vadd.f32 %v6294_v18, %v7333_v10 }
0x1c9b   :  { %v3125_v9 = vadd.f32 %v7333_v10, %v3124_v21 }
0x1c9c   :  { %v3219_v34 = vadd.f32 %v3215_v12, %v3130_v17 }
0x1c9d   :  { %v7442_v23 = vpop.f32.mrb[32].mxu0  ;;  %v3218_v36 = vadd.f32 %v3210_v15, %v3125_v9 }
0x1c9e   :  { %v6304_v2 = vpop.f32.mrb[33].mxu0  ;;  %v5891_v25 = vmul.f32 -1.442695, %v3219_v34  ;;  %v7505_v19 = vadd.f32 %v7501_v59, %v7442_v23  ;;  %v3292_v23 = vld [vmem:[%s7825_s15] sm:$0xff]  ;;  %v3293_v34 = vld [vmem:[%s7825_s15 + $0x8] sm:$0xff] }
0x1c9f   :  { %v5890_v39 = vmul.f32 -1.442695, %v3218_v36  ;;  %v3294_v36 = vld [vmem:[%s7825_s15 + $0x10] sm:$0xff] }
0x1ca0   :  { %6789 = vpow2.f32 %v5891_v25  ;;  %v7519_v25 = vpack.c.bf16 %v3293_v34, %v3292_v23 }
0x1ca1   :  { %6791 = vpow2.f32 %v5890_v39  ;;  %v3295_v39 = vld [vmem:[%s7825_s15 + $0x18] sm:$0xff] }
0x1ca2   :  { %6559 = vmatpush3.bf16.msra.mxu0 %v7519_v25 }
0x1ca3   :  { %6560 = vmatprep.subr.bf16.mxu0 %v6856_v49 }
0x1caa   :  { %v6790_v4 = vpop.eup %6789 }
0x1cab   :  { %v6792_v5 = vpop.eup %6791  ;;  %v3227_v26 = vadd.f32 1.0, %v6790_v4  ;;  %v7525_v4 = vpack.c.bf16 %v3295_v39, %v3294_v36 }
0x1cac   :  { %v3226_v27 = vadd.f32 1.0, %v6792_v5 }
0x1cad   :  { %6793 = vrcp.f32 %v3227_v26  ;;  %6562 = vmatpush3.bf16.msra.mxu0 %v7525_v4 }
0x1cae   :  { %6795 = vrcp.f32 %v3226_v27  ;;  %6563 = vmatprep.subr.bf16.mxu0 %v6856_v49 }
0x1cb7   :  { %v6794_v28 = vpop.eup %6793 }
0x1cb8   :  { %v6796_v30 = vpop.eup %6795  ;;  %v3255_v50 = vsub.f32 1.0, %v6794_v28  ;;  %v3267_v44 = vmul.f32 %v6794_v28, %v7401_v48 }
0x1cb9   :  { %v3254_v16 = vsub.f32 1.0, %v6796_v30  ;;  %v3266_v63 = vmul.f32 %v6796_v30, %v7403_v52 }
0x1d0a   :  { %v3237_v46 = vpop.permute.xlu0 %3236 }
0x1d0b   :  { %v3241_v53 = vmul.f32 %v6794_v28, %v3237_v46  ;;  %v3235_v60 = vpop.permute.xlu1 %3234 }
0x1d0c   :  { %v3240_v31 = vmul.f32 %v6796_v30, %v3235_v60 }
0x1d0d   :  { %3246 = vrot.lane.b32.xlu0 %v3241_v53, %s6853_s5 }
0x1d0e   :  { %3244 = vrot.lane.b32.xlu1 %v3240_v31, %s6853_s5  ;;  %v7545_v31 = vld [vmem:[%s7826_s17] sm:$0xff] }
0x1d7f   :  { %v3247_v10 = vpop.permute.xlu0 %3246 }
0x1d80   :  { %v3251_v51 = vadd.f32 %v3247_v10, %v3130_v17  ;;  %v3245_v62 = vpop.permute.xlu1 %3244  ;;  %v7554_v10 = vld [vmem:[%s7827_s16] ss:$0 sm:$0xff] }
0x1d81   :  { %v3250_v54 = vadd.f32 %v3245_v62, %v3125_v9 }
0x1d82   :  { %6797 = vtanh.f32 %v3251_v51 }
0x1d83   :  { %6799 = vtanh.f32 %v3250_v54 }
0x1d8c   :  { %v6798_v35 = vpop.eup %6797 }
0x1d8d   :  { %v6800_v58 = vpop.eup %6799  ;;  %3260 = vrot.lane.b32.xlu0 %v6798_v35, %s6854_s4 }
0x1d8e   :  { %3258 = vrot.lane.b32.xlu1 %v6800_v58, %s6854_s4 }
0x1d91   :  { %3272 = vrot.lane.b32.xlu0 %v7411_v56, %s6855_s11  ;;  %v7494_v56 = vld [vmem:[%s7823_s14] ss:$0 sm:$0xff]  ;;  %s6858_s14 = smov 32  }
0x1dff   :  { %v3261_v47 = vpop.permute.xlu0 %3260 }
0x1e00   :  { %v3265_v55 = vmul.f32 %v3261_v47, %v3255_v50  ;;  %v3259_v61 = vpop.permute.xlu1 %3258 }
0x1e01   :  { %v3264_v6 = vmul.f32 %v3259_v61, %v3254_v16 }
0x1e02   :  { %v3269_v1 = vadd.f32 %v3267_v44, %v3265_v55  ;;  %v7571_v55 = vld [vmem:[%s7828_s18] ss:$0 sm:$0xff] }
0x1e03   :  { %v3268_v37 = vadd.f32 %v3266_v63, %v3264_v6  ;;  %v3273_v7 = vpop.permute.xlu0 %3272 }
0x1e04   :  { %3276 = vst.msk [vmem:[%s7821_s20] sm:$0xff] %vm3275_vm4, %v3273_v7  ;;  %3280 = vrot.lane.b32.xlu1 %v3269_v1, %s6853_s5 }
0x1e05   :  { %3278 = vst.msk [vmem:[%s7821_s20] sm:$0xff] %vm3277_vm5, %v3268_v37 }
0x1e76   :  { %v3281_v48 = vpop.permute.xlu1 %3280 }
0x1e77   :  { %3284 = vst.msk [vmem:[%s7821_s20] sm:$0xff] %vm3283_vm6, %v3281_v48 }
0x1e7e   :  { %v3299_v52 = vld [vmem:[%s7821_s20] sm:$0xff] }
0x1e7f   :  { %6314 = vmatmul.mubr.msk.f32.vlgmr.msra.gmra.mrb[32].mxu1 %vm3382_vm7, %v3299_v52 }
0x1e80   :  { %6329 = vmatprep.mubr.msk.f32.mxu1 %vm6851_vm2, %v6850_v0  ;;  %6328 = vmatpush3.msra.mxu1 %v7545_v31 }
0x1e81   :  { %6569 = vmatprep.subr.bf16.mxu1 %v6856_v49 }
0x1f52   :  { %v3452_v3 = vpop.f32.mrb[32].mxu1 }
0x1f53   :  { %v3453_v57 = vadd.f32 %v7494_v56, %v3452_v3  ;;  %v6315_v8 = vpop.f32.mrb[33].mxu1 }
0x1f55   :  { %3464 = vrot.lane.b32.xlu0 %v3453_v57, %s6857_s6  ;;  %v3456_v13 = vadd.f32 %v3453_v57, %v7505_v19 }
0x1f57   :  { %v5896_v12 = vmul.f32 -1.442695, %v3456_v13 }
0x1f59   :  { %6801 = vpow2.f32 %v5896_v12 }
0x1f63   :  { %v6802_v24 = vpop.eup %6801 }
0x1f64   :  { %v3460_v15 = vadd.f32 1.0, %v6802_v24 }
0x1f66   :  { %6803 = vrcp.f32 %v3460_v15 }
0x1f70   :  { %v6804_v18 = vpop.eup %6803 }
0x1f71   :  { %v3474_v27 = vsub.f32 1.0, %v6804_v18 }
0x1fc7   :  { %v3465_v21 = vpop.permute.xlu0 %3464 }
0x1fc8   :  { %v3467_v2 = vmul.f32 %v6804_v18, %v3465_v21 }
0x1fca   :  { %3469 = vrot.lane.b32.xlu1 %v3467_v2, %s6857_s6 }
0x1fce   :  { %3480 = vrot.lane.b32.xlu1 %v3299_v52, %s6858_s14 }
0x203c   :  { %v3470_v17 = vpop.permute.xlu1 %3469 }
0x203d   :  { %v3472_v9 = vadd.f32 %v3470_v17, %v7505_v19 }
0x203f   :  { %6805 = vtanh.f32 %v3472_v9 }
0x2040   :  { %v3481_v26 = vpop.permute.xlu1 %3480 }
0x2041   :  { %v3483_v46 = vmul.f32 %v6804_v18, %v3481_v26 }
0x2049   :  { %v6806_v5 = vpop.eup %6805 }
0x204a   :  { %3476 = vrot.lane.b32.xlu0 %v6806_v5, %s6859_s24 }
0x20bc   :  { %v3477_v28 = vpop.permute.xlu0 %3476 }
0x20bd   :  { %v3479_v30 = vmul.f32 %v3477_v28, %v3474_v27 }
0x20bf   :  { %v3484_v53 = vadd.f32 %v3483_v46, %v3479_v30 }
0x20c1   :  { %3492 = vrot.lane.b32.xlu0 %v3484_v53, %s6859_s24 }
0x2133   :  { %v3493_v60 = vpop.permute.xlu0 %3492 }
0x2134   :  { %6325 = vmatmul.mubr.msk.f32.vlgmr.msra.gmra.mrb[34].mxu0 %vm3382_vm7, %v3493_v60 }
0x2135   :  { %6565 = vmatpush3.bf16.msra.mxu0 %v7457_v45  ;;  %6340 = vmatprep.mubr.msk.f32.mxu0 %vm6851_vm2, %v6850_v0 }
0x2136   :  { %6566 = vmatprep.subr.bf16.mxu0 %v6856_v49 }
0x2139   :  { %6568 = vmatpush3.bf16.msra.mxu0 %v7468_v22 }
0x213a   :  { %6354 = vmatprep.subr.mxu0 %v6850_v0 }
0x213c   :  { %6341 = vmatmul.mubr.msk.f32.vlgmr.msra.gmra.mrb[36].mxu0 %vm3382_vm7, %v3493_v60 }
0x213d   :  { %6356 = vmatprep.mubr.msk.f32.mxu0 %vm6851_vm2, %v6850_v0  ;;  %6355 = vmatpush3.msra.mxu0 %v7545_v31 }
0x213e   :  { %6575 = vmatprep.subr.bf16.mxu0 %v6856_v49 }
0x2207   :  { %v3562_v51 = vpop.f32.mrb[34].mxu0 }
0x2208   :  { %v3563_v62 = vadd.f32 %v7554_v10, %v3562_v51  ;;  %v6326_v54 = vpop.f32.mrb[35].mxu0 }
0x220a   :  { %6330 = vmatmul.mubr.msk.f32.vlgmr.msra.gmra.mrb[34].mxu1 %vm686_vm3, %v3563_v62 }
0x220b   :  { %6571 = vmatpush3.bf16.msra.mxu1 %v7519_v25  ;;  %6351 = vmatprep.mubr.msk.f32.mxu1 %vm6851_vm2, %v6850_v0 }
0x220c   :  { %6572 = vmatprep.subr.bf16.mxu1 %v6856_v49 }
0x220f   :  { %v3712_v35 = vpop.f32.mrb[36].mxu0  ;;  %6574 = vmatpush3.bf16.msra.mxu1 %v7525_v4 }
0x2210   :  { %v3713_v58 = vadd.f32 %v7494_v56, %v3712_v35  ;;  %v6342_v42 = vpop.f32.mrb[37].mxu0  ;;  %6359 = vmatprep.subr.mxu1 %v6850_v0 }
0x2212   :  { %3724 = vrot.lane.b32.xlu1 %v3713_v58, %s6857_s6  ;;  %v3716_v43 = vadd.f32 %v3713_v58, %v7505_v19 }
0x2214   :  { %v5902_v20 = vmul.f32 -1.442695, %v3716_v43 }
0x2216   :  { %6807 = vpow2.f32 %v5902_v20 }
0x2220   :  { %v6808_v14 = vpop.eup %6807 }
0x2221   :  { %v3720_v50 = vadd.f32 1.0, %v6808_v14 }
0x2223   :  { %6809 = vrcp.f32 %v3720_v50 }
0x222d   :  { %v6810_v47 = vpop.eup %6809 }
0x222e   :  { %v3734_v48 = vsub.f32 1.0, %v6810_v47  ;;  %v3740_v3 = vmul.f32 %v6810_v47, %v3484_v53 }
0x2284   :  { %v3725_v16 = vpop.permute.xlu1 %3724 }
0x2285   :  { %v3727_v44 = vmul.f32 %v6810_v47, %v3725_v16 }
0x2287   :  { %3729 = vrot.lane.b32.xlu0 %v3727_v44, %s6857_s6 }
0x22dd   :  { %v3641_v61 = vpop.f32.mrb[34].mxu1 }
0x22de   :  { %v3642_v63 = vadd.f32 %v7571_v55, %v3641_v61  ;;  %v6331_v6 = vpop.f32.mrb[35].mxu1 }
0x22e0   :  { %3645 = vst.msk [vmem:[%s7829_s19] sm:$0xff] %vm73_vm1, %v3642_v63 }
0x22f9   :  { %v3730_v1 = vpop.permute.xlu0 %3729 }
0x22fa   :  { %v3732_v37 = vadd.f32 %v3730_v1, %v7505_v19 }
0x22fc   :  { %6811 = vtanh.f32 %v3732_v37 }
0x2306   :  { %v6812_v7 = vpop.eup %6811 }
0x2307   :  { %3736 = vrot.lane.b32.xlu1 %v6812_v7, %s6859_s24 }
0x2379   :  { %v3737_v52 = vpop.permute.xlu1 %3736 }
0x237a   :  { %v3739_v57 = vmul.f32 %v3737_v52, %v3734_v48 }
0x237c   :  { %v3741_v8 = vadd.f32 %v3740_v3, %v3739_v57 }
0x237e   :  { %3743 = vrot.lane.b32.xlu0 %v3741_v8, %s6859_s24 }
0x23f0   :  { %v3744_v13 = vpop.permute.xlu0 %3743 }
0x23f1   :  { %6352 = vmatmul.mubr.msk.f32.vlgmr.msra.gmra.mrb[36].mxu1 %vm3382_vm7, %v3744_v13 }
0x23f2   :  { %6360 = vmatpush3.msra.mxu1 %v7423_v11  ;;  %6361 = vmatprep.mubr.msk.f32.mxu1 %vm6851_vm2, %v6850_v0 }
0x23f3   :  { %6581 = vmatprep.subr.bf16.mxu1 %v6856_v49 }
0x23f5   :  { %6362 = vmatmul.mubr.msk.f32.vlgmr.msra.gmra.mrb[38].mxu1 %vm686_vm3, %v7059_v29 }
0x23f6   :  { %6583 = vmatpush3.bf16.msra.mxu1 %v7519_v25  ;;  %6383 = vmatprep.mubr.msk.f32.mxu1 %vm6851_vm2, %v6850_v0 }
0x23f7   :  { %6584 = vmatprep.subr.bf16.mxu1 %v6856_v49 }
0x23fa   :  { %6586 = vmatpush3.bf16.msra.mxu1 %v7525_v4 }
0x23fb   :  { %6391 = vmatprep.subr.mxu1 %v6850_v0 }
0x24c4   :  { %v3813_v19 = vpop.f32.mrb[36].mxu1 }
0x24c5   :  { %v3814_v12 = vadd.f32 %v7554_v10, %v3813_v19  ;;  %v6353_v24 = vpop.f32.mrb[37].mxu1 }
0x24c7   :  { %6357 = vmatmul.mubr.msk.f32.vlgmr.msra.gmra.mrb[38].mxu0 %vm686_vm3, %v3814_v12 }
0x24c8   :  { %6577 = vmatpush3.bf16.msra.mxu0 %v7457_v45  ;;  %v3958_v29 = vpop.f32.mrb[38].mxu1  ;;  %6372 = vmatprep.mubr.msk.f32.mxu0 %vm6851_vm2, %v6850_v0 }
0x24c9   :  { %v6363_v15 = vpop.f32.mrb[39].mxu1  ;;  %6578 = vmatprep.subr.bf16.mxu0 %v6856_v49  ;;  %v3959_v34 = vadd.f32 %v7501_v59, %v3958_v29 }
0x24cc   :  { %6580 = vmatpush3.bf16.msra.mxu0 %v7468_v22 }
0x24cd   :  { %6386 = vmatprep.subr.mxu0 %v6850_v0 }
0x24cf   :  { %6373 = vmatmul.mubr.msk.f32.vlgmr.msra.gmra.mrb[40].mxu0 %vm3382_vm7, %v3744_v13 }
0x24d0   :  { %6387 = vmatpush3.msra.mxu0 %v7545_v31  ;;  %6388 = vmatprep.mubr.msk.f32.mxu0 %vm6851_vm2, %v6850_v0 }
0x24d1   :  { %6587 = vmatprep.subr.bf16.mxu0 %v6856_v49 }
0x259a   :  { %v3886_v18 = vpop.f32.mrb[38].mxu0 }
0x259b   :  { %v3887_v21 = vadd.f32 %v7571_v55, %v3886_v18  ;;  %v6358_v2 = vpop.f32.mrb[39].mxu0 }
0x259d   :  { %5905 = vst.msk [vmem:[%s7829_s19 + $0x8] sm:$0xff] %vm73_vm1, %v3887_v21 }
0x25a2   :  { %v4028_v17 = vpop.f32.mrb[40].mxu0 }
0x25a3   :  { %v4029_v9 = vadd.f32 %v7494_v56, %v4028_v17  ;;  %v6374_v23 = vpop.f32.mrb[41].mxu0 }
0x25a5   :  { %4040 = vrot.lane.b32.xlu1 %v4029_v9, %s6857_s6  ;;  %v4032_v36 = vadd.f32 %v4029_v9, %v3959_v34 }
0x25a7   :  { %v5908_v39 = vmul.f32 -1.442695, %v4032_v36 }
0x25a9   :  { %6813 = vpow2.f32 %v5908_v39 }
0x25b3   :  { %v6814_v5 = vpop.eup %6813 }
0x25b4   :  { %v4036_v26 = vadd.f32 1.0, %v6814_v5 }
0x25b6   :  { %6815 = vrcp.f32 %v4036_v26 }
0x25c0   :  { %v6816_v27 = vpop.eup %6815 }
0x25c1   :  { %v4050_v51 = vsub.f32 1.0, %v6816_v27  ;;  %v4056_v54 = vmul.f32 %v6816_v27, %v3741_v8 }
0x2617   :  { %v4041_v28 = vpop.permute.xlu1 %4040 }
0x2618   :  { %v4043_v46 = vmul.f32 %v6816_v27, %v4041_v28 }
0x261a   :  { %4045 = vrot.lane.b32.xlu0 %v4043_v46, %s6857_s6 }
0x268c   :  { %v4046_v30 = vpop.permute.xlu0 %4045 }
0x268d   :  { %v4048_v53 = vadd.f32 %v4046_v30, %v3959_v34 }
0x268f   :  { %6817 = vtanh.f32 %v4048_v53 }
0x2699   :  { %v6818_v60 = vpop.eup %6817 }
0x269a   :  { %4052 = vrot.lane.b32.xlu1 %v6818_v60, %s6859_s24 }
0x270c   :  { %v4053_v62 = vpop.permute.xlu1 %4052 }
0x270d   :  { %v4055_v35 = vmul.f32 %v4053_v62, %v4050_v51 }
0x270f   :  { %v4057_v58 = vadd.f32 %v4056_v54, %v4055_v35 }
0x2711   :  { %4059 = vrot.lane.b32.xlu0 %v4057_v58, %s6859_s24 }
0x2783   :  { %v4060_v42 = vpop.permute.xlu0 %4059 }
0x2784   :  { %6384 = vmatmul.mubr.msk.f32.vlgmr.msra.gmra.mrb[40].mxu1 %vm3382_vm7, %v4060_v42 }
0x2785   :  { %6392 = vmatpush3.msra.mxu1 %v7423_v11  ;;  %6393 = vmatprep.mubr.msk.f32.mxu1 %vm6851_vm2, %v6850_v0 }
0x2786   :  { %6593 = vmatprep.subr.bf16.mxu1 %v6856_v49 }
0x2788   :  { %6394 = vmatmul.mubr.msk.f32.vlgmr.msra.gmra.mrb[42].mxu1 %vm686_vm3, %v7067_v32 }
0x2789   :  { %6595 = vmatpush3.bf16.msra.mxu1 %v7519_v25  ;;  %6415 = vmatprep.mubr.msk.f32.mxu1 %vm6851_vm2, %v6850_v0 }
0x278a   :  { %6596 = vmatprep.subr.bf16.mxu1 %v6856_v49 }
0x278d   :  { %6598 = vmatpush3.bf16.msra.mxu1 %v7525_v4 }
0x278e   :  { %6423 = vmatprep.subr.mxu1 %v6850_v0 }
0x2857   :  { %v4129_v43 = vpop.f32.mrb[40].mxu1 }
0x2858   :  { %v4130_v20 = vadd.f32 %v7554_v10, %v4129_v43  ;;  %v6385_v14 = vpop.f32.mrb[41].mxu1 }
0x285a   :  { %6389 = vmatmul.mubr.msk.f32.vlgmr.msra.gmra.mrb[42].mxu0 %vm686_vm3, %v4130_v20 }
0x285b   :  { %6589 = vmatpush3.bf16.msra.mxu0 %v7457_v45  ;;  %v4274_v32 = vpop.f32.mrb[42].mxu1  ;;  %6404 = vmatprep.mubr.msk.f32.mxu0 %vm6851_vm2, %v6850_v0 }
0x285c   :  { %v6395_v50 = vpop.f32.mrb[43].mxu1  ;;  %6590 = vmatprep.subr.bf16.mxu0 %v6856_v49  ;;  %v4275_v1 = vadd.f32 %v7501_v59, %v4274_v32 }
0x285f   :  { %6592 = vmatpush3.bf16.msra.mxu0 %v7468_v22 }
0x2860   :  { %6418 = vmatprep.subr.mxu0 %v6850_v0 }
0x2862   :  { %6405 = vmatmul.mubr.msk.f32.vlgmr.msra.gmra.mrb[44].mxu0 %vm3382_vm7, %v4060_v42 }
0x2863   :  { %6419 = vmatpush3.msra.mxu0 %v7545_v31  ;;  %6420 = vmatprep.mubr.msk.f32.mxu0 %vm6851_vm2, %v6850_v0 }
0x2864   :  { %6599 = vmatprep.subr.bf16.mxu0 %v6856_v49 }
0x292d   :  { %v4202_v47 = vpop.f32.mrb[42].mxu0 }
0x292e   :  { %v4203_v16 = vadd.f32 %v7571_v55, %v4202_v47  ;;  %v6390_v44 = vpop.f32.mrb[43].mxu0 }
0x2930   :  { %5911 = vst.msk [vmem:[%s7829_s19 + $0x10] sm:$0xff] %vm73_vm1, %v4203_v16 }
0x2935   :  { %v4344_v61 = vpop.f32.mrb[44].mxu0 }
0x2936   :  { %v4345_v63 = vadd.f32 %v7494_v56, %v4344_v61  ;;  %v6406_v6 = vpop.f32.mrb[45].mxu0 }
0x2938   :  { %4356 = vrot.lane.b32.xlu1 %v4345_v63, %s6857_s6  ;;  %v4348_v37 = vadd.f32 %v4345_v63, %v4275_v1 }
0x293a   :  { %v5914_v7 = vmul.f32 -1.442695, %v4348_v37 }
0x293c   :  { %6819 = vpow2.f32 %v5914_v7 }
0x2946   :  { %v6820_v48 = vpop.eup %6819 }
0x2947   :  { %v4352_v52 = vadd.f32 1.0, %v6820_v48 }
0x2949   :  { %6821 = vrcp.f32 %v4352_v52 }
0x2953   :  { %v6822_v3 = vpop.eup %6821 }
0x2954   :  { %v4366_v24 = vsub.f32 1.0, %v6822_v3  ;;  %v4372_v15 = vmul.f32 %v6822_v3, %v4057_v58 }
0x29aa   :  { %v4357_v57 = vpop.permute.xlu1 %4356 }
0x29ab   :  { %v4359_v8 = vmul.f32 %v6822_v3, %v4357_v57 }
0x29ad   :  { %4361 = vrot.lane.b32.xlu0 %v4359_v8, %s6857_s6 }
0x2a1f   :  { %v4362_v13 = vpop.permute.xlu0 %4361 }
0x2a20   :  { %v4364_v19 = vadd.f32 %v4362_v13, %v4275_v1 }
0x2a22   :  { %6823 = vtanh.f32 %v4364_v19 }
0x2a2c   :  { %v6824_v12 = vpop.eup %6823 }
0x2a2d   :  { %4368 = vrot.lane.b32.xlu1 %v6824_v12, %s6859_s24 }
0x2a9f   :  { %v4369_v29 = vpop.permute.xlu1 %4368 }
0x2aa0   :  { %v4371_v18 = vmul.f32 %v4369_v29, %v4366_v24 }
0x2aa2   :  { %v4373_v21 = vadd.f32 %v4372_v15, %v4371_v18 }
0x2aa4   :  { %4375 = vrot.lane.b32.xlu0 %v4373_v21, %s6859_s24 }
0x2b16   :  { %v4376_v2 = vpop.permute.xlu0 %4375 }
0x2b17   :  { %6416 = vmatmul.mubr.msk.f32.vlgmr.msra.gmra.mrb[44].mxu1 %vm3382_vm7, %v4376_v2 }
0x2b18   :  { %6424 = vmatpush3.msra.mxu1 %v7423_v11  ;;  %6425 = vmatprep.mubr.msk.f32.mxu1 %vm6851_vm2, %v6850_v0 }
0x2b19   :  { %6605 = vmatprep.subr.bf16.mxu1 %v6856_v49 }
0x2b1b   :  { %6426 = vmatmul.mubr.msk.f32.vlgmr.msra.gmra.mrb[46].mxu1 %vm686_vm3, %v7086_v40 }
0x2b1c   :  { %6607 = vmatpush3.bf16.msra.mxu1 %v7519_v25  ;;  %6447 = vmatprep.mubr.msk.f32.mxu1 %vm6851_vm2, %v6850_v0 }
0x2b1d   :  { %6608 = vmatprep.subr.bf16.mxu1 %v6856_v49 }
0x2b20   :  { %6610 = vmatpush3.bf16.msra.mxu1 %v7525_v4 }
0x2b21   :  { %6455 = vmatprep.subr.mxu1 %v6850_v0 }
0x2bea   :  { %v4445_v17 = vpop.f32.mrb[44].mxu1 }
0x2beb   :  { %v4446_v9 = vadd.f32 %v7554_v10, %v4445_v17  ;;  %v6417_v23 = vpop.f32.mrb[45].mxu1 }
0x2bed   :  { %6421 = vmatmul.mubr.msk.f32.vlgmr.msra.gmra.mrb[46].mxu0 %vm686_vm3, %v4446_v9 }
0x2bee   :  { %6601 = vmatpush3.bf16.msra.mxu0 %v7457_v45  ;;  %v4590_v40 = vpop.f32.mrb[46].mxu1  ;;  %6436 = vmatprep.mubr.msk.f32.mxu0 %vm6851_vm2, %v6850_v0 }
0x2bef   :  { %v6427_v34 = vpop.f32.mrb[47].mxu1  ;;  %6602 = vmatprep.subr.bf16.mxu0 %v6856_v49  ;;  %v4591_v46 = vadd.f32 %v7501_v59, %v4590_v40 }
0x2bf2   :  { %6604 = vmatpush3.bf16.msra.mxu0 %v7468_v22 }
0x2bf3   :  { %6450 = vmatprep.subr.mxu0 %v6850_v0 }
0x2bf5   :  { %6437 = vmatmul.mubr.msk.f32.vlgmr.msra.gmra.mrb[48].mxu0 %vm3382_vm7, %v4376_v2 }
0x2bf6   :  { %6451 = vmatpush3.msra.mxu0 %v7545_v31  ;;  %6452 = vmatprep.mubr.msk.f32.mxu0 %vm6851_vm2, %v6850_v0 }
0x2bf7   :  { %6611 = vmatprep.subr.bf16.mxu0 %v6856_v49 }
0x2cc0   :  { %v4518_v36 = vpop.f32.mrb[46].mxu0 }
0x2cc1   :  { %v4519_v39 = vadd.f32 %v7571_v55, %v4518_v36  ;;  %v6422_v5 = vpop.f32.mrb[47].mxu0 }
0x2cc3   :  { %5917 = vst.msk [vmem:[%s7829_s19 + $0x18] sm:$0xff] %vm73_vm1, %v4519_v39 }
0x2cc8   :  { %v4660_v26 = vpop.f32.mrb[48].mxu0 }
0x2cc9   :  { %v4661_v27 = vadd.f32 %v7494_v56, %v4660_v26  ;;  %v6438_v28 = vpop.f32.mrb[49].mxu0 }
0x2ccb   :  { %4672 = vrot.lane.b32.xlu1 %v4661_v27, %s6857_s6  ;;  %v4664_v30 = vadd.f32 %v4661_v27, %v4591_v46 }
0x2ccd   :  { %v5920_v53 = vmul.f32 -1.442695, %v4664_v30 }
0x2ccf   :  { %6825 = vpow2.f32 %v5920_v53 }
0x2cd9   :  { %v6826_v60 = vpop.eup %6825 }
0x2cda   :  { %v4668_v51 = vadd.f32 1.0, %v6826_v60 }
0x2cdc   :  { %6827 = vrcp.f32 %v4668_v51 }
0x2ce6   :  { %v6828_v62 = vpop.eup %6827 }
0x2ce7   :  { %v4682_v20 = vsub.f32 1.0, %v6828_v62  ;;  %v4688_v32 = vmul.f32 %v6828_v62, %v4373_v21 }
0x2d3d   :  { %v4673_v54 = vpop.permute.xlu1 %4672 }
0x2d3e   :  { %v4675_v35 = vmul.f32 %v6828_v62, %v4673_v54 }
0x2d40   :  { %4677 = vrot.lane.b32.xlu0 %v4675_v35, %s6857_s6 }
0x2db2   :  { %v4678_v58 = vpop.permute.xlu0 %4677 }
0x2db3   :  { %v4680_v42 = vadd.f32 %v4678_v58, %v4591_v46 }
0x2db5   :  { %6829 = vtanh.f32 %v4680_v42 }
0x2dbf   :  { %v6830_v43 = vpop.eup %6829 }
0x2dc0   :  { %4684 = vrot.lane.b32.xlu1 %v6830_v43, %s6859_s24 }
0x2e32   :  { %v4685_v14 = vpop.permute.xlu1 %4684 }
0x2e33   :  { %v4687_v50 = vmul.f32 %v4685_v14, %v4682_v20 }
0x2e35   :  { %v4689_v47 = vadd.f32 %v4688_v32, %v4687_v50 }
0x2e37   :  { %4691 = vrot.lane.b32.xlu0 %v4689_v47, %s6859_s24 }
0x2ea9   :  { %v4692_v16 = vpop.permute.xlu0 %4691 }
0x2eaa   :  { %6448 = vmatmul.mubr.msk.f32.vlgmr.msra.gmra.mrb[48].mxu1 %vm3382_vm7, %v4692_v16 }
0x2eab   :  { %6456 = vmatpush3.msra.mxu1 %v7423_v11  ;;  %6457 = vmatprep.mubr.msk.f32.mxu1 %vm6851_vm2, %v6850_v0 }
0x2eac   :  { %6617 = vmatprep.subr.bf16.mxu1 %v6856_v49 }
0x2eae   :  { %6458 = vmatmul.mubr.msk.f32.vlgmr.msra.gmra.mrb[50].mxu1 %vm686_vm3, %v7088_v41 }
0x2eaf   :  { %6619 = vmatpush3.bf16.msra.mxu1 %v7519_v25  ;;  %6479 = vmatprep.mubr.msk.f32.mxu1 %vm6851_vm2, %v6850_v0 }
0x2eb0   :  { %6620 = vmatprep.subr.bf16.mxu1 %v6856_v49 }
0x2eb3   :  { %6622 = vmatpush3.bf16.msra.mxu1 %v7525_v4 }
0x2eb4   :  { %6487 = vmatprep.subr.mxu1 %v6850_v0 }
0x2f7d   :  { %v4761_v44 = vpop.f32.mrb[48].mxu1 }
0x2f7e   :  { %v4762_v61 = vadd.f32 %v7554_v10, %v4761_v44  ;;  %v6449_v63 = vpop.f32.mrb[49].mxu1 }
0x2f80   :  { %6453 = vmatmul.mubr.msk.f32.vlgmr.msra.gmra.mrb[50].mxu0 %vm686_vm3, %v4762_v61 }
0x2f81   :  { %6613 = vmatpush3.bf16.msra.mxu0 %v7457_v45  ;;  %v4906_v41 = vpop.f32.mrb[50].mxu1  ;;  %6468 = vmatprep.mubr.msk.f32.mxu0 %vm6851_vm2, %v6850_v0 }
0x2f82   :  { %v6459_v6 = vpop.f32.mrb[51].mxu1  ;;  %6614 = vmatprep.subr.bf16.mxu0 %v6856_v49  ;;  %v4907_v57 = vadd.f32 %v7501_v59, %v4906_v41 }
0x2f85   :  { %6616 = vmatpush3.bf16.msra.mxu0 %v7468_v22 }
0x2f86   :  { %6482 = vmatprep.subr.mxu0 %v6850_v0 }
0x2f88   :  { %6469 = vmatmul.mubr.msk.f32.vlgmr.msra.gmra.mrb[52].mxu0 %vm3382_vm7, %v4692_v16 }
0x2f89   :  { %6483 = vmatpush3.msra.mxu0 %v7545_v31  ;;  %6484 = vmatprep.mubr.msk.f32.mxu0 %vm6851_vm2, %v6850_v0 }
0x2f8a   :  { %6623 = vmatprep.subr.bf16.mxu0 %v6856_v49 }
0x3053   :  { %v4834_v1 = vpop.f32.mrb[50].mxu0 }
0x3054   :  { %v4835_v37 = vadd.f32 %v7571_v55, %v4834_v1  ;;  %v6454_v7 = vpop.f32.mrb[51].mxu0 }
0x3056   :  { %5923 = vst.msk [vmem:[%s7829_s19 + $0x20] sm:$0xff] %vm73_vm1, %v4835_v37 }
0x305b   :  { %v4976_v48 = vpop.f32.mrb[52].mxu0 }
0x305c   :  { %v4977_v52 = vadd.f32 %v7494_v56, %v4976_v48  ;;  %v6470_v3 = vpop.f32.mrb[53].mxu0 }
0x305e   :  { %4988 = vrot.lane.b32.xlu1 %v4977_v52, %s6857_s6  ;;  %v4980_v8 = vadd.f32 %v4977_v52, %v4907_v57 }
0x3060   :  { %v5926_v13 = vmul.f32 -1.442695, %v4980_v8 }
0x3062   :  { %6831 = vpow2.f32 %v5926_v13 }
0x306c   :  { %v6832_v19 = vpop.eup %6831 }
0x306d   :  { %v4984_v12 = vadd.f32 1.0, %v6832_v19 }
0x306f   :  { %6833 = vrcp.f32 %v4984_v12 }
0x3079   :  { %v6834_v24 = vpop.eup %6833 }
0x307a   :  { %v4998_v17 = vsub.f32 1.0, %v6834_v24  ;;  %v5004_v23 = vmul.f32 %v6834_v24, %v4689_v47 }
0x30d0   :  { %v4989_v29 = vpop.permute.xlu1 %4988 }
0x30d1   :  { %v4991_v15 = vmul.f32 %v6834_v24, %v4989_v29 }
0x30d3   :  { %4993 = vrot.lane.b32.xlu0 %v4991_v15, %s6857_s6 }
0x3145   :  { %v4994_v18 = vpop.permute.xlu0 %4993 }
0x3146   :  { %v4996_v21 = vadd.f32 %v4994_v18, %v4907_v57 }
0x3148   :  { %6835 = vtanh.f32 %v4996_v21 }
0x3152   :  { %v6836_v2 = vpop.eup %6835 }
0x3153   :  { %5000 = vrot.lane.b32.xlu1 %v6836_v2, %s6859_s24 }
0x31c5   :  { %v5001_v9 = vpop.permute.xlu1 %5000 }
0x31c6   :  { %v5003_v40 = vmul.f32 %v5001_v9, %v4998_v17 }
0x31c8   :  { %v5005_v34 = vadd.f32 %v5004_v23, %v5003_v40 }
0x31ca   :  { %5007 = vrot.lane.b32.xlu0 %v5005_v34, %s6859_s24 }
0x323c   :  { %v5008_v36 = vpop.permute.xlu0 %5007 }
0x323d   :  { %6480 = vmatmul.mubr.msk.f32.vlgmr.msra.gmra.mrb[52].mxu1 %vm3382_vm7, %v5008_v36 }
0x323e   :  { %6488 = vmatpush3.msra.mxu1 %v7423_v11  ;;  %6489 = vmatprep.mubr.msk.f32.mxu1 %vm6851_vm2, %v6850_v0 }
0x323f   :  { %6629 = vmatprep.subr.bf16.mxu1 %v6856_v49 }
0x3241   :  { %6490 = vmatmul.mubr.msk.f32.vlgmr.msra.gmra.mrb[54].mxu1 %vm686_vm3, %v7081_v38 }
0x3242   :  { %6631 = vmatpush3.bf16.msra.mxu1 %v7519_v25  ;;  %6511 = vmatprep.mubr.msk.f32.mxu1 %vm6851_vm2, %v6850_v0 }
0x3243   :  { %6632 = vmatprep.subr.bf16.mxu1 %v6856_v49 }
0x3246   :  { %6634 = vmatpush3.bf16.msra.mxu1 %v7525_v4 }
0x3247   :  { %6519 = vmatprep.subr.mxu1 %v6850_v0 }
0x3310   :  { %v5077_v39 = vpop.f32.mrb[52].mxu1 }
0x3311   :  { %v5078_v5 = vadd.f32 %v7554_v10, %v5077_v39  ;;  %v6481_v26 = vpop.f32.mrb[53].mxu1 }
0x3313   :  { %6485 = vmatmul.mubr.msk.f32.vlgmr.msra.gmra.mrb[54].mxu0 %vm686_vm3, %v5078_v5 }
0x3314   :  { %6625 = vmatpush3.bf16.msra.mxu0 %v7457_v45  ;;  %v5222_v38 = vpop.f32.mrb[54].mxu1  ;;  %6500 = vmatprep.mubr.msk.f32.mxu0 %vm6851_vm2, %v6850_v0 }
0x3315   :  { %v6491_v27 = vpop.f32.mrb[55].mxu1  ;;  %6626 = vmatprep.subr.bf16.mxu0 %v6856_v49  ;;  %v5223_v62 = vadd.f32 %v7501_v59, %v5222_v38 }
0x3318   :  { %6628 = vmatpush3.bf16.msra.mxu0 %v7468_v22 }
0x3319   :  { %6514 = vmatprep.subr.mxu0 %v6850_v0 }
0x331b   :  { %6501 = vmatmul.mubr.msk.f32.vlgmr.msra.gmra.mrb[56].mxu0 %vm3382_vm7, %v5008_v36 }
0x331c   :  { %6515 = vmatpush3.msra.mxu0 %v7545_v31  ;;  %6516 = vmatprep.mubr.msk.f32.mxu0 %vm6851_vm2, %v6850_v0 }
0x331d   :  { %6635 = vmatprep.subr.bf16.mxu0 %v6856_v49 }
0x33e6   :  { %v5150_v28 = vpop.f32.mrb[54].mxu0 }
0x33e7   :  { %v5151_v46 = vadd.f32 %v7571_v55, %v5150_v28  ;;  %v6486_v30 = vpop.f32.mrb[55].mxu0 }
0x33e9   :  { %5929 = vst.msk [vmem:[%s7829_s19 + $0x28] sm:$0xff] %vm73_vm1, %v5151_v46 }
0x33ee   :  { %v5292_v53 = vpop.f32.mrb[56].mxu0 }
0x33ef   :  { %v5293_v60 = vadd.f32 %v7494_v56, %v5292_v53  ;;  %v6502_v51 = vpop.f32.mrb[57].mxu0 }
0x33f1   :  { %5304 = vrot.lane.b32.xlu1 %v5293_v60, %s6857_s6  ;;  %v5296_v54 = vadd.f32 %v5293_v60, %v5223_v62 }
0x33f3   :  { %v5932_v35 = vmul.f32 -1.442695, %v5296_v54 }
0x33f5   :  { %6837 = vpow2.f32 %v5932_v35 }
0x33ff   :  { %v6838_v58 = vpop.eup %6837 }
0x3400   :  { %v5300_v42 = vadd.f32 1.0, %v6838_v58 }
0x3402   :  { %6839 = vrcp.f32 %v5300_v42 }
0x340c   :  { %v6840_v43 = vpop.eup %6839 }
0x340d   :  { %v5314_v16 = vsub.f32 1.0, %v6840_v43  ;;  %v5320_v61 = vmul.f32 %v6840_v43, %v5005_v34 }
0x3463   :  { %v5305_v20 = vpop.permute.xlu1 %5304 }
0x3464   :  { %v5307_v14 = vmul.f32 %v6840_v43, %v5305_v20 }
0x3466   :  { %5309 = vrot.lane.b32.xlu0 %v5307_v14, %s6857_s6 }
0x34d8   :  { %v5310_v32 = vpop.permute.xlu0 %5309 }
0x34d9   :  { %v5312_v50 = vadd.f32 %v5310_v32, %v5223_v62 }
0x34db   :  { %6841 = vtanh.f32 %v5312_v50 }
0x34e5   :  { %v6842_v47 = vpop.eup %6841 }
0x34e6   :  { %5316 = vrot.lane.b32.xlu1 %v6842_v47, %s6859_s24 }
0x3558   :  { %v5317_v44 = vpop.permute.xlu1 %5316 }
0x3559   :  { %v5319_v63 = vmul.f32 %v5317_v44, %v5314_v16 }
0x355b   :  { %v5321_v41 = vadd.f32 %v5320_v61, %v5319_v63 }
0x355d   :  { %5323 = vrot.lane.b32.xlu0 %v5321_v41, %s6859_s24 }
0x35cf   :  { %v5324_v6 = vpop.permute.xlu0 %5323 }
0x35d0   :  { %6512 = vmatmul.mubr.msk.f32.vlgmr.msra.gmra.mrb[56].mxu1 %vm3382_vm7, %v5324_v6 }
0x35d1   :  { %6520 = vmatpush3.msra.mxu1 %v7423_v11  ;;  %6521 = vmatprep.mubr.msk.f32.mxu1 %vm6851_vm2, %v6850_v0 }
0x35d2   :  { %6641 = vmatprep.subr.bf16.mxu1 %v6856_v49 }
0x35d4   :  { %6522 = vmatmul.mubr.msk.f32.vlgmr.msra.gmra.mrb[58].mxu1 %vm686_vm3, %v7069_v33 }
0x35d5   :  { %6643 = vmatpush3.bf16.msra.mxu1 %v7519_v25  ;;  %6543 = vmatprep.mubr.msk.f32.mxu1 %vm6851_vm2, %v6850_v0 }
0x35d6   :  { %6644 = vmatprep.subr.bf16.mxu1 %v6856_v49 }
0x35d9   :  { %6646 = vmatpush3.bf16.msra.mxu1 %v7525_v4 }
0x36a3   :  { %v5393_v1 = vpop.f32.mrb[56].mxu1 }
0x36a4   :  { %v5394_v11 = vadd.f32 %v7554_v10, %v5393_v1  ;;  %v6513_v37 = vpop.f32.mrb[57].mxu1 }
0x36a6   :  { %6517 = vmatmul.mubr.msk.f32.vlgmr.msra.gmra.mrb[58].mxu0 %vm686_vm3, %v5394_v11 }
0x36a7   :  { %6637 = vmatpush3.bf16.msra.mxu0 %v7457_v45  ;;  %v5538_v7 = vpop.f32.mrb[58].mxu1  ;;  %6532 = vmatprep.mubr.msk.f32.mxu0 %vm6851_vm2, %v6850_v0 }
0x36a8   :  { %v6523_v33 = vpop.f32.mrb[59].mxu1  ;;  %6638 = vmatprep.subr.bf16.mxu0 %v6856_v49 }
0x36ab   :  { %6640 = vmatpush3.bf16.msra.mxu0 %v7468_v22 }
0x36ac   :  { %6546 = vmatprep.subr.mxu0 %v6850_v0 }
0x36ae   :  { %6533 = vmatmul.mubr.msk.f32.vlgmr.msra.gmra.mrb[60].mxu0 %vm3382_vm7, %v5324_v6 }
0x36af   :  { %6547 = vmatpush3.msra.mxu0 %v7545_v31  ;;  %6548 = vmatprep.mubr.msk.f32.mxu0 %vm6851_vm2, %v6850_v0  ;;  %v5539_v31 = vadd.f32 %v7501_v59, %v5538_v7 }
0x3779   :  { %v5466_v25 = vpop.f32.mrb[58].mxu0 }
0x377a   :  { %v5467_v45 = vadd.f32 %v7571_v55, %v5466_v25  ;;  %v6518_v4 = vpop.f32.mrb[59].mxu0 }
0x377c   :  { %5935 = vst.msk [vmem:[%s7829_s19 + $0x30] sm:$0xff] %vm73_vm1, %v5467_v45 }
0x3781   :  { %v5608_v49 = vpop.f32.mrb[60].mxu0 }
0x3782   :  { %v5609_v22 = vadd.f32 %v7494_v56, %v5608_v49  ;;  %v6534_v48 = vpop.f32.mrb[61].mxu0 }
0x3784   :  { %5620 = vrot.lane.b32.xlu1 %v5609_v22, %s6857_s6  ;;  %v5612_v52 = vadd.f32 %v5609_v22, %v5539_v31 }
0x3786   :  { %v5938_v3 = vmul.f32 -1.442695, %v5612_v52 }
0x3788   :  { %6843 = vpow2.f32 %v5938_v3 }
0x3792   :  { %v6844_v0 = vpop.eup %6843 }
0x3793   :  { %v5616_v57 = vadd.f32 1.0, %v6844_v0 }
0x3795   :  { %6845 = vrcp.f32 %v5616_v57 }
0x379f   :  { %v6846_v8 = vpop.eup %6845 }
0x37a0   :  { %v5630_v29 = vsub.f32 1.0, %v6846_v8  ;;  %v5636_v59 = vmul.f32 %v6846_v8, %v5321_v41 }
0x37f6   :  { %v5621_v13 = vpop.permute.xlu1 %5620 }
0x37f7   :  { %v5623_v19 = vmul.f32 %v6846_v8, %v5621_v13 }
0x37f9   :  { %5625 = vrot.lane.b32.xlu0 %v5623_v19, %s6857_s6 }
0x386b   :  { %v5626_v12 = vpop.permute.xlu0 %5625 }
0x386c   :  { %v5628_v24 = vadd.f32 %v5626_v12, %v5539_v31 }
0x386e   :  { %6847 = vtanh.f32 %v5628_v24 }
0x3878   :  { %v6848_v56 = vpop.eup %6847 }
0x3879   :  { %5632 = vrot.lane.b32.xlu1 %v6848_v56, %s6859_s24 }
0x38eb   :  { %v5633_v15 = vpop.permute.xlu1 %5632 }
0x38ec   :  { %v5635_v18 = vmul.f32 %v5633_v15, %v5630_v29 }
0x38ee   :  { %v5637_v21 = vadd.f32 %v5636_v59, %v5635_v18 }
0x38f0   :  { %5639 = vrot.lane.b32.xlu0 %v5637_v21, %s6859_s24 }
0x3962   :  { %v5640_v2 = vpop.permute.xlu0 %5639 }
0x3963   :  { %6544 = vmatmul.mubr.msk.f32.vlgmr.msra.gmra.mrb[60].mxu1 %vm3382_vm7, %v5640_v2 }
0x3a36   :  { %v5709_v17 = vpop.f32.mrb[60].mxu1 }
0x3a37   :  { %v5710_v9 = vadd.f32 %v7554_v10, %v5709_v17  ;;  %v6545_v23 = vpop.f32.mrb[61].mxu1 }
0x3a39   :  { %6549 = vmatmul.mubr.msk.f32.vlgmr.msra.gmra.mrb[62].mxu0 %vm686_vm3, %v5710_v9 }
0x3b0c   :  { %v5782_v40 = vpop.f32.mrb[62].mxu0 }
0x3b0d   :  { %v5783_v34 = vadd.f32 %v7571_v55, %v5782_v40  ;;  %v6550_v36 = vpop.f32.mrb[63].mxu0 }
0x3b0f   :  { %5941 = vst.msk [vmem:[%s7829_s19 + $0x38] sm:$0xff] %vm73_vm1, %v5783_v34 }

</bundles_post_ra>
